<compile_context>
chip_gen: v5e
topology: v5e:2x2
jax: 0.10.0
libtpu: 0.0.40
codegen_flags: <defaults>
</compile_context>

<pallas_src>
import math
from functools import partial
from itertools import pairwise

import numpy as np
import jax
import jax.numpy as jnp
from jax import lax
from jax.experimental import pallas as pl
from jax.experimental.pallas import tpu as pltpu

_EPS = 1e-5      # BatchNorm2d eps
_SLOPE = 0.01    # LeakyReLU default negative_slope


def _rup(n, m):
    return ((n + m - 1) // m) * m


# ---------------------------------------------------------------------------
# In-kernel helpers (all shapes static at trace time)
# ---------------------------------------------------------------------------
def _shift_flat(x, s):
    """y[:, i] = x[:, (i + s) % N] along the flattened spatial (lane) axis.

    Wrapped lanes are always overwritten by the caller's boundary masks, so only
    the interior shift matters.  Lane-aligned widths use the XLU rotate
    (pltpu.roll, no VPU/MXU contention); tiny deep-layer widths fall back to
    slice+concat (what jnp.roll lowers to anyway)."""
    n = x.shape[-1]
    s = s % n
    if s == 0:
        return x
    if n % 128 == 0:
        return pltpu.roll(x, shift=n - s, axis=1)     # jnp.roll convention
    return jnp.concatenate([x[:, s:], x[:, :s]], axis=1)


def _shift_bank(x, step, size, p, coord, pad):
    """bank[d][c, pos] = x[c, pos + d*step] for d in [-p, p] with reflect/zero
    handling where coord(pos) + d leaves [0, size).

    coord is the (1, N) int32 coordinate along the shifted sub-axis (w for
    step=1, h for step=W).  Reflected boundary values are other members of the
    uncorrected bank, so each boundary line costs a single jnp.where."""
    base = {d: _shift_flat(x, d * step) for d in range(-p, p + 1)}
    if p == 0:
        return base
    bank = {}
    for d in range(-p, p + 1):
        y = base[d]
        for b in range(abs(d)):
            if d < 0:
                cb, dref = b, -2 * b - d
            else:
                cb, dref = size - 1 - b, 2 * b - d
            if pad == "reflect":
                y = jnp.where(coord == cb, base[dref], y)
            else:                                     # zero padding
                y = jnp.where(coord == cb, jnp.zeros_like(y), y)
        bank[d] = y
    return bank


def _conv_taps(x, hh, ww, k, pad):
    """(k*k*C_pad, H*W) conv taps via O(k^2) lane shifts (no O(N^2) work).

    Tap order is (i, j) row-major and matches the packed weight column layout
    (i*k + j) * cin_pad + cin."""
    p = k // 2
    if p == 0:
        return x
    n = hh * ww
    col = lax.broadcasted_iota(jnp.int32, (1, n), 1)
    if (ww & (ww - 1)) == 0:                          # power-of-two fast decode
        h_idx = jnp.right_shift(col, int(math.log2(ww)))
        w_idx = jnp.bitwise_and(col, ww - 1)
    else:
        h_idx, w_idx = col // ww, col % ww
    cbank = _shift_bank(x, 1, ww, p, w_idx, pad)               # W-direction
    rbank = {dj: _shift_bank(cbank[dj], ww, hh, p, h_idx, pad)  # then H-direction
             for dj in range(-p, p + 1)}
    taps = [rbank[dj][di] for di in range(-p, p + 1) for dj in range(-p, p + 1)]
    return jnp.concatenate(taps, axis=0)


def _bn(x):
    """Training-mode BatchNorm2d (batch=1): per-channel stats over spatial lanes.

    One pass (sum & sum-of-squares), biased variance, fused scale/shift.  The
    fresh module has gamma=1 / beta=0 so the affine is folded away, and the
    preceding conv's bias is dropped because the mean subtraction cancels it.
    Zero-padded channel rows stay exactly zero."""
    inv_n = 1.0 / x.shape[1]
    mean = jnp.sum(x, axis=1, keepdims=True) * inv_n
    ex2 = jnp.sum(x * x, axis=1, keepdims=True) * inv_n
    scale = lax.rsqrt(ex2 - mean * mean + _EPS)
    return x * scale - mean * scale


def _leaky(x):
    return jnp.maximum(x, _SLOPE * x)                 # single VPU max


def _sigmoid(x):
    return 0.5 * jnp.tanh(0.5 * x) + 0.5              # single EUP transcendental


# ---------------------------------------------------------------------------
# The single fused kernel
# ---------------------------------------------------------------------------
def _dip_kernel(*refs, prog):
    nd, nu = len(prog["down"]), len(prog["up"])
    z_ref, w_ref = refs[0], refs[1]
    dec_refs = refs[2:2 + nd]
    ups_refs = refs[2 + nd:2 + nd + nu]
    out_ref = refs[-1]

    def conv(x, hh, ww, c):
        r0, rows, cols = c["w_slice"]
        wmat = w_ref[pl.ds(r0, rows), pl.ds(0, cols)]          # bf16 (Cout_pad, k*k*Cin_pad)
        taps = _conv_taps(x, hh, ww, c["k"], c["pad"])         # f32  (k*k*Cin_pad, H*W)
        return jnp.dot(wmat, taps.astype(jnp.bfloat16),        # one MXU pass, f32 acc
                       preferred_element_type=jnp.float32)

    hh = ww = prog["img_size"]
    x = z_ref[...]                                             # (Cz_pad, H*W), lane-dense

    # ---------------- down path (+ skip convs) ----------------
    skips = []
    for bi, blk in enumerate(prog["down"]):
        y = conv(x, hh, ww, blk["c1"])                         # dense stride-1 conv ...
        y = jnp.dot(y, dec_refs[bi][...],                      # ... exact stride-2 decimation
                    preferred_element_type=jnp.float32)
        hh, ww = blk["out_hw"]
        x = _leaky(_bn(y))
        x = _leaky(_bn(conv(x, hh, ww, blk["c2"])))
        skips.append(None if blk["skip"] is None
                     else _leaky(_bn(conv(x, hh, ww, blk["skip"]))))

    # ---------------- up path ----------------
    rev_skips = list(reversed(skips))
    for ui, blk in enumerate(prog["up"]):
        sk = rev_skips[ui] if ui < len(rev_skips) else None
        if sk is not None:
            x = jnp.concatenate([x, sk], axis=0)               # torch.cat((x, skip), dim=1)
        x = _bn(x)
        x = _leaky(_bn(conv(x, hh, ww, blk["c1"])))
        x = jnp.dot(x, ups_refs[ui][...],                      # nearest 2x upsample (0/1 matrix)
                    preferred_element_type=jnp.float32)
        hh, ww = 2 * hh, 2 * ww
        y = _bn(conv(x, hh, ww, blk["c2"]))
        x = _sigmoid(y) if blk["last"] else _leaky(y)

    out_ref[...] = x


# ---------------------------------------------------------------------------
# Host-side: static operators, weight packing, network program
# ---------------------------------------------------------------------------
def _decimation_matrix(h, w, k, stride):
    p = k // 2
    ho = (h + 2 * p - k) // stride + 1
    wo = (w + 2 * p - k) // stride + 1
    m = np.zeros((h * w, ho * wo), np.float32)
    for r in range(ho):
        for c in range(wo):
            m[(r * stride) * w + c * stride, r * wo + c] = 1.0
    return m, ho, wo


def _upsample_matrix(h, w, f):
    ho, wo = h * f, w * f
    m = np.zeros((h * w, ho * wo), np.float32)
    for r in range(ho):
        for c in range(wo):
            m[(r // f) * w + (c // f), r * wo + c] = 1.0
    return m, ho, wo


def _pack_conv_weight(w_dense, cin_map, cin_pad, cout_pad):
    """(Cout, Cin, k, k) PyTorch layout -> (Cout_pad, k*k*Cin_pad); column index
    (i*k + j) * cin_pad + cin_map[ci].  Explicit mapping so trained PyTorch
    weights could be ported with exactly this permutation."""
    cout, cin, k, _ = w_dense.shape
    buf = np.zeros((cout_pad, k, k, cin_pad), np.float32)
    buf[:cout, :, :, np.asarray(cin_map)] = np.transpose(w_dense, (0, 2, 3, 1))
    return buf.reshape(cout_pad, k * k * cin_pad)


def build_dip(cfg, key):
    size, cz, cnet = cfg["img_size"], cfg["z_channels"], cfg["output_channels"]
    fd, fu = list(cfg["filters_down"]), list(cfg["filters_up"])
    kd, ku = list(cfg["kernels_down"]), list(cfg["kernels_up"])
    fs, ks = list(cfg["filters_skip"]), list(cfg["kernels_skip"])
    assert cfg["upsampling"] == "nearest"  # TODO(synk): bilinear not implemented

    convs = []

    def add_conv(cin, cout, k, pad, cin_map=None, cin_pad=None):
        cin_map = list(range(cin)) if cin_map is None else cin_map
        cin_pad = _rup(cin, 8) if cin_pad is None else cin_pad
        convs.append(dict(cin=cin, cout=cout, k=k, pad=pad, cin_map=cin_map,
                          cin_pad=cin_pad, cout_pad=_rup(cout, 8)))
        return len(convs) - 1

    # ---- network structure ----
    down, samp_down = [], []
    hh = ww = size
    for (ci, co), k in zip(pairwise([cz] + fd), kd):
        c1 = add_conv(ci, co, k, "reflect")
        dmat, ho, wo = _decimation_matrix(hh, ww, k, 2)
        samp_down.append(jnp.asarray(dmat))
        c2 = add_conv(co, co, k, "reflect")
        down.append(dict(c1=c1, c2=c2, out_hw=(ho, wo), skip=None))
        hh, ww = ho, wo
    for bi, (ci, co, k) in enumerate(zip(fd, fs, ks)):
        if co > 0:
            down[bi]["skip"] = add_conv(ci, co, k, "zero")   # Conv2d default zero pad

    up, samp_up = [], []
    up_io = list(pairwise(list(reversed([cnet] + fu))))
    for bi, ((ci, co), k, s) in enumerate(zip(up_io, reversed(ku), reversed(fs))):
        in_pad = _rup(ci, 8)
        if s > 0:
            cmap = list(range(ci)) + [in_pad + j for j in range(s)]
            cpad = in_pad + _rup(s, 8)
        else:
            cmap, cpad = list(range(ci)), in_pad
        c1 = add_conv(ci + s, co, k, "reflect", cin_map=cmap, cin_pad=cpad)
        umat, ho, wo = _upsample_matrix(hh, ww, 2)
        samp_up.append(jnp.asarray(umat))
        c2 = add_conv(co, co, k, "reflect")
        up.append(dict(c1=c1, c2=c2, last=(bi == len(up_io) - 1)))
        hh, ww = ho, wo
    assert (hh, ww) == (size, size)

    # ---- pack all conv weights into ONE bf16 buffer (one DMA, no tiny refs) ----
    row_align = 16                                  # bf16 sublane packing
    r = 0
    for c in convs:
        c["w_slice"] = (r, c["cout_pad"], c["k"] ** 2 * c["cin_pad"])
        r += _rup(c["cout_pad"], row_align)
    kcols = _rup(max(c["w_slice"][2] for c in convs), 128)
    w_all = np.zeros((_rup(r, row_align), kcols), np.float32)
    wkeys = jax.random.split(key, len(convs) + 1)
    for c, wk in zip(convs, wkeys[:-1]):
        # PyTorch Conv2d default init: U(-1/sqrt(fan_in), 1/sqrt(fan_in)).
        # Bias omitted: training-mode BN mean-subtraction cancels it exactly.
        bound = 1.0 / math.sqrt(c["cin"] * c["k"] ** 2)
        wd = np.asarray(jax.random.uniform(
            wk, (c["cout"], c["cin"], c["k"], c["k"]), jnp.float32, -bound, bound))
        r0, _, cols = c["w_slice"]
        w_all[r0:r0 + c["cout_pad"], :cols] = _pack_conv_weight(
            wd, c["cin_map"], c["cin_pad"], c["cout_pad"])
    w_all = jnp.asarray(w_all, dtype=jnp.bfloat16)

    # ---- z buffer: torch.rand(1, Cz, H, W) * z_scale, stored (Cz_pad, H*W) ----
    z = jax.random.uniform(wkeys[-1], (cz, size, size), jnp.float32) * cfg["z_scale"]
    z_pad = jnp.zeros((_rup(cz, 8), size * size), jnp.float32)
    z_pad = z_pad.at[:cz].set(z.reshape(cz, size * size))
    # TODO(synk): if z_noise != 0, add fresh host-side Gaussian noise to the real
    # rows of z_pad before each forward call (z_noise is 0.0 in this config).

    cs = [dict(k=c["k"], pad=c["pad"], w_slice=c["w_slice"]) for c in convs]
    prog = dict(img_size=size, output_channels=cnet, out_rows=_rup(cnet, 8),
                down=[dict(c1=cs[b["c1"]], c2=cs[b["c2"]], out_hw=b["out_hw"],
                           skip=None if b["skip"] is None else cs[b["skip"]])
                      for b in down],
                up=[dict(c1=cs[b["c1"]], c2=cs[b["c2"]], last=b["last"]) for b in up])
    return prog, w_all, list(samp_down) + list(samp_up), z_pad


# ---------------------------------------------------------------------------
# Forward pass wrapper: ONE gridless pallas_call for the whole network
# ---------------------------------------------------------------------------
def dip_forward(w_all, samplers, z_pad, prog):
    vmem = pl.BlockSpec(memory_space=pltpu.MemorySpace.VMEM)
    npix = prog["img_size"] ** 2
    out = pl.pallas_call(
        partial(_dip_kernel, prog=prog),
        out_shape=jax.ShapeDtypeStruct((prog["out_rows"], npix), jnp.float32),
        in_specs=[vmem] * (2 + len(samplers)),
        out_specs=vmem,
    )(z_pad, w_all, *samplers)
    co, s = prog["output_channels"], prog["img_size"]
    return out[:co].reshape(1, co, s, s)              # NCHW (1, C, H, W)


# ---------------------------------------------------------------------------
if __name__ == "__main__":
    cfg = dict(img_size=16, output_channels=3, z_channels=4, z_scale=0.1, z_noise=0.0,
               filters_down=[8, 16], filters_up=[8, 16],
               kernels_down=[3, 3], kernels_up=[3, 3],
               filters_skip=[4, 4], kernels_skip=[1, 1],
               upsampling="nearest")

    key = jax.random.PRNGKey(0)
    prog, w_all, samplers, z_pad = build_dip(cfg, key)

    fwd = jax.jit(lambda w, s, z: dip_forward(w, s, z, prog))
    out = jax.block_until_ready(fwd(w_all, samplers, z_pad))

    assert out.shape == (1, cfg["output_channels"], cfg["img_size"], cfg["img_size"])
    assert bool(jnp.all(jnp.isfinite(out)))
    assert bool(jnp.all((out >= -1e-5) & (out <= 1.0 + 1e-5)))   # sigmoid range
    print("KERNEL_OK")
</pallas_src>

<mosaic_0001>
module attributes {stable_mosaic.version = 11 : i64} {
  func.func @_dip_kernel(%arg0: memref<8x256xf32, #tpu.memory_space<vmem>>, %arg1: memref<160x256xbf16, #tpu.memory_space<vmem>>, %arg2: memref<256x64xf32, #tpu.memory_space<vmem>>, %arg3: memref<64x16xf32, #tpu.memory_space<vmem>>, %arg4: memref<16x64xf32, #tpu.memory_space<vmem>>, %arg5: memref<64x256xf32, #tpu.memory_space<vmem>>, %arg6: memref<8x256xf32, #tpu.memory_space<vmem>>) attributes {dimension_semantics = [], scalar_prefetch = 0 : i64, scratch_operands = 0 : i64, tpu.core_type = #tpu.core_type<tc>} {
    %c0 = arith.constant 0 : index
    %c0_0 = arith.constant 0 : index
    %0 = vector.load %arg0[%c0, %c0_0] : memref<8x256xf32, #tpu.memory_space<vmem>>, vector<8x256xf32>
    %c0_1 = arith.constant 0 : index
    %c0_2 = arith.constant 0 : index
    %1 = vector.load %arg1[%c0_1, %c0_2] : memref<160x256xbf16, #tpu.memory_space<vmem>>, vector<8x72xbf16>
    %2 = tpu.iota {dimensions = array<i32: 1>} : vector<1x256xi32>
    %c4_i32 = arith.constant 4 : i32
    %3 = vector.broadcast %c4_i32 : i32 to vector<1x256xi32>
    %4 = arith.shrsi %2, %3 : vector<1x256xi32>
    %c15_i32 = arith.constant 15 : i32
    %5 = vector.broadcast %c15_i32 : i32 to vector<1x256xi32>
    %6 = arith.andi %2, %5 : vector<1x256xi32>
    %c1_i32 = arith.constant 1 : i32
    %7 = tpu.dynamic_rotate %0 by %c1_i32 dim 1 : vector<8x256xf32>, i32 -> vector<8x256xf32>
    %c255_i32 = arith.constant 255 : i32
    %8 = tpu.dynamic_rotate %0 by %c255_i32 dim 1 : vector<8x256xf32>, i32 -> vector<8x256xf32>
    %c0_i32 = arith.constant 0 : i32
    %9 = vector.broadcast %c0_i32 : i32 to vector<1x256xi32>
    %10 = arith.cmpi eq, %6, %9 : vector<1x256xi32>
    %11 = vector.shape_cast %10 : vector<1x256xi1> to vector<1x256xi1>
    %12 = vector.broadcast %11 : vector<1x256xi1> to vector<8x256xi1>
    %13 = arith.select %12, %8, %7 : vector<8x256xi1>, vector<8x256xf32>
    %c15_i32_3 = arith.constant 15 : i32
    %14 = vector.broadcast %c15_i32_3 : i32 to vector<1x256xi32>
    %15 = arith.cmpi eq, %6, %14 : vector<1x256xi32>
    %16 = vector.shape_cast %15 : vector<1x256xi1> to vector<1x256xi1>
    %17 = vector.broadcast %16 : vector<1x256xi1> to vector<8x256xi1>
    %18 = arith.select %17, %7, %8 : vector<8x256xi1>, vector<8x256xf32>
    %c16_i32 = arith.constant 16 : i32
    %19 = tpu.dynamic_rotate %13 by %c16_i32 dim 1 : vector<8x256xf32>, i32 -> vector<8x256xf32>
    %c240_i32 = arith.constant 240 : i32
    %20 = tpu.dynamic_rotate %13 by %c240_i32 dim 1 : vector<8x256xf32>, i32 -> vector<8x256xf32>
    %c0_i32_4 = arith.constant 0 : i32
    %21 = vector.broadcast %c0_i32_4 : i32 to vector<1x256xi32>
    %22 = arith.cmpi eq, %4, %21 : vector<1x256xi32>
    %23 = vector.shape_cast %22 : vector<1x256xi1> to vector<1x256xi1>
    %24 = vector.broadcast %23 : vector<1x256xi1> to vector<8x256xi1>
    %25 = arith.select %24, %20, %19 : vector<8x256xi1>, vector<8x256xf32>
    %c15_i32_5 = arith.constant 15 : i32
    %26 = vector.broadcast %c15_i32_5 : i32 to vector<1x256xi32>
    %27 = arith.cmpi eq, %4, %26 : vector<1x256xi32>
    %28 = vector.shape_cast %27 : vector<1x256xi1> to vector<1x256xi1>
    %29 = vector.broadcast %28 : vector<1x256xi1> to vector<8x256xi1>
    %30 = arith.select %29, %19, %20 : vector<8x256xi1>, vector<8x256xf32>
    %c16_i32_6 = arith.constant 16 : i32
    %31 = tpu.dynamic_rotate %0 by %c16_i32_6 dim 1 : vector<8x256xf32>, i32 -> vector<8x256xf32>
    %c240_i32_7 = arith.constant 240 : i32
    %32 = tpu.dynamic_rotate %0 by %c240_i32_7 dim 1 : vector<8x256xf32>, i32 -> vector<8x256xf32>
    %c0_i32_8 = arith.constant 0 : i32
    %33 = vector.broadcast %c0_i32_8 : i32 to vector<1x256xi32>
    %34 = arith.cmpi eq, %4, %33 : vector<1x256xi32>
    %35 = vector.shape_cast %34 : vector<1x256xi1> to vector<1x256xi1>
    %36 = vector.broadcast %35 : vector<1x256xi1> to vector<8x256xi1>
    %37 = arith.select %36, %32, %31 : vector<8x256xi1>, vector<8x256xf32>
    %c15_i32_9 = arith.constant 15 : i32
    %38 = vector.broadcast %c15_i32_9 : i32 to vector<1x256xi32>
    %39 = arith.cmpi eq, %4, %38 : vector<1x256xi32>
    %40 = vector.shape_cast %39 : vector<1x256xi1> to vector<1x256xi1>
    %41 = vector.broadcast %40 : vector<1x256xi1> to vector<8x256xi1>
    %42 = arith.select %41, %31, %32 : vector<8x256xi1>, vector<8x256xf32>
    %c16_i32_10 = arith.constant 16 : i32
    %43 = tpu.dynamic_rotate %18 by %c16_i32_10 dim 1 : vector<8x256xf32>, i32 -> vector<8x256xf32>
    %c240_i32_11 = arith.constant 240 : i32
    %44 = tpu.dynamic_rotate %18 by %c240_i32_11 dim 1 : vector<8x256xf32>, i32 -> vector<8x256xf32>
    %c0_i32_12 = arith.constant 0 : i32
    %45 = vector.broadcast %c0_i32_12 : i32 to vector<1x256xi32>
    %46 = arith.cmpi eq, %4, %45 : vector<1x256xi32>
    %47 = vector.shape_cast %46 : vector<1x256xi1> to vector<1x256xi1>
    %48 = vector.broadcast %47 : vector<1x256xi1> to vector<8x256xi1>
    %49 = arith.select %48, %44, %43 : vector<8x256xi1>, vector<8x256xf32>
    %c15_i32_13 = arith.constant 15 : i32
    %50 = vector.broadcast %c15_i32_13 : i32 to vector<1x256xi32>
    %51 = arith.cmpi eq, %4, %50 : vector<1x256xi32>
    %52 = vector.shape_cast %51 : vector<1x256xi1> to vector<1x256xi1>
    %53 = vector.broadcast %52 : vector<1x256xi1> to vector<8x256xi1>
    %54 = arith.select %53, %43, %44 : vector<8x256xi1>, vector<8x256xf32>
    %55 = tpu.concatenate %25, %37, %49, %13, %0, %18, %30, %42, %54 in 0 : vector<8x256xf32>, vector<8x256xf32>, vector<8x256xf32>, vector<8x256xf32>, vector<8x256xf32>, vector<8x256xf32>, vector<8x256xf32>, vector<8x256xf32>, vector<8x256xf32> -> vector<72x256xf32>
    %56 = arith.truncf %55 : vector<72x256xf32> to vector<72x256xbf16>
    %cst = arith.constant dense<0.000000e+00> : vector<8x256xf32>
    %57 = tpu.matmul %1, %56, %cst {dimension_numbers = #tpu.dot_dimension_numbers<[1], [0], [0], [1], [0, 0, 1, 1], [], []>} : vector<8x72xbf16>, vector<72x256xbf16>, vector<8x256xf32> -> vector<8x256xf32>
    %c0_14 = arith.constant 0 : index
    %c0_15 = arith.constant 0 : index
    %58 = vector.load %arg2[%c0_14, %c0_15] : memref<256x64xf32, #tpu.memory_space<vmem>>, vector<256x64xf32>
    %cst_16 = arith.constant dense<0.000000e+00> : vector<8x64xf32>
    %59 = tpu.matmul %57, %58, %cst_16 {dimension_numbers = #tpu.dot_dimension_numbers<[1], [0], [0], [1], [0, 0, 1, 1], [], []>} : vector<8x256xf32>, vector<256x64xf32>, vector<8x64xf32> -> vector<8x64xf32>
    %cst_17 = arith.constant dense<0.000000e+00> : vector<8xf32>
    %60 = vector.multi_reduction <add>, %59, %cst_17 [1] : vector<8x64xf32> to vector<8xf32>
    %61 = vector.shape_cast %60 : vector<8xf32> to vector<8x1xf32>
    %cst_18 = arith.constant 1.562500e-02 : f32
    %62 = vector.broadcast %cst_18 : f32 to vector<8x1xf32>
    %63 = arith.mulf %61, %62 : vector<8x1xf32>
    %64 = arith.mulf %59, %59 : vector<8x64xf32>
    %cst_19 = arith.constant dense<0.000000e+00> : vector<8xf32>
    %65 = vector.multi_reduction <add>, %64, %cst_19 [1] : vector<8x64xf32> to vector<8xf32>
    %66 = vector.shape_cast %65 : vector<8xf32> to vector<8x1xf32>
    %cst_20 = arith.constant 1.562500e-02 : f32
    %67 = vector.broadcast %cst_20 : f32 to vector<8x1xf32>
    %68 = arith.mulf %66, %67 : vector<8x1xf32>
    %69 = arith.mulf %63, %63 : vector<8x1xf32>
    %70 = arith.subf %68, %69 : vector<8x1xf32>
    %cst_21 = arith.constant 9.99999974E-6 : f32
    %71 = vector.broadcast %cst_21 : f32 to vector<8x1xf32>
    %72 = arith.addf %70, %71 : vector<8x1xf32>
    %73 = math.rsqrt %72 : vector<8x1xf32>
    %74 = vector.broadcast %73 : vector<8x1xf32> to vector<8x64xf32>
    %75 = arith.mulf %59, %74 : vector<8x64xf32>
    %76 = arith.mulf %63, %73 : vector<8x1xf32>
    %77 = vector.broadcast %76 : vector<8x1xf32> to vector<8x64xf32>
    %78 = arith.subf %75, %77 : vector<8x64xf32>
    %cst_22 = arith.constant 0.00999999977 : f32
    %79 = vector.broadcast %cst_22 : f32 to vector<8x64xf32>
    %80 = arith.mulf %79, %78 : vector<8x64xf32>
    %81 = arith.maximumf %78, %80 : vector<8x64xf32>
    %c16 = arith.constant 16 : index
    %c0_23 = arith.constant 0 : index
    %82 = vector.load %arg1[%c16, %c0_23] : memref<160x256xbf16, #tpu.memory_space<vmem>>, vector<8x72xbf16>
    %83 = tpu.iota {dimensions = array<i32: 1>} : vector<1x64xi32>
    %c3_i32 = arith.constant 3 : i32
    %84 = vector.broadcast %c3_i32 : i32 to vector<1x64xi32>
    %85 = arith.shrsi %83, %84 : vector<1x64xi32>
    %c7_i32 = arith.constant 7 : i32
    %86 = vector.broadcast %c7_i32 : i32 to vector<1x64xi32>
    %87 = arith.andi %83, %86 : vector<1x64xi32>
    %88 = vector.extract_strided_slice %81 {offsets = [0, 63], sizes = [8, 1], strides = [1, 1]} : vector<8x64xf32> to vector<8x1xf32>
    %89 = vector.extract_strided_slice %81 {offsets = [0, 0], sizes = [8, 63], strides = [1, 1]} : vector<8x64xf32> to vector<8x63xf32>
    %90 = tpu.concatenate %88, %89 in 1 : vector<8x1xf32>, vector<8x63xf32> -> vector<8x64xf32>
    %91 = vector.extract_strided_slice %81 {offsets = [0, 1], sizes = [8, 63], strides = [1, 1]} : vector<8x64xf32> to vector<8x63xf32>
    %92 = vector.extract_strided_slice %81 {offsets = [0, 0], sizes = [8, 1], strides = [1, 1]} : vector<8x64xf32> to vector<8x1xf32>
    %93 = tpu.concatenate %91, %92 in 1 : vector<8x63xf32>, vector<8x1xf32> -> vector<8x64xf32>
    %c0_i32_24 = arith.constant 0 : i32
    %94 = vector.broadcast %c0_i32_24 : i32 to vector<1x64xi32>
    %95 = arith.cmpi eq, %87, %94 : vector<1x64xi32>
    %96 = vector.shape_cast %95 : vector<1x64xi1> to vector<1x64xi1>
    %97 = vector.broadcast %96 : vector<1x64xi1> to vector<8x64xi1>
    %98 = arith.select %97, %93, %90 : vector<8x64xi1>, vector<8x64xf32>
    %c7_i32_25 = arith.constant 7 : i32
    %99 = vector.broadcast %c7_i32_25 : i32 to vector<1x64xi32>
    %100 = arith.cmpi eq, %87, %99 : vector<1x64xi32>
    %101 = vector.shape_cast %100 : vector<1x64xi1> to vector<1x64xi1>
    %102 = vector.broadcast %101 : vector<1x64xi1> to vector<8x64xi1>
    %103 = arith.select %102, %90, %93 : vector<8x64xi1>, vector<8x64xf32>
    %104 = vector.extract_strided_slice %98 {offsets = [0, 56], sizes = [8, 8], strides = [1, 1]} : vector<8x64xf32> to vector<8x8xf32>
    %105 = vector.extract_strided_slice %98 {offsets = [0, 0], sizes = [8, 56], strides = [1, 1]} : vector<8x64xf32> to vector<8x56xf32>
    %106 = tpu.concatenate %104, %105 in 1 : vector<8x8xf32>, vector<8x56xf32> -> vector<8x64xf32>
    %107 = vector.extract_strided_slice %98 {offsets = [0, 8], sizes = [8, 56], strides = [1, 1]} : vector<8x64xf32> to vector<8x56xf32>
    %108 = vector.extract_strided_slice %98 {offsets = [0, 0], sizes = [8, 8], strides = [1, 1]} : vector<8x64xf32> to vector<8x8xf32>
    %109 = tpu.concatenate %107, %108 in 1 : vector<8x56xf32>, vector<8x8xf32> -> vector<8x64xf32>
    %c0_i32_26 = arith.constant 0 : i32
    %110 = vector.broadcast %c0_i32_26 : i32 to vector<1x64xi32>
    %111 = arith.cmpi eq, %85, %110 : vector<1x64xi32>
    %112 = vector.shape_cast %111 : vector<1x64xi1> to vector<1x64xi1>
    %113 = vector.broadcast %112 : vector<1x64xi1> to vector<8x64xi1>
    %114 = arith.select %113, %109, %106 : vector<8x64xi1>, vector<8x64xf32>
    %c7_i32_27 = arith.constant 7 : i32
    %115 = vector.broadcast %c7_i32_27 : i32 to vector<1x64xi32>
    %116 = arith.cmpi eq, %85, %115 : vector<1x64xi32>
    %117 = vector.shape_cast %116 : vector<1x64xi1> to vector<1x64xi1>
    %118 = vector.broadcast %117 : vector<1x64xi1> to vector<8x64xi1>
    %119 = arith.select %118, %106, %109 : vector<8x64xi1>, vector<8x64xf32>
    %120 = vector.extract_strided_slice %81 {offsets = [0, 56], sizes = [8, 8], strides = [1, 1]} : vector<8x64xf32> to vector<8x8xf32>
    %121 = vector.extract_strided_slice %81 {offsets = [0, 0], sizes = [8, 56], strides = [1, 1]} : vector<8x64xf32> to vector<8x56xf32>
    %122 = tpu.concatenate %120, %121 in 1 : vector<8x8xf32>, vector<8x56xf32> -> vector<8x64xf32>
    %123 = vector.extract_strided_slice %81 {offsets = [0, 8], sizes = [8, 56], strides = [1, 1]} : vector<8x64xf32> to vector<8x56xf32>
    %124 = vector.extract_strided_slice %81 {offsets = [0, 0], sizes = [8, 8], strides = [1, 1]} : vector<8x64xf32> to vector<8x8xf32>
    %125 = tpu.concatenate %123, %124 in 1 : vector<8x56xf32>, vector<8x8xf32> -> vector<8x64xf32>
    %c0_i32_28 = arith.constant 0 : i32
    %126 = vector.broadcast %c0_i32_28 : i32 to vector<1x64xi32>
    %127 = arith.cmpi eq, %85, %126 : vector<1x64xi32>
    %128 = vector.shape_cast %127 : vector<1x64xi1> to vector<1x64xi1>
    %129 = vector.broadcast %128 : vector<1x64xi1> to vector<8x64xi1>
    %130 = arith.select %129, %125, %122 : vector<8x64xi1>, vector<8x64xf32>
    %c7_i32_29 = arith.constant 7 : i32
    %131 = vector.broadcast %c7_i32_29 : i32 to vector<1x64xi32>
    %132 = arith.cmpi eq, %85, %131 : vector<1x64xi32>
    %133 = vector.shape_cast %132 : vector<1x64xi1> to vector<1x64xi1>
    %134 = vector.broadcast %133 : vector<1x64xi1> to vector<8x64xi1>
    %135 = arith.select %134, %122, %125 : vector<8x64xi1>, vector<8x64xf32>
    %136 = vector.extract_strided_slice %103 {offsets = [0, 56], sizes = [8, 8], strides = [1, 1]} : vector<8x64xf32> to vector<8x8xf32>
    %137 = vector.extract_strided_slice %103 {offsets = [0, 0], sizes = [8, 56], strides = [1, 1]} : vector<8x64xf32> to vector<8x56xf32>
    %138 = tpu.concatenate %136, %137 in 1 : vector<8x8xf32>, vector<8x56xf32> -> vector<8x64xf32>
    %139 = vector.extract_strided_slice %103 {offsets = [0, 8], sizes = [8, 56], strides = [1, 1]} : vector<8x64xf32> to vector<8x56xf32>
    %140 = vector.extract_strided_slice %103 {offsets = [0, 0], sizes = [8, 8], strides = [1, 1]} : vector<8x64xf32> to vector<8x8xf32>
    %141 = tpu.concatenate %139, %140 in 1 : vector<8x56xf32>, vector<8x8xf32> -> vector<8x64xf32>
    %c0_i32_30 = arith.constant 0 : i32
    %142 = vector.broadcast %c0_i32_30 : i32 to vector<1x64xi32>
    %143 = arith.cmpi eq, %85, %142 : vector<1x64xi32>
    %144 = vector.shape_cast %143 : vector<1x64xi1> to vector<1x64xi1>
    %145 = vector.broadcast %144 : vector<1x64xi1> to vector<8x64xi1>
    %146 = arith.select %145, %141, %138 : vector<8x64xi1>, vector<8x64xf32>
    %c7_i32_31 = arith.constant 7 : i32
    %147 = vector.broadcast %c7_i32_31 : i32 to vector<1x64xi32>
    %148 = arith.cmpi eq, %85, %147 : vector<1x64xi32>
    %149 = vector.shape_cast %148 : vector<1x64xi1> to vector<1x64xi1>
    %150 = vector.broadcast %149 : vector<1x64xi1> to vector<8x64xi1>
    %151 = arith.select %150, %138, %141 : vector<8x64xi1>, vector<8x64xf32>
    %152 = tpu.concatenate %114, %130, %146, %98, %81, %103, %119, %135, %151 in 0 : vector<8x64xf32>, vector<8x64xf32>, vector<8x64xf32>, vector<8x64xf32>, vector<8x64xf32>, vector<8x64xf32>, vector<8x64xf32>, vector<8x64xf32>, vector<8x64xf32> -> vector<72x64xf32>
    %153 = arith.truncf %152 : vector<72x64xf32> to vector<72x64xbf16>
    %cst_32 = arith.constant dense<0.000000e+00> : vector<8x64xf32>
    %154 = tpu.matmul %82, %153, %cst_32 {dimension_numbers = #tpu.dot_dimension_numbers<[1], [0], [0], [1], [0, 0, 1, 1], [], []>} : vector<8x72xbf16>, vector<72x64xbf16>, vector<8x64xf32> -> vector<8x64xf32>
    %cst_33 = arith.constant dense<0.000000e+00> : vector<8xf32>
    %155 = vector.multi_reduction <add>, %154, %cst_33 [1] : vector<8x64xf32> to vector<8xf32>
    %156 = vector.shape_cast %155 : vector<8xf32> to vector<8x1xf32>
    %cst_34 = arith.constant 1.562500e-02 : f32
    %157 = vector.broadcast %cst_34 : f32 to vector<8x1xf32>
    %158 = arith.mulf %156, %157 : vector<8x1xf32>
    %159 = arith.mulf %154, %154 : vector<8x64xf32>
    %cst_35 = arith.constant dense<0.000000e+00> : vector<8xf32>
    %160 = vector.multi_reduction <add>, %159, %cst_35 [1] : vector<8x64xf32> to vector<8xf32>
    %161 = vector.shape_cast %160 : vector<8xf32> to vector<8x1xf32>
    %cst_36 = arith.constant 1.562500e-02 : f32
    %162 = vector.broadcast %cst_36 : f32 to vector<8x1xf32>
    %163 = arith.mulf %161, %162 : vector<8x1xf32>
    %164 = arith.mulf %158, %158 : vector<8x1xf32>
    %165 = arith.subf %163, %164 : vector<8x1xf32>
    %cst_37 = arith.constant 9.99999974E-6 : f32
    %166 = vector.broadcast %cst_37 : f32 to vector<8x1xf32>
    %167 = arith.addf %165, %166 : vector<8x1xf32>
    %168 = math.rsqrt %167 : vector<8x1xf32>
    %169 = vector.broadcast %168 : vector<8x1xf32> to vector<8x64xf32>
    %170 = arith.mulf %154, %169 : vector<8x64xf32>
    %171 = arith.mulf %158, %168 : vector<8x1xf32>
    %172 = vector.broadcast %171 : vector<8x1xf32> to vector<8x64xf32>
    %173 = arith.subf %170, %172 : vector<8x64xf32>
    %cst_38 = arith.constant 0.00999999977 : f32
    %174 = vector.broadcast %cst_38 : f32 to vector<8x64xf32>
    %175 = arith.mulf %174, %173 : vector<8x64xf32>
    %176 = arith.maximumf %173, %175 : vector<8x64xf32>
    %c64 = arith.constant 64 : index
    %c0_39 = arith.constant 0 : index
    %177 = vector.load %arg1[%c64, %c0_39] : memref<160x256xbf16, #tpu.memory_space<vmem>>, vector<8x8xbf16>
    %178 = arith.truncf %176 : vector<8x64xf32> to vector<8x64xbf16>
    %cst_40 = arith.constant dense<0.000000e+00> : vector<8x64xf32>
    %179 = tpu.matmul %177, %178, %cst_40 {dimension_numbers = #tpu.dot_dimension_numbers<[1], [0], [0], [1], [0, 0, 1, 1], [], []>} : vector<8x8xbf16>, vector<8x64xbf16>, vector<8x64xf32> -> vector<8x64xf32>
    %cst_41 = arith.constant dense<0.000000e+00> : vector<8xf32>
    %180 = vector.multi_reduction <add>, %179, %cst_41 [1] : vector<8x64xf32> to vector<8xf32>
    %181 = vector.shape_cast %180 : vector<8xf32> to vector<8x1xf32>
    %cst_42 = arith.constant 1.562500e-02 : f32
    %182 = vector.broadcast %cst_42 : f32 to vector<8x1xf32>
    %183 = arith.mulf %181, %182 : vector<8x1xf32>
    %184 = arith.mulf %179, %179 : vector<8x64xf32>
    %cst_43 = arith.constant dense<0.000000e+00> : vector<8xf32>
    %185 = vector.multi_reduction <add>, %184, %cst_43 [1] : vector<8x64xf32> to vector<8xf32>
    %186 = vector.shape_cast %185 : vector<8xf32> to vector<8x1xf32>
    %cst_44 = arith.constant 1.562500e-02 : f32
    %187 = vector.broadcast %cst_44 : f32 to vector<8x1xf32>
    %188 = arith.mulf %186, %187 : vector<8x1xf32>
    %189 = arith.mulf %183, %183 : vector<8x1xf32>
    %190 = arith.subf %188, %189 : vector<8x1xf32>
    %cst_45 = arith.constant 9.99999974E-6 : f32
    %191 = vector.broadcast %cst_45 : f32 to vector<8x1xf32>
    %192 = arith.addf %190, %191 : vector<8x1xf32>
    %193 = math.rsqrt %192 : vector<8x1xf32>
    %194 = vector.broadcast %193 : vector<8x1xf32> to vector<8x64xf32>
    %195 = arith.mulf %179, %194 : vector<8x64xf32>
    %196 = arith.mulf %183, %193 : vector<8x1xf32>
    %197 = vector.broadcast %196 : vector<8x1xf32> to vector<8x64xf32>
    %198 = arith.subf %195, %197 : vector<8x64xf32>
    %cst_46 = arith.constant 0.00999999977 : f32
    %199 = vector.broadcast %cst_46 : f32 to vector<8x64xf32>
    %200 = arith.mulf %199, %198 : vector<8x64xf32>
    %201 = arith.maximumf %198, %200 : vector<8x64xf32>
    %c32 = arith.constant 32 : index
    %c0_47 = arith.constant 0 : index
    %202 = vector.load %arg1[%c32, %c0_47] : memref<160x256xbf16, #tpu.memory_space<vmem>>, vector<16x72xbf16>
    %203 = tpu.iota {dimensions = array<i32: 1>} : vector<1x64xi32>
    %c3_i32_48 = arith.constant 3 : i32
    %204 = vector.broadcast %c3_i32_48 : i32 to vector<1x64xi32>
    %205 = arith.shrsi %203, %204 : vector<1x64xi32>
    %c7_i32_49 = arith.constant 7 : i32
    %206 = vector.broadcast %c7_i32_49 : i32 to vector<1x64xi32>
    %207 = arith.andi %203, %206 : vector<1x64xi32>
    %208 = vector.extract_strided_slice %176 {offsets = [0, 63], sizes = [8, 1], strides = [1, 1]} : vector<8x64xf32> to vector<8x1xf32>
    %209 = vector.extract_strided_slice %176 {offsets = [0, 0], sizes = [8, 63], strides = [1, 1]} : vector<8x64xf32> to vector<8x63xf32>
    %210 = tpu.concatenate %208, %209 in 1 : vector<8x1xf32>, vector<8x63xf32> -> vector<8x64xf32>
    %211 = vector.extract_strided_slice %176 {offsets = [0, 1], sizes = [8, 63], strides = [1, 1]} : vector<8x64xf32> to vector<8x63xf32>
    %212 = vector.extract_strided_slice %176 {offsets = [0, 0], sizes = [8, 1], strides = [1, 1]} : vector<8x64xf32> to vector<8x1xf32>
    %213 = tpu.concatenate %211, %212 in 1 : vector<8x63xf32>, vector<8x1xf32> -> vector<8x64xf32>
    %c0_i32_50 = arith.constant 0 : i32
    %214 = vector.broadcast %c0_i32_50 : i32 to vector<1x64xi32>
    %215 = arith.cmpi eq, %207, %214 : vector<1x64xi32>
    %216 = vector.shape_cast %215 : vector<1x64xi1> to vector<1x64xi1>
    %217 = vector.broadcast %216 : vector<1x64xi1> to vector<8x64xi1>
    %218 = arith.select %217, %213, %210 : vector<8x64xi1>, vector<8x64xf32>
    %c7_i32_51 = arith.constant 7 : i32
    %219 = vector.broadcast %c7_i32_51 : i32 to vector<1x64xi32>
    %220 = arith.cmpi eq, %207, %219 : vector<1x64xi32>
    %221 = vector.shape_cast %220 : vector<1x64xi1> to vector<1x64xi1>
    %222 = vector.broadcast %221 : vector<1x64xi1> to vector<8x64xi1>
    %223 = arith.select %222, %210, %213 : vector<8x64xi1>, vector<8x64xf32>
    %224 = vector.extract_strided_slice %218 {offsets = [0, 56], sizes = [8, 8], strides = [1, 1]} : vector<8x64xf32> to vector<8x8xf32>
    %225 = vector.extract_strided_slice %218 {offsets = [0, 0], sizes = [8, 56], strides = [1, 1]} : vector<8x64xf32> to vector<8x56xf32>
    %226 = tpu.concatenate %224, %225 in 1 : vector<8x8xf32>, vector<8x56xf32> -> vector<8x64xf32>
    %227 = vector.extract_strided_slice %218 {offsets = [0, 8], sizes = [8, 56], strides = [1, 1]} : vector<8x64xf32> to vector<8x56xf32>
    %228 = vector.extract_strided_slice %218 {offsets = [0, 0], sizes = [8, 8], strides = [1, 1]} : vector<8x64xf32> to vector<8x8xf32>
    %229 = tpu.concatenate %227, %228 in 1 : vector<8x56xf32>, vector<8x8xf32> -> vector<8x64xf32>
    %c0_i32_52 = arith.constant 0 : i32
    %230 = vector.broadcast %c0_i32_52 : i32 to vector<1x64xi32>
    %231 = arith.cmpi eq, %205, %230 : vector<1x64xi32>
    %232 = vector.shape_cast %231 : vector<1x64xi1> to vector<1x64xi1>
    %233 = vector.broadcast %232 : vector<1x64xi1> to vector<8x64xi1>
    %234 = arith.select %233, %229, %226 : vector<8x64xi1>, vector<8x64xf32>
    %c7_i32_53 = arith.constant 7 : i32
    %235 = vector.broadcast %c7_i32_53 : i32 to vector<1x64xi32>
    %236 = arith.cmpi eq, %205, %235 : vector<1x64xi32>
    %237 = vector.shape_cast %236 : vector<1x64xi1> to vector<1x64xi1>
    %238 = vector.broadcast %237 : vector<1x64xi1> to vector<8x64xi1>
    %239 = arith.select %238, %226, %229 : vector<8x64xi1>, vector<8x64xf32>
    %240 = vector.extract_strided_slice %176 {offsets = [0, 56], sizes = [8, 8], strides = [1, 1]} : vector<8x64xf32> to vector<8x8xf32>
    %241 = vector.extract_strided_slice %176 {offsets = [0, 0], sizes = [8, 56], strides = [1, 1]} : vector<8x64xf32> to vector<8x56xf32>
    %242 = tpu.concatenate %240, %241 in 1 : vector<8x8xf32>, vector<8x56xf32> -> vector<8x64xf32>
    %243 = vector.extract_strided_slice %176 {offsets = [0, 8], sizes = [8, 56], strides = [1, 1]} : vector<8x64xf32> to vector<8x56xf32>
    %244 = vector.extract_strided_slice %176 {offsets = [0, 0], sizes = [8, 8], strides = [1, 1]} : vector<8x64xf32> to vector<8x8xf32>
    %245 = tpu.concatenate %243, %244 in 1 : vector<8x56xf32>, vector<8x8xf32> -> vector<8x64xf32>
    %c0_i32_54 = arith.constant 0 : i32
    %246 = vector.broadcast %c0_i32_54 : i32 to vector<1x64xi32>
    %247 = arith.cmpi eq, %205, %246 : vector<1x64xi32>
    %248 = vector.shape_cast %247 : vector<1x64xi1> to vector<1x64xi1>
    %249 = vector.broadcast %248 : vector<1x64xi1> to vector<8x64xi1>
    %250 = arith.select %249, %245, %242 : vector<8x64xi1>, vector<8x64xf32>
    %c7_i32_55 = arith.constant 7 : i32
    %251 = vector.broadcast %c7_i32_55 : i32 to vector<1x64xi32>
    %252 = arith.cmpi eq, %205, %251 : vector<1x64xi32>
    %253 = vector.shape_cast %252 : vector<1x64xi1> to vector<1x64xi1>
    %254 = vector.broadcast %253 : vector<1x64xi1> to vector<8x64xi1>
    %255 = arith.select %254, %242, %245 : vector<8x64xi1>, vector<8x64xf32>
    %256 = vector.extract_strided_slice %223 {offsets = [0, 56], sizes = [8, 8], strides = [1, 1]} : vector<8x64xf32> to vector<8x8xf32>
    %257 = vector.extract_strided_slice %223 {offsets = [0, 0], sizes = [8, 56], strides = [1, 1]} : vector<8x64xf32> to vector<8x56xf32>
    %258 = tpu.concatenate %256, %257 in 1 : vector<8x8xf32>, vector<8x56xf32> -> vector<8x64xf32>
    %259 = vector.extract_strided_slice %223 {offsets = [0, 8], sizes = [8, 56], strides = [1, 1]} : vector<8x64xf32> to vector<8x56xf32>
    %260 = vector.extract_strided_slice %223 {offsets = [0, 0], sizes = [8, 8], strides = [1, 1]} : vector<8x64xf32> to vector<8x8xf32>
    %261 = tpu.concatenate %259, %260 in 1 : vector<8x56xf32>, vector<8x8xf32> -> vector<8x64xf32>
    %c0_i32_56 = arith.constant 0 : i32
    %262 = vector.broadcast %c0_i32_56 : i32 to vector<1x64xi32>
    %263 = arith.cmpi eq, %205, %262 : vector<1x64xi32>
    %264 = vector.shape_cast %263 : vector<1x64xi1> to vector<1x64xi1>
    %265 = vector.broadcast %264 : vector<1x64xi1> to vector<8x64xi1>
    %266 = arith.select %265, %261, %258 : vector<8x64xi1>, vector<8x64xf32>
    %c7_i32_57 = arith.constant 7 : i32
    %267 = vector.broadcast %c7_i32_57 : i32 to vector<1x64xi32>
    %268 = arith.cmpi eq, %205, %267 : vector<1x64xi32>
    %269 = vector.shape_cast %268 : vector<1x64xi1> to vector<1x64xi1>
    %270 = vector.broadcast %269 : vector<1x64xi1> to vector<8x64xi1>
    %271 = arith.select %270, %258, %261 : vector<8x64xi1>, vector<8x64xf32>
    %272 = tpu.concatenate %234, %250, %266, %218, %176, %223, %239, %255, %271 in 0 : vector<8x64xf32>, vector<8x64xf32>, vector<8x64xf32>, vector<8x64xf32>, vector<8x64xf32>, vector<8x64xf32>, vector<8x64xf32>, vector<8x64xf32>, vector<8x64xf32> -> vector<72x64xf32>
    %273 = arith.truncf %272 : vector<72x64xf32> to vector<72x64xbf16>
    %cst_58 = arith.constant dense<0.000000e+00> : vector<16x64xf32>
    %274 = tpu.matmul %202, %273, %cst_58 {dimension_numbers = #tpu.dot_dimension_numbers<[1], [0], [0], [1], [0, 0, 1, 1], [], []>} : vector<16x72xbf16>, vector<72x64xbf16>, vector<16x64xf32> -> vector<16x64xf32>
    %c0_59 = arith.constant 0 : index
    %c0_60 = arith.constant 0 : index
    %275 = vector.load %arg3[%c0_59, %c0_60] : memref<64x16xf32, #tpu.memory_space<vmem>>, vector<64x16xf32>
    %cst_61 = arith.constant dense<0.000000e+00> : vector<16x16xf32>
    %276 = tpu.matmul %274, %275, %cst_61 {dimension_numbers = #tpu.dot_dimension_numbers<[1], [0], [0], [1], [0, 0, 1, 1], [], []>} : vector<16x64xf32>, vector<64x16xf32>, vector<16x16xf32> -> vector<16x16xf32>
    %cst_62 = arith.constant dense<0.000000e+00> : vector<16xf32>
    %277 = vector.multi_reduction <add>, %276, %cst_62 [1] : vector<16x16xf32> to vector<16xf32>
    %278 = vector.shape_cast %277 : vector<16xf32> to vector<16x1xf32>
    %cst_63 = arith.constant 6.250000e-02 : f32
    %279 = vector.broadcast %cst_63 : f32 to vector<16x1xf32>
    %280 = arith.mulf %278, %279 : vector<16x1xf32>
    %281 = arith.mulf %276, %276 : vector<16x16xf32>
    %cst_64 = arith.constant dense<0.000000e+00> : vector<16xf32>
    %282 = vector.multi_reduction <add>, %281, %cst_64 [1] : vector<16x16xf32> to vector<16xf32>
    %283 = vector.shape_cast %282 : vector<16xf32> to vector<16x1xf32>
    %cst_65 = arith.constant 6.250000e-02 : f32
    %284 = vector.broadcast %cst_65 : f32 to vector<16x1xf32>
    %285 = arith.mulf %283, %284 : vector<16x1xf32>
    %286 = arith.mulf %280, %280 : vector<16x1xf32>
    %287 = arith.subf %285, %286 : vector<16x1xf32>
    %cst_66 = arith.constant 9.99999974E-6 : f32
    %288 = vector.broadcast %cst_66 : f32 to vector<16x1xf32>
    %289 = arith.addf %287, %288 : vector<16x1xf32>
    %290 = math.rsqrt %289 : vector<16x1xf32>
    %291 = vector.broadcast %290 : vector<16x1xf32> to vector<16x16xf32>
    %292 = arith.mulf %276, %291 : vector<16x16xf32>
    %293 = arith.mulf %280, %290 : vector<16x1xf32>
    %294 = vector.broadcast %293 : vector<16x1xf32> to vector<16x16xf32>
    %295 = arith.subf %292, %294 : vector<16x16xf32>
    %cst_67 = arith.constant 0.00999999977 : f32
    %296 = vector.broadcast %cst_67 : f32 to vector<16x16xf32>
    %297 = arith.mulf %296, %295 : vector<16x16xf32>
    %298 = arith.maximumf %295, %297 : vector<16x16xf32>
    %c48 = arith.constant 48 : index
    %c0_68 = arith.constant 0 : index
    %299 = vector.load %arg1[%c48, %c0_68] : memref<160x256xbf16, #tpu.memory_space<vmem>>, vector<16x144xbf16>
    %300 = tpu.iota {dimensions = array<i32: 1>} : vector<1x16xi32>
    %c2_i32 = arith.constant 2 : i32
    %301 = vector.broadcast %c2_i32 : i32 to vector<1x16xi32>
    %302 = arith.shrsi %300, %301 : vector<1x16xi32>
    %c3_i32_69 = arith.constant 3 : i32
    %303 = vector.broadcast %c3_i32_69 : i32 to vector<1x16xi32>
    %304 = arith.andi %300, %303 : vector<1x16xi32>
    %305 = vector.extract_strided_slice %298 {offsets = [0, 15], sizes = [16, 1], strides = [1, 1]} : vector<16x16xf32> to vector<16x1xf32>
    %306 = vector.extract_strided_slice %298 {offsets = [0, 0], sizes = [16, 15], strides = [1, 1]} : vector<16x16xf32> to vector<16x15xf32>
    %307 = tpu.concatenate %305, %306 in 1 : vector<16x1xf32>, vector<16x15xf32> -> vector<16x16xf32>
    %308 = vector.extract_strided_slice %298 {offsets = [0, 1], sizes = [16, 15], strides = [1, 1]} : vector<16x16xf32> to vector<16x15xf32>
    %309 = vector.extract_strided_slice %298 {offsets = [0, 0], sizes = [16, 1], strides = [1, 1]} : vector<16x16xf32> to vector<16x1xf32>
    %310 = tpu.concatenate %308, %309 in 1 : vector<16x15xf32>, vector<16x1xf32> -> vector<16x16xf32>
    %c0_i32_70 = arith.constant 0 : i32
    %311 = vector.broadcast %c0_i32_70 : i32 to vector<1x16xi32>
    %312 = arith.cmpi eq, %304, %311 : vector<1x16xi32>
    %313 = vector.shape_cast %312 : vector<1x16xi1> to vector<1x16xi1>
    %314 = vector.broadcast %313 : vector<1x16xi1> to vector<16x16xi1>
    %315 = arith.select %314, %310, %307 : vector<16x16xi1>, vector<16x16xf32>
    %c3_i32_71 = arith.constant 3 : i32
    %316 = vector.broadcast %c3_i32_71 : i32 to vector<1x16xi32>
    %317 = arith.cmpi eq, %304, %316 : vector<1x16xi32>
    %318 = vector.shape_cast %317 : vector<1x16xi1> to vector<1x16xi1>
    %319 = vector.broadcast %318 : vector<1x16xi1> to vector<16x16xi1>
    %320 = arith.select %319, %307, %310 : vector<16x16xi1>, vector<16x16xf32>
    %321 = vector.extract_strided_slice %315 {offsets = [0, 12], sizes = [16, 4], strides = [1, 1]} : vector<16x16xf32> to vector<16x4xf32>
    %322 = vector.extract_strided_slice %315 {offsets = [0, 0], sizes = [16, 12], strides = [1, 1]} : vector<16x16xf32> to vector<16x12xf32>
    %323 = tpu.concatenate %321, %322 in 1 : vector<16x4xf32>, vector<16x12xf32> -> vector<16x16xf32>
    %324 = vector.extract_strided_slice %315 {offsets = [0, 4], sizes = [16, 12], strides = [1, 1]} : vector<16x16xf32> to vector<16x12xf32>
    %325 = vector.extract_strided_slice %315 {offsets = [0, 0], sizes = [16, 4], strides = [1, 1]} : vector<16x16xf32> to vector<16x4xf32>
    %326 = tpu.concatenate %324, %325 in 1 : vector<16x12xf32>, vector<16x4xf32> -> vector<16x16xf32>
    %c0_i32_72 = arith.constant 0 : i32
    %327 = vector.broadcast %c0_i32_72 : i32 to vector<1x16xi32>
    %328 = arith.cmpi eq, %302, %327 : vector<1x16xi32>
    %329 = vector.shape_cast %328 : vector<1x16xi1> to vector<1x16xi1>
    %330 = vector.broadcast %329 : vector<1x16xi1> to vector<16x16xi1>
    %331 = arith.select %330, %326, %323 : vector<16x16xi1>, vector<16x16xf32>
    %c3_i32_73 = arith.constant 3 : i32
    %332 = vector.broadcast %c3_i32_73 : i32 to vector<1x16xi32>
    %333 = arith.cmpi eq, %302, %332 : vector<1x16xi32>
    %334 = vector.shape_cast %333 : vector<1x16xi1> to vector<1x16xi1>
    %335 = vector.broadcast %334 : vector<1x16xi1> to vector<16x16xi1>
    %336 = arith.select %335, %323, %326 : vector<16x16xi1>, vector<16x16xf32>
    %337 = vector.extract_strided_slice %298 {offsets = [0, 12], sizes = [16, 4], strides = [1, 1]} : vector<16x16xf32> to vector<16x4xf32>
    %338 = vector.extract_strided_slice %298 {offsets = [0, 0], sizes = [16, 12], strides = [1, 1]} : vector<16x16xf32> to vector<16x12xf32>
    %339 = tpu.concatenate %337, %338 in 1 : vector<16x4xf32>, vector<16x12xf32> -> vector<16x16xf32>
    %340 = vector.extract_strided_slice %298 {offsets = [0, 4], sizes = [16, 12], strides = [1, 1]} : vector<16x16xf32> to vector<16x12xf32>
    %341 = vector.extract_strided_slice %298 {offsets = [0, 0], sizes = [16, 4], strides = [1, 1]} : vector<16x16xf32> to vector<16x4xf32>
    %342 = tpu.concatenate %340, %341 in 1 : vector<16x12xf32>, vector<16x4xf32> -> vector<16x16xf32>
    %c0_i32_74 = arith.constant 0 : i32
    %343 = vector.broadcast %c0_i32_74 : i32 to vector<1x16xi32>
    %344 = arith.cmpi eq, %302, %343 : vector<1x16xi32>
    %345 = vector.shape_cast %344 : vector<1x16xi1> to vector<1x16xi1>
    %346 = vector.broadcast %345 : vector<1x16xi1> to vector<16x16xi1>
    %347 = arith.select %346, %342, %339 : vector<16x16xi1>, vector<16x16xf32>
    %c3_i32_75 = arith.constant 3 : i32
    %348 = vector.broadcast %c3_i32_75 : i32 to vector<1x16xi32>
    %349 = arith.cmpi eq, %302, %348 : vector<1x16xi32>
    %350 = vector.shape_cast %349 : vector<1x16xi1> to vector<1x16xi1>
    %351 = vector.broadcast %350 : vector<1x16xi1> to vector<16x16xi1>
    %352 = arith.select %351, %339, %342 : vector<16x16xi1>, vector<16x16xf32>
    %353 = vector.extract_strided_slice %320 {offsets = [0, 12], sizes = [16, 4], strides = [1, 1]} : vector<16x16xf32> to vector<16x4xf32>
    %354 = vector.extract_strided_slice %320 {offsets = [0, 0], sizes = [16, 12], strides = [1, 1]} : vector<16x16xf32> to vector<16x12xf32>
    %355 = tpu.concatenate %353, %354 in 1 : vector<16x4xf32>, vector<16x12xf32> -> vector<16x16xf32>
    %356 = vector.extract_strided_slice %320 {offsets = [0, 4], sizes = [16, 12], strides = [1, 1]} : vector<16x16xf32> to vector<16x12xf32>
    %357 = vector.extract_strided_slice %320 {offsets = [0, 0], sizes = [16, 4], strides = [1, 1]} : vector<16x16xf32> to vector<16x4xf32>
    %358 = tpu.concatenate %356, %357 in 1 : vector<16x12xf32>, vector<16x4xf32> -> vector<16x16xf32>
    %c0_i32_76 = arith.constant 0 : i32
    %359 = vector.broadcast %c0_i32_76 : i32 to vector<1x16xi32>
    %360 = arith.cmpi eq, %302, %359 : vector<1x16xi32>
    %361 = vector.shape_cast %360 : vector<1x16xi1> to vector<1x16xi1>
    %362 = vector.broadcast %361 : vector<1x16xi1> to vector<16x16xi1>
    %363 = arith.select %362, %358, %355 : vector<16x16xi1>, vector<16x16xf32>
    %c3_i32_77 = arith.constant 3 : i32
    %364 = vector.broadcast %c3_i32_77 : i32 to vector<1x16xi32>
    %365 = arith.cmpi eq, %302, %364 : vector<1x16xi32>
    %366 = vector.shape_cast %365 : vector<1x16xi1> to vector<1x16xi1>
    %367 = vector.broadcast %366 : vector<1x16xi1> to vector<16x16xi1>
    %368 = arith.select %367, %355, %358 : vector<16x16xi1>, vector<16x16xf32>
    %369 = tpu.concatenate %331, %347, %363, %315, %298, %320, %336, %352, %368 in 0 : vector<16x16xf32>, vector<16x16xf32>, vector<16x16xf32>, vector<16x16xf32>, vector<16x16xf32>, vector<16x16xf32>, vector<16x16xf32>, vector<16x16xf32>, vector<16x16xf32> -> vector<144x16xf32>
    %370 = arith.truncf %369 : vector<144x16xf32> to vector<144x16xbf16>
    %cst_78 = arith.constant dense<0.000000e+00> : vector<16x16xf32>
    %371 = tpu.matmul %299, %370, %cst_78 {dimension_numbers = #tpu.dot_dimension_numbers<[1], [0], [0], [1], [0, 0, 1, 1], [], []>} : vector<16x144xbf16>, vector<144x16xbf16>, vector<16x16xf32> -> vector<16x16xf32>
    %cst_79 = arith.constant dense<0.000000e+00> : vector<16xf32>
    %372 = vector.multi_reduction <add>, %371, %cst_79 [1] : vector<16x16xf32> to vector<16xf32>
    %373 = vector.shape_cast %372 : vector<16xf32> to vector<16x1xf32>
    %cst_80 = arith.constant 6.250000e-02 : f32
    %374 = vector.broadcast %cst_80 : f32 to vector<16x1xf32>
    %375 = arith.mulf %373, %374 : vector<16x1xf32>
    %376 = arith.mulf %371, %371 : vector<16x16xf32>
    %cst_81 = arith.constant dense<0.000000e+00> : vector<16xf32>
    %377 = vector.multi_reduction <add>, %376, %cst_81 [1] : vector<16x16xf32> to vector<16xf32>
    %378 = vector.shape_cast %377 : vector<16xf32> to vector<16x1xf32>
    %cst_82 = arith.constant 6.250000e-02 : f32
    %379 = vector.broadcast %cst_82 : f32 to vector<16x1xf32>
    %380 = arith.mulf %378, %379 : vector<16x1xf32>
    %381 = arith.mulf %375, %375 : vector<16x1xf32>
    %382 = arith.subf %380, %381 : vector<16x1xf32>
    %cst_83 = arith.constant 9.99999974E-6 : f32
    %383 = vector.broadcast %cst_83 : f32 to vector<16x1xf32>
    %384 = arith.addf %382, %383 : vector<16x1xf32>
    %385 = math.rsqrt %384 : vector<16x1xf32>
    %386 = vector.broadcast %385 : vector<16x1xf32> to vector<16x16xf32>
    %387 = arith.mulf %371, %386 : vector<16x16xf32>
    %388 = arith.mulf %375, %385 : vector<16x1xf32>
    %389 = vector.broadcast %388 : vector<16x1xf32> to vector<16x16xf32>
    %390 = arith.subf %387, %389 : vector<16x16xf32>
    %cst_84 = arith.constant 0.00999999977 : f32
    %391 = vector.broadcast %cst_84 : f32 to vector<16x16xf32>
    %392 = arith.mulf %391, %390 : vector<16x16xf32>
    %393 = arith.maximumf %390, %392 : vector<16x16xf32>
    %c80 = arith.constant 80 : index
    %c0_85 = arith.constant 0 : index
    %394 = vector.load %arg1[%c80, %c0_85] : memref<160x256xbf16, #tpu.memory_space<vmem>>, vector<8x16xbf16>
    %395 = arith.truncf %393 : vector<16x16xf32> to vector<16x16xbf16>
    %cst_86 = arith.constant dense<0.000000e+00> : vector<8x16xf32>
    %396 = tpu.matmul %394, %395, %cst_86 {dimension_numbers = #tpu.dot_dimension_numbers<[1], [0], [0], [1], [0, 0, 1, 1], [], []>} : vector<8x16xbf16>, vector<16x16xbf16>, vector<8x16xf32> -> vector<8x16xf32>
    %cst_87 = arith.constant dense<0.000000e+00> : vector<8xf32>
    %397 = vector.multi_reduction <add>, %396, %cst_87 [1] : vector<8x16xf32> to vector<8xf32>
    %398 = vector.shape_cast %397 : vector<8xf32> to vector<8x1xf32>
    %cst_88 = arith.constant 6.250000e-02 : f32
    %399 = vector.broadcast %cst_88 : f32 to vector<8x1xf32>
    %400 = arith.mulf %398, %399 : vector<8x1xf32>
    %401 = arith.mulf %396, %396 : vector<8x16xf32>
    %cst_89 = arith.constant dense<0.000000e+00> : vector<8xf32>
    %402 = vector.multi_reduction <add>, %401, %cst_89 [1] : vector<8x16xf32> to vector<8xf32>
    %403 = vector.shape_cast %402 : vector<8xf32> to vector<8x1xf32>
    %cst_90 = arith.constant 6.250000e-02 : f32
    %404 = vector.broadcast %cst_90 : f32 to vector<8x1xf32>
    %405 = arith.mulf %403, %404 : vector<8x1xf32>
    %406 = arith.mulf %400, %400 : vector<8x1xf32>
    %407 = arith.subf %405, %406 : vector<8x1xf32>
    %cst_91 = arith.constant 9.99999974E-6 : f32
    %408 = vector.broadcast %cst_91 : f32 to vector<8x1xf32>
    %409 = arith.addf %407, %408 : vector<8x1xf32>
    %410 = math.rsqrt %409 : vector<8x1xf32>
    %411 = vector.broadcast %410 : vector<8x1xf32> to vector<8x16xf32>
    %412 = arith.mulf %396, %411 : vector<8x16xf32>
    %413 = arith.mulf %400, %410 : vector<8x1xf32>
    %414 = vector.broadcast %413 : vector<8x1xf32> to vector<8x16xf32>
    %415 = arith.subf %412, %414 : vector<8x16xf32>
    %cst_92 = arith.constant 0.00999999977 : f32
    %416 = vector.broadcast %cst_92 : f32 to vector<8x16xf32>
    %417 = arith.mulf %416, %415 : vector<8x16xf32>
    %418 = arith.maximumf %415, %417 : vector<8x16xf32>
    %419 = tpu.concatenate %393, %418 in 0 : vector<16x16xf32>, vector<8x16xf32> -> vector<24x16xf32>
    %cst_93 = arith.constant dense<0.000000e+00> : vector<24xf32>
    %420 = vector.multi_reduction <add>, %419, %cst_93 [1] : vector<24x16xf32> to vector<24xf32>
    %421 = vector.shape_cast %420 : vector<24xf32> to vector<24x1xf32>
    %cst_94 = arith.constant 6.250000e-02 : f32
    %422 = vector.broadcast %cst_94 : f32 to vector<24x1xf32>
    %423 = arith.mulf %421, %422 : vector<24x1xf32>
    %424 = arith.mulf %419, %419 : vector<24x16xf32>
    %cst_95 = arith.constant dense<0.000000e+00> : vector<24xf32>
    %425 = vector.multi_reduction <add>, %424, %cst_95 [1] : vector<24x16xf32> to vector<24xf32>
    %426 = vector.shape_cast %425 : vector<24xf32> to vector<24x1xf32>
    %cst_96 = arith.constant 6.250000e-02 : f32
    %427 = vector.broadcast %cst_96 : f32 to vector<24x1xf32>
    %428 = arith.mulf %426, %427 : vector<24x1xf32>
    %429 = arith.mulf %423, %423 : vector<24x1xf32>
    %430 = arith.subf %428, %429 : vector<24x1xf32>
    %cst_97 = arith.constant 9.99999974E-6 : f32
    %431 = vector.broadcast %cst_97 : f32 to vector<24x1xf32>
    %432 = arith.addf %430, %431 : vector<24x1xf32>
    %433 = math.rsqrt %432 : vector<24x1xf32>
    %434 = vector.broadcast %433 : vector<24x1xf32> to vector<24x16xf32>
    %435 = arith.mulf %419, %434 : vector<24x16xf32>
    %436 = arith.mulf %423, %433 : vector<24x1xf32>
    %437 = vector.broadcast %436 : vector<24x1xf32> to vector<24x16xf32>
    %438 = arith.subf %435, %437 : vector<24x16xf32>
    %c96 = arith.constant 96 : index
    %c0_98 = arith.constant 0 : index
    %439 = vector.load %arg1[%c96, %c0_98] : memref<160x256xbf16, #tpu.memory_space<vmem>>, vector<8x216xbf16>
    %440 = tpu.iota {dimensions = array<i32: 1>} : vector<1x16xi32>
    %c2_i32_99 = arith.constant 2 : i32
    %441 = vector.broadcast %c2_i32_99 : i32 to vector<1x16xi32>
    %442 = arith.shrsi %440, %441 : vector<1x16xi32>
    %c3_i32_100 = arith.constant 3 : i32
    %443 = vector.broadcast %c3_i32_100 : i32 to vector<1x16xi32>
    %444 = arith.andi %440, %443 : vector<1x16xi32>
    %445 = vector.extract_strided_slice %438 {offsets = [0, 15], sizes = [24, 1], strides = [1, 1]} : vector<24x16xf32> to vector<24x1xf32>
    %446 = vector.extract_strided_slice %438 {offsets = [0, 0], sizes = [24, 15], strides = [1, 1]} : vector<24x16xf32> to vector<24x15xf32>
    %447 = tpu.concatenate %445, %446 in 1 : vector<24x1xf32>, vector<24x15xf32> -> vector<24x16xf32>
    %448 = vector.extract_strided_slice %438 {offsets = [0, 1], sizes = [24, 15], strides = [1, 1]} : vector<24x16xf32> to vector<24x15xf32>
    %449 = vector.extract_strided_slice %438 {offsets = [0, 0], sizes = [24, 1], strides = [1, 1]} : vector<24x16xf32> to vector<24x1xf32>
    %450 = tpu.concatenate %448, %449 in 1 : vector<24x15xf32>, vector<24x1xf32> -> vector<24x16xf32>
    %c0_i32_101 = arith.constant 0 : i32
    %451 = vector.broadcast %c0_i32_101 : i32 to vector<1x16xi32>
    %452 = arith.cmpi eq, %444, %451 : vector<1x16xi32>
    %453 = vector.shape_cast %452 : vector<1x16xi1> to vector<1x16xi1>
    %454 = vector.broadcast %453 : vector<1x16xi1> to vector<24x16xi1>
    %455 = arith.select %454, %450, %447 : vector<24x16xi1>, vector<24x16xf32>
    %c3_i32_102 = arith.constant 3 : i32
    %456 = vector.broadcast %c3_i32_102 : i32 to vector<1x16xi32>
    %457 = arith.cmpi eq, %444, %456 : vector<1x16xi32>
    %458 = vector.shape_cast %457 : vector<1x16xi1> to vector<1x16xi1>
    %459 = vector.broadcast %458 : vector<1x16xi1> to vector<24x16xi1>
    %460 = arith.select %459, %447, %450 : vector<24x16xi1>, vector<24x16xf32>
    %461 = vector.extract_strided_slice %455 {offsets = [0, 12], sizes = [24, 4], strides = [1, 1]} : vector<24x16xf32> to vector<24x4xf32>
    %462 = vector.extract_strided_slice %455 {offsets = [0, 0], sizes = [24, 12], strides = [1, 1]} : vector<24x16xf32> to vector<24x12xf32>
    %463 = tpu.concatenate %461, %462 in 1 : vector<24x4xf32>, vector<24x12xf32> -> vector<24x16xf32>
    %464 = vector.extract_strided_slice %455 {offsets = [0, 4], sizes = [24, 12], strides = [1, 1]} : vector<24x16xf32> to vector<24x12xf32>
    %465 = vector.extract_strided_slice %455 {offsets = [0, 0], sizes = [24, 4], strides = [1, 1]} : vector<24x16xf32> to vector<24x4xf32>
    %466 = tpu.concatenate %464, %465 in 1 : vector<24x12xf32>, vector<24x4xf32> -> vector<24x16xf32>
    %c0_i32_103 = arith.constant 0 : i32
    %467 = vector.broadcast %c0_i32_103 : i32 to vector<1x16xi32>
    %468 = arith.cmpi eq, %442, %467 : vector<1x16xi32>
    %469 = vector.shape_cast %468 : vector<1x16xi1> to vector<1x16xi1>
    %470 = vector.broadcast %469 : vector<1x16xi1> to vector<24x16xi1>
    %471 = arith.select %470, %466, %463 : vector<24x16xi1>, vector<24x16xf32>
    %c3_i32_104 = arith.constant 3 : i32
    %472 = vector.broadcast %c3_i32_104 : i32 to vector<1x16xi32>
    %473 = arith.cmpi eq, %442, %472 : vector<1x16xi32>
    %474 = vector.shape_cast %473 : vector<1x16xi1> to vector<1x16xi1>
    %475 = vector.broadcast %474 : vector<1x16xi1> to vector<24x16xi1>
    %476 = arith.select %475, %463, %466 : vector<24x16xi1>, vector<24x16xf32>
    %477 = vector.extract_strided_slice %438 {offsets = [0, 12], sizes = [24, 4], strides = [1, 1]} : vector<24x16xf32> to vector<24x4xf32>
    %478 = vector.extract_strided_slice %438 {offsets = [0, 0], sizes = [24, 12], strides = [1, 1]} : vector<24x16xf32> to vector<24x12xf32>
    %479 = tpu.concatenate %477, %478 in 1 : vector<24x4xf32>, vector<24x12xf32> -> vector<24x16xf32>
    %480 = vector.extract_strided_slice %438 {offsets = [0, 4], sizes = [24, 12], strides = [1, 1]} : vector<24x16xf32> to vector<24x12xf32>
    %481 = vector.extract_strided_slice %438 {offsets = [0, 0], sizes = [24, 4], strides = [1, 1]} : vector<24x16xf32> to vector<24x4xf32>
    %482 = tpu.concatenate %480, %481 in 1 : vector<24x12xf32>, vector<24x4xf32> -> vector<24x16xf32>
    %c0_i32_105 = arith.constant 0 : i32
    %483 = vector.broadcast %c0_i32_105 : i32 to vector<1x16xi32>
    %484 = arith.cmpi eq, %442, %483 : vector<1x16xi32>
    %485 = vector.shape_cast %484 : vector<1x16xi1> to vector<1x16xi1>
    %486 = vector.broadcast %485 : vector<1x16xi1> to vector<24x16xi1>
    %487 = arith.select %486, %482, %479 : vector<24x16xi1>, vector<24x16xf32>
    %c3_i32_106 = arith.constant 3 : i32
    %488 = vector.broadcast %c3_i32_106 : i32 to vector<1x16xi32>
    %489 = arith.cmpi eq, %442, %488 : vector<1x16xi32>
    %490 = vector.shape_cast %489 : vector<1x16xi1> to vector<1x16xi1>
    %491 = vector.broadcast %490 : vector<1x16xi1> to vector<24x16xi1>
    %492 = arith.select %491, %479, %482 : vector<24x16xi1>, vector<24x16xf32>
    %493 = vector.extract_strided_slice %460 {offsets = [0, 12], sizes = [24, 4], strides = [1, 1]} : vector<24x16xf32> to vector<24x4xf32>
    %494 = vector.extract_strided_slice %460 {offsets = [0, 0], sizes = [24, 12], strides = [1, 1]} : vector<24x16xf32> to vector<24x12xf32>
    %495 = tpu.concatenate %493, %494 in 1 : vector<24x4xf32>, vector<24x12xf32> -> vector<24x16xf32>
    %496 = vector.extract_strided_slice %460 {offsets = [0, 4], sizes = [24, 12], strides = [1, 1]} : vector<24x16xf32> to vector<24x12xf32>
    %497 = vector.extract_strided_slice %460 {offsets = [0, 0], sizes = [24, 4], strides = [1, 1]} : vector<24x16xf32> to vector<24x4xf32>
    %498 = tpu.concatenate %496, %497 in 1 : vector<24x12xf32>, vector<24x4xf32> -> vector<24x16xf32>
    %c0_i32_107 = arith.constant 0 : i32
    %499 = vector.broadcast %c0_i32_107 : i32 to vector<1x16xi32>
    %500 = arith.cmpi eq, %442, %499 : vector<1x16xi32>
    %501 = vector.shape_cast %500 : vector<1x16xi1> to vector<1x16xi1>
    %502 = vector.broadcast %501 : vector<1x16xi1> to vector<24x16xi1>
    %503 = arith.select %502, %498, %495 : vector<24x16xi1>, vector<24x16xf32>
    %c3_i32_108 = arith.constant 3 : i32
    %504 = vector.broadcast %c3_i32_108 : i32 to vector<1x16xi32>
    %505 = arith.cmpi eq, %442, %504 : vector<1x16xi32>
    %506 = vector.shape_cast %505 : vector<1x16xi1> to vector<1x16xi1>
    %507 = vector.broadcast %506 : vector<1x16xi1> to vector<24x16xi1>
    %508 = arith.select %507, %495, %498 : vector<24x16xi1>, vector<24x16xf32>
    %509 = tpu.concatenate %471, %487, %503, %455, %438, %460, %476, %492, %508 in 0 : vector<24x16xf32>, vector<24x16xf32>, vector<24x16xf32>, vector<24x16xf32>, vector<24x16xf32>, vector<24x16xf32>, vector<24x16xf32>, vector<24x16xf32>, vector<24x16xf32> -> vector<216x16xf32>
    %510 = arith.truncf %509 : vector<216x16xf32> to vector<216x16xbf16>
    %cst_109 = arith.constant dense<0.000000e+00> : vector<8x16xf32>
    %511 = tpu.matmul %439, %510, %cst_109 {dimension_numbers = #tpu.dot_dimension_numbers<[1], [0], [0], [1], [0, 0, 1, 1], [], []>} : vector<8x216xbf16>, vector<216x16xbf16>, vector<8x16xf32> -> vector<8x16xf32>
    %cst_110 = arith.constant dense<0.000000e+00> : vector<8xf32>
    %512 = vector.multi_reduction <add>, %511, %cst_110 [1] : vector<8x16xf32> to vector<8xf32>
    %513 = vector.shape_cast %512 : vector<8xf32> to vector<8x1xf32>
    %cst_111 = arith.constant 6.250000e-02 : f32
    %514 = vector.broadcast %cst_111 : f32 to vector<8x1xf32>
    %515 = arith.mulf %513, %514 : vector<8x1xf32>
    %516 = arith.mulf %511, %511 : vector<8x16xf32>
    %cst_112 = arith.constant dense<0.000000e+00> : vector<8xf32>
    %517 = vector.multi_reduction <add>, %516, %cst_112 [1] : vector<8x16xf32> to vector<8xf32>
    %518 = vector.shape_cast %517 : vector<8xf32> to vector<8x1xf32>
    %cst_113 = arith.constant 6.250000e-02 : f32
    %519 = vector.broadcast %cst_113 : f32 to vector<8x1xf32>
    %520 = arith.mulf %518, %519 : vector<8x1xf32>
    %521 = arith.mulf %515, %515 : vector<8x1xf32>
    %522 = arith.subf %520, %521 : vector<8x1xf32>
    %cst_114 = arith.constant 9.99999974E-6 : f32
    %523 = vector.broadcast %cst_114 : f32 to vector<8x1xf32>
    %524 = arith.addf %522, %523 : vector<8x1xf32>
    %525 = math.rsqrt %524 : vector<8x1xf32>
    %526 = vector.broadcast %525 : vector<8x1xf32> to vector<8x16xf32>
    %527 = arith.mulf %511, %526 : vector<8x16xf32>
    %528 = arith.mulf %515, %525 : vector<8x1xf32>
    %529 = vector.broadcast %528 : vector<8x1xf32> to vector<8x16xf32>
    %530 = arith.subf %527, %529 : vector<8x16xf32>
    %cst_115 = arith.constant 0.00999999977 : f32
    %531 = vector.broadcast %cst_115 : f32 to vector<8x16xf32>
    %532 = arith.mulf %531, %530 : vector<8x16xf32>
    %533 = arith.maximumf %530, %532 : vector<8x16xf32>
    %c0_116 = arith.constant 0 : index
    %c0_117 = arith.constant 0 : index
    %534 = vector.load %arg4[%c0_116, %c0_117] : memref<16x64xf32, #tpu.memory_space<vmem>>, vector<16x64xf32>
    %cst_118 = arith.constant dense<0.000000e+00> : vector<8x64xf32>
    %535 = tpu.matmul %533, %534, %cst_118 {dimension_numbers = #tpu.dot_dimension_numbers<[1], [0], [0], [1], [0, 0, 1, 1], [], []>} : vector<8x16xf32>, vector<16x64xf32>, vector<8x64xf32> -> vector<8x64xf32>
    %c112 = arith.constant 112 : index
    %c0_119 = arith.constant 0 : index
    %536 = vector.load %arg1[%c112, %c0_119] : memref<160x256xbf16, #tpu.memory_space<vmem>>, vector<8x72xbf16>
    %537 = tpu.iota {dimensions = array<i32: 1>} : vector<1x64xi32>
    %c3_i32_120 = arith.constant 3 : i32
    %538 = vector.broadcast %c3_i32_120 : i32 to vector<1x64xi32>
    %539 = arith.shrsi %537, %538 : vector<1x64xi32>
    %c7_i32_121 = arith.constant 7 : i32
    %540 = vector.broadcast %c7_i32_121 : i32 to vector<1x64xi32>
    %541 = arith.andi %537, %540 : vector<1x64xi32>
    %542 = vector.extract_strided_slice %535 {offsets = [0, 63], sizes = [8, 1], strides = [1, 1]} : vector<8x64xf32> to vector<8x1xf32>
    %543 = vector.extract_strided_slice %535 {offsets = [0, 0], sizes = [8, 63], strides = [1, 1]} : vector<8x64xf32> to vector<8x63xf32>
    %544 = tpu.concatenate %542, %543 in 1 : vector<8x1xf32>, vector<8x63xf32> -> vector<8x64xf32>
    %545 = vector.extract_strided_slice %535 {offsets = [0, 1], sizes = [8, 63], strides = [1, 1]} : vector<8x64xf32> to vector<8x63xf32>
    %546 = vector.extract_strided_slice %535 {offsets = [0, 0], sizes = [8, 1], strides = [1, 1]} : vector<8x64xf32> to vector<8x1xf32>
    %547 = tpu.concatenate %545, %546 in 1 : vector<8x63xf32>, vector<8x1xf32> -> vector<8x64xf32>
    %c0_i32_122 = arith.constant 0 : i32
    %548 = vector.broadcast %c0_i32_122 : i32 to vector<1x64xi32>
    %549 = arith.cmpi eq, %541, %548 : vector<1x64xi32>
    %550 = vector.shape_cast %549 : vector<1x64xi1> to vector<1x64xi1>
    %551 = vector.broadcast %550 : vector<1x64xi1> to vector<8x64xi1>
    %552 = arith.select %551, %547, %544 : vector<8x64xi1>, vector<8x64xf32>
    %c7_i32_123 = arith.constant 7 : i32
    %553 = vector.broadcast %c7_i32_123 : i32 to vector<1x64xi32>
    %554 = arith.cmpi eq, %541, %553 : vector<1x64xi32>
    %555 = vector.shape_cast %554 : vector<1x64xi1> to vector<1x64xi1>
    %556 = vector.broadcast %555 : vector<1x64xi1> to vector<8x64xi1>
    %557 = arith.select %556, %544, %547 : vector<8x64xi1>, vector<8x64xf32>
    %558 = vector.extract_strided_slice %552 {offsets = [0, 56], sizes = [8, 8], strides = [1, 1]} : vector<8x64xf32> to vector<8x8xf32>
    %559 = vector.extract_strided_slice %552 {offsets = [0, 0], sizes = [8, 56], strides = [1, 1]} : vector<8x64xf32> to vector<8x56xf32>
    %560 = tpu.concatenate %558, %559 in 1 : vector<8x8xf32>, vector<8x56xf32> -> vector<8x64xf32>
    %561 = vector.extract_strided_slice %552 {offsets = [0, 8], sizes = [8, 56], strides = [1, 1]} : vector<8x64xf32> to vector<8x56xf32>
    %562 = vector.extract_strided_slice %552 {offsets = [0, 0], sizes = [8, 8], strides = [1, 1]} : vector<8x64xf32> to vector<8x8xf32>
    %563 = tpu.concatenate %561, %562 in 1 : vector<8x56xf32>, vector<8x8xf32> -> vector<8x64xf32>
    %c0_i32_124 = arith.constant 0 : i32
    %564 = vector.broadcast %c0_i32_124 : i32 to vector<1x64xi32>
    %565 = arith.cmpi eq, %539, %564 : vector<1x64xi32>
    %566 = vector.shape_cast %565 : vector<1x64xi1> to vector<1x64xi1>
    %567 = vector.broadcast %566 : vector<1x64xi1> to vector<8x64xi1>
    %568 = arith.select %567, %563, %560 : vector<8x64xi1>, vector<8x64xf32>
    %c7_i32_125 = arith.constant 7 : i32
    %569 = vector.broadcast %c7_i32_125 : i32 to vector<1x64xi32>
    %570 = arith.cmpi eq, %539, %569 : vector<1x64xi32>
    %571 = vector.shape_cast %570 : vector<1x64xi1> to vector<1x64xi1>
    %572 = vector.broadcast %571 : vector<1x64xi1> to vector<8x64xi1>
    %573 = arith.select %572, %560, %563 : vector<8x64xi1>, vector<8x64xf32>
    %574 = vector.extract_strided_slice %535 {offsets = [0, 56], sizes = [8, 8], strides = [1, 1]} : vector<8x64xf32> to vector<8x8xf32>
    %575 = vector.extract_strided_slice %535 {offsets = [0, 0], sizes = [8, 56], strides = [1, 1]} : vector<8x64xf32> to vector<8x56xf32>
    %576 = tpu.concatenate %574, %575 in 1 : vector<8x8xf32>, vector<8x56xf32> -> vector<8x64xf32>
    %577 = vector.extract_strided_slice %535 {offsets = [0, 8], sizes = [8, 56], strides = [1, 1]} : vector<8x64xf32> to vector<8x56xf32>
    %578 = vector.extract_strided_slice %535 {offsets = [0, 0], sizes = [8, 8], strides = [1, 1]} : vector<8x64xf32> to vector<8x8xf32>
    %579 = tpu.concatenate %577, %578 in 1 : vector<8x56xf32>, vector<8x8xf32> -> vector<8x64xf32>
    %c0_i32_126 = arith.constant 0 : i32
    %580 = vector.broadcast %c0_i32_126 : i32 to vector<1x64xi32>
    %581 = arith.cmpi eq, %539, %580 : vector<1x64xi32>
    %582 = vector.shape_cast %581 : vector<1x64xi1> to vector<1x64xi1>
    %583 = vector.broadcast %582 : vector<1x64xi1> to vector<8x64xi1>
    %584 = arith.select %583, %579, %576 : vector<8x64xi1>, vector<8x64xf32>
    %c7_i32_127 = arith.constant 7 : i32
    %585 = vector.broadcast %c7_i32_127 : i32 to vector<1x64xi32>
    %586 = arith.cmpi eq, %539, %585 : vector<1x64xi32>
    %587 = vector.shape_cast %586 : vector<1x64xi1> to vector<1x64xi1>
    %588 = vector.broadcast %587 : vector<1x64xi1> to vector<8x64xi1>
    %589 = arith.select %588, %576, %579 : vector<8x64xi1>, vector<8x64xf32>
    %590 = vector.extract_strided_slice %557 {offsets = [0, 56], sizes = [8, 8], strides = [1, 1]} : vector<8x64xf32> to vector<8x8xf32>
    %591 = vector.extract_strided_slice %557 {offsets = [0, 0], sizes = [8, 56], strides = [1, 1]} : vector<8x64xf32> to vector<8x56xf32>
    %592 = tpu.concatenate %590, %591 in 1 : vector<8x8xf32>, vector<8x56xf32> -> vector<8x64xf32>
    %593 = vector.extract_strided_slice %557 {offsets = [0, 8], sizes = [8, 56], strides = [1, 1]} : vector<8x64xf32> to vector<8x56xf32>
    %594 = vector.extract_strided_slice %557 {offsets = [0, 0], sizes = [8, 8], strides = [1, 1]} : vector<8x64xf32> to vector<8x8xf32>
    %595 = tpu.concatenate %593, %594 in 1 : vector<8x56xf32>, vector<8x8xf32> -> vector<8x64xf32>
    %c0_i32_128 = arith.constant 0 : i32
    %596 = vector.broadcast %c0_i32_128 : i32 to vector<1x64xi32>
    %597 = arith.cmpi eq, %539, %596 : vector<1x64xi32>
    %598 = vector.shape_cast %597 : vector<1x64xi1> to vector<1x64xi1>
    %599 = vector.broadcast %598 : vector<1x64xi1> to vector<8x64xi1>
    %600 = arith.select %599, %595, %592 : vector<8x64xi1>, vector<8x64xf32>
    %c7_i32_129 = arith.constant 7 : i32
    %601 = vector.broadcast %c7_i32_129 : i32 to vector<1x64xi32>
    %602 = arith.cmpi eq, %539, %601 : vector<1x64xi32>
    %603 = vector.shape_cast %602 : vector<1x64xi1> to vector<1x64xi1>
    %604 = vector.broadcast %603 : vector<1x64xi1> to vector<8x64xi1>
    %605 = arith.select %604, %592, %595 : vector<8x64xi1>, vector<8x64xf32>
    %606 = tpu.concatenate %568, %584, %600, %552, %535, %557, %573, %589, %605 in 0 : vector<8x64xf32>, vector<8x64xf32>, vector<8x64xf32>, vector<8x64xf32>, vector<8x64xf32>, vector<8x64xf32>, vector<8x64xf32>, vector<8x64xf32>, vector<8x64xf32> -> vector<72x64xf32>
    %607 = arith.truncf %606 : vector<72x64xf32> to vector<72x64xbf16>
    %cst_130 = arith.constant dense<0.000000e+00> : vector<8x64xf32>
    %608 = tpu.matmul %536, %607, %cst_130 {dimension_numbers = #tpu.dot_dimension_numbers<[1], [0], [0], [1], [0, 0, 1, 1], [], []>} : vector<8x72xbf16>, vector<72x64xbf16>, vector<8x64xf32> -> vector<8x64xf32>
    %cst_131 = arith.constant dense<0.000000e+00> : vector<8xf32>
    %609 = vector.multi_reduction <add>, %608, %cst_131 [1] : vector<8x64xf32> to vector<8xf32>
    %610 = vector.shape_cast %609 : vector<8xf32> to vector<8x1xf32>
    %cst_132 = arith.constant 1.562500e-02 : f32
    %611 = vector.broadcast %cst_132 : f32 to vector<8x1xf32>
    %612 = arith.mulf %610, %611 : vector<8x1xf32>
    %613 = arith.mulf %608, %608 : vector<8x64xf32>
    %cst_133 = arith.constant dense<0.000000e+00> : vector<8xf32>
    %614 = vector.multi_reduction <add>, %613, %cst_133 [1] : vector<8x64xf32> to vector<8xf32>
    %615 = vector.shape_cast %614 : vector<8xf32> to vector<8x1xf32>
    %cst_134 = arith.constant 1.562500e-02 : f32
    %616 = vector.broadcast %cst_134 : f32 to vector<8x1xf32>
    %617 = arith.mulf %615, %616 : vector<8x1xf32>
    %618 = arith.mulf %612, %612 : vector<8x1xf32>
    %619 = arith.subf %617, %618 : vector<8x1xf32>
    %cst_135 = arith.constant 9.99999974E-6 : f32
    %620 = vector.broadcast %cst_135 : f32 to vector<8x1xf32>
    %621 = arith.addf %619, %620 : vector<8x1xf32>
    %622 = math.rsqrt %621 : vector<8x1xf32>
    %623 = vector.broadcast %622 : vector<8x1xf32> to vector<8x64xf32>
    %624 = arith.mulf %608, %623 : vector<8x64xf32>
    %625 = arith.mulf %612, %622 : vector<8x1xf32>
    %626 = vector.broadcast %625 : vector<8x1xf32> to vector<8x64xf32>
    %627 = arith.subf %624, %626 : vector<8x64xf32>
    %cst_136 = arith.constant 0.00999999977 : f32
    %628 = vector.broadcast %cst_136 : f32 to vector<8x64xf32>
    %629 = arith.mulf %628, %627 : vector<8x64xf32>
    %630 = arith.maximumf %627, %629 : vector<8x64xf32>
    %631 = tpu.concatenate %630, %201 in 0 : vector<8x64xf32>, vector<8x64xf32> -> vector<16x64xf32>
    %cst_137 = arith.constant dense<0.000000e+00> : vector<16xf32>
    %632 = vector.multi_reduction <add>, %631, %cst_137 [1] : vector<16x64xf32> to vector<16xf32>
    %633 = vector.shape_cast %632 : vector<16xf32> to vector<16x1xf32>
    %cst_138 = arith.constant 1.562500e-02 : f32
    %634 = vector.broadcast %cst_138 : f32 to vector<16x1xf32>
    %635 = arith.mulf %633, %634 : vector<16x1xf32>
    %636 = arith.mulf %631, %631 : vector<16x64xf32>
    %cst_139 = arith.constant dense<0.000000e+00> : vector<16xf32>
    %637 = vector.multi_reduction <add>, %636, %cst_139 [1] : vector<16x64xf32> to vector<16xf32>
    %638 = vector.shape_cast %637 : vector<16xf32> to vector<16x1xf32>
    %cst_140 = arith.constant 1.562500e-02 : f32
    %639 = vector.broadcast %cst_140 : f32 to vector<16x1xf32>
    %640 = arith.mulf %638, %639 : vector<16x1xf32>
    %641 = arith.mulf %635, %635 : vector<16x1xf32>
    %642 = arith.subf %640, %641 : vector<16x1xf32>
    %cst_141 = arith.constant 9.99999974E-6 : f32
    %643 = vector.broadcast %cst_141 : f32 to vector<16x1xf32>
    %644 = arith.addf %642, %643 : vector<16x1xf32>
    %645 = math.rsqrt %644 : vector<16x1xf32>
    %646 = vector.broadcast %645 : vector<16x1xf32> to vector<16x64xf32>
    %647 = arith.mulf %631, %646 : vector<16x64xf32>
    %648 = arith.mulf %635, %645 : vector<16x1xf32>
    %649 = vector.broadcast %648 : vector<16x1xf32> to vector<16x64xf32>
    %650 = arith.subf %647, %649 : vector<16x64xf32>
    %c128 = arith.constant 128 : index
    %c0_142 = arith.constant 0 : index
    %651 = vector.load %arg1[%c128, %c0_142] : memref<160x256xbf16, #tpu.memory_space<vmem>>, vector<8x144xbf16>
    %652 = tpu.iota {dimensions = array<i32: 1>} : vector<1x64xi32>
    %c3_i32_143 = arith.constant 3 : i32
    %653 = vector.broadcast %c3_i32_143 : i32 to vector<1x64xi32>
    %654 = arith.shrsi %652, %653 : vector<1x64xi32>
    %c7_i32_144 = arith.constant 7 : i32
    %655 = vector.broadcast %c7_i32_144 : i32 to vector<1x64xi32>
    %656 = arith.andi %652, %655 : vector<1x64xi32>
    %657 = vector.extract_strided_slice %650 {offsets = [0, 63], sizes = [16, 1], strides = [1, 1]} : vector<16x64xf32> to vector<16x1xf32>
    %658 = vector.extract_strided_slice %650 {offsets = [0, 0], sizes = [16, 63], strides = [1, 1]} : vector<16x64xf32> to vector<16x63xf32>
    %659 = tpu.concatenate %657, %658 in 1 : vector<16x1xf32>, vector<16x63xf32> -> vector<16x64xf32>
    %660 = vector.extract_strided_slice %650 {offsets = [0, 1], sizes = [16, 63], strides = [1, 1]} : vector<16x64xf32> to vector<16x63xf32>
    %661 = vector.extract_strided_slice %650 {offsets = [0, 0], sizes = [16, 1], strides = [1, 1]} : vector<16x64xf32> to vector<16x1xf32>
    %662 = tpu.concatenate %660, %661 in 1 : vector<16x63xf32>, vector<16x1xf32> -> vector<16x64xf32>
    %c0_i32_145 = arith.constant 0 : i32
    %663 = vector.broadcast %c0_i32_145 : i32 to vector<1x64xi32>
    %664 = arith.cmpi eq, %656, %663 : vector<1x64xi32>
    %665 = vector.shape_cast %664 : vector<1x64xi1> to vector<1x64xi1>
    %666 = vector.broadcast %665 : vector<1x64xi1> to vector<16x64xi1>
    %667 = arith.select %666, %662, %659 : vector<16x64xi1>, vector<16x64xf32>
    %c7_i32_146 = arith.constant 7 : i32
    %668 = vector.broadcast %c7_i32_146 : i32 to vector<1x64xi32>
    %669 = arith.cmpi eq, %656, %668 : vector<1x64xi32>
    %670 = vector.shape_cast %669 : vector<1x64xi1> to vector<1x64xi1>
    %671 = vector.broadcast %670 : vector<1x64xi1> to vector<16x64xi1>
    %672 = arith.select %671, %659, %662 : vector<16x64xi1>, vector<16x64xf32>
    %673 = vector.extract_strided_slice %667 {offsets = [0, 56], sizes = [16, 8], strides = [1, 1]} : vector<16x64xf32> to vector<16x8xf32>
    %674 = vector.extract_strided_slice %667 {offsets = [0, 0], sizes = [16, 56], strides = [1, 1]} : vector<16x64xf32> to vector<16x56xf32>
    %675 = tpu.concatenate %673, %674 in 1 : vector<16x8xf32>, vector<16x56xf32> -> vector<16x64xf32>
    %676 = vector.extract_strided_slice %667 {offsets = [0, 8], sizes = [16, 56], strides = [1, 1]} : vector<16x64xf32> to vector<16x56xf32>
    %677 = vector.extract_strided_slice %667 {offsets = [0, 0], sizes = [16, 8], strides = [1, 1]} : vector<16x64xf32> to vector<16x8xf32>
    %678 = tpu.concatenate %676, %677 in 1 : vector<16x56xf32>, vector<16x8xf32> -> vector<16x64xf32>
    %c0_i32_147 = arith.constant 0 : i32
    %679 = vector.broadcast %c0_i32_147 : i32 to vector<1x64xi32>
    %680 = arith.cmpi eq, %654, %679 : vector<1x64xi32>
    %681 = vector.shape_cast %680 : vector<1x64xi1> to vector<1x64xi1>
    %682 = vector.broadcast %681 : vector<1x64xi1> to vector<16x64xi1>
    %683 = arith.select %682, %678, %675 : vector<16x64xi1>, vector<16x64xf32>
    %c7_i32_148 = arith.constant 7 : i32
    %684 = vector.broadcast %c7_i32_148 : i32 to vector<1x64xi32>
    %685 = arith.cmpi eq, %654, %684 : vector<1x64xi32>
    %686 = vector.shape_cast %685 : vector<1x64xi1> to vector<1x64xi1>
    %687 = vector.broadcast %686 : vector<1x64xi1> to vector<16x64xi1>
    %688 = arith.select %687, %675, %678 : vector<16x64xi1>, vector<16x64xf32>
    %689 = vector.extract_strided_slice %650 {offsets = [0, 56], sizes = [16, 8], strides = [1, 1]} : vector<16x64xf32> to vector<16x8xf32>
    %690 = vector.extract_strided_slice %650 {offsets = [0, 0], sizes = [16, 56], strides = [1, 1]} : vector<16x64xf32> to vector<16x56xf32>
    %691 = tpu.concatenate %689, %690 in 1 : vector<16x8xf32>, vector<16x56xf32> -> vector<16x64xf32>
    %692 = vector.extract_strided_slice %650 {offsets = [0, 8], sizes = [16, 56], strides = [1, 1]} : vector<16x64xf32> to vector<16x56xf32>
    %693 = vector.extract_strided_slice %650 {offsets = [0, 0], sizes = [16, 8], strides = [1, 1]} : vector<16x64xf32> to vector<16x8xf32>
    %694 = tpu.concatenate %692, %693 in 1 : vector<16x56xf32>, vector<16x8xf32> -> vector<16x64xf32>
    %c0_i32_149 = arith.constant 0 : i32
    %695 = vector.broadcast %c0_i32_149 : i32 to vector<1x64xi32>
    %696 = arith.cmpi eq, %654, %695 : vector<1x64xi32>
    %697 = vector.shape_cast %696 : vector<1x64xi1> to vector<1x64xi1>
    %698 = vector.broadcast %697 : vector<1x64xi1> to vector<16x64xi1>
    %699 = arith.select %698, %694, %691 : vector<16x64xi1>, vector<16x64xf32>
    %c7_i32_150 = arith.constant 7 : i32
    %700 = vector.broadcast %c7_i32_150 : i32 to vector<1x64xi32>
    %701 = arith.cmpi eq, %654, %700 : vector<1x64xi32>
    %702 = vector.shape_cast %701 : vector<1x64xi1> to vector<1x64xi1>
    %703 = vector.broadcast %702 : vector<1x64xi1> to vector<16x64xi1>
    %704 = arith.select %703, %691, %694 : vector<16x64xi1>, vector<16x64xf32>
    %705 = vector.extract_strided_slice %672 {offsets = [0, 56], sizes = [16, 8], strides = [1, 1]} : vector<16x64xf32> to vector<16x8xf32>
    %706 = vector.extract_strided_slice %672 {offsets = [0, 0], sizes = [16, 56], strides = [1, 1]} : vector<16x64xf32> to vector<16x56xf32>
    %707 = tpu.concatenate %705, %706 in 1 : vector<16x8xf32>, vector<16x56xf32> -> vector<16x64xf32>
    %708 = vector.extract_strided_slice %672 {offsets = [0, 8], sizes = [16, 56], strides = [1, 1]} : vector<16x64xf32> to vector<16x56xf32>
    %709 = vector.extract_strided_slice %672 {offsets = [0, 0], sizes = [16, 8], strides = [1, 1]} : vector<16x64xf32> to vector<16x8xf32>
    %710 = tpu.concatenate %708, %709 in 1 : vector<16x56xf32>, vector<16x8xf32> -> vector<16x64xf32>
    %c0_i32_151 = arith.constant 0 : i32
    %711 = vector.broadcast %c0_i32_151 : i32 to vector<1x64xi32>
    %712 = arith.cmpi eq, %654, %711 : vector<1x64xi32>
    %713 = vector.shape_cast %712 : vector<1x64xi1> to vector<1x64xi1>
    %714 = vector.broadcast %713 : vector<1x64xi1> to vector<16x64xi1>
    %715 = arith.select %714, %710, %707 : vector<16x64xi1>, vector<16x64xf32>
    %c7_i32_152 = arith.constant 7 : i32
    %716 = vector.broadcast %c7_i32_152 : i32 to vector<1x64xi32>
    %717 = arith.cmpi eq, %654, %716 : vector<1x64xi32>
    %718 = vector.shape_cast %717 : vector<1x64xi1> to vector<1x64xi1>
    %719 = vector.broadcast %718 : vector<1x64xi1> to vector<16x64xi1>
    %720 = arith.select %719, %707, %710 : vector<16x64xi1>, vector<16x64xf32>
    %721 = tpu.concatenate %683, %699, %715, %667, %650, %672, %688, %704, %720 in 0 : vector<16x64xf32>, vector<16x64xf32>, vector<16x64xf32>, vector<16x64xf32>, vector<16x64xf32>, vector<16x64xf32>, vector<16x64xf32>, vector<16x64xf32>, vector<16x64xf32> -> vector<144x64xf32>
    %722 = arith.truncf %721 : vector<144x64xf32> to vector<144x64xbf16>
    %cst_153 = arith.constant dense<0.000000e+00> : vector<8x64xf32>
    %723 = tpu.matmul %651, %722, %cst_153 {dimension_numbers = #tpu.dot_dimension_numbers<[1], [0], [0], [1], [0, 0, 1, 1], [], []>} : vector<8x144xbf16>, vector<144x64xbf16>, vector<8x64xf32> -> vector<8x64xf32>
    %cst_154 = arith.constant dense<0.000000e+00> : vector<8xf32>
    %724 = vector.multi_reduction <add>, %723, %cst_154 [1] : vector<8x64xf32> to vector<8xf32>
    %725 = vector.shape_cast %724 : vector<8xf32> to vector<8x1xf32>
    %cst_155 = arith.constant 1.562500e-02 : f32
    %726 = vector.broadcast %cst_155 : f32 to vector<8x1xf32>
    %727 = arith.mulf %725, %726 : vector<8x1xf32>
    %728 = arith.mulf %723, %723 : vector<8x64xf32>
    %cst_156 = arith.constant dense<0.000000e+00> : vector<8xf32>
    %729 = vector.multi_reduction <add>, %728, %cst_156 [1] : vector<8x64xf32> to vector<8xf32>
    %730 = vector.shape_cast %729 : vector<8xf32> to vector<8x1xf32>
    %cst_157 = arith.constant 1.562500e-02 : f32
    %731 = vector.broadcast %cst_157 : f32 to vector<8x1xf32>
    %732 = arith.mulf %730, %731 : vector<8x1xf32>
    %733 = arith.mulf %727, %727 : vector<8x1xf32>
    %734 = arith.subf %732, %733 : vector<8x1xf32>
    %cst_158 = arith.constant 9.99999974E-6 : f32
    %735 = vector.broadcast %cst_158 : f32 to vector<8x1xf32>
    %736 = arith.addf %734, %735 : vector<8x1xf32>
    %737 = math.rsqrt %736 : vector<8x1xf32>
    %738 = vector.broadcast %737 : vector<8x1xf32> to vector<8x64xf32>
    %739 = arith.mulf %723, %738 : vector<8x64xf32>
    %740 = arith.mulf %727, %737 : vector<8x1xf32>
    %741 = vector.broadcast %740 : vector<8x1xf32> to vector<8x64xf32>
    %742 = arith.subf %739, %741 : vector<8x64xf32>
    %cst_159 = arith.constant 0.00999999977 : f32
    %743 = vector.broadcast %cst_159 : f32 to vector<8x64xf32>
    %744 = arith.mulf %743, %742 : vector<8x64xf32>
    %745 = arith.maximumf %742, %744 : vector<8x64xf32>
    %c0_160 = arith.constant 0 : index
    %c0_161 = arith.constant 0 : index
    %746 = vector.load %arg5[%c0_160, %c0_161] : memref<64x256xf32, #tpu.memory_space<vmem>>, vector<64x256xf32>
    %cst_162 = arith.constant dense<0.000000e+00> : vector<8x256xf32>
    %747 = tpu.matmul %745, %746, %cst_162 {dimension_numbers = #tpu.dot_dimension_numbers<[1], [0], [0], [1], [0, 0, 1, 1], [], []>} : vector<8x64xf32>, vector<64x256xf32>, vector<8x256xf32> -> vector<8x256xf32>
    %c144 = arith.constant 144 : index
    %c0_163 = arith.constant 0 : index
    %748 = vector.load %arg1[%c144, %c0_163] : memref<160x256xbf16, #tpu.memory_space<vmem>>, vector<8x72xbf16>
    %749 = tpu.iota {dimensions = array<i32: 1>} : vector<1x256xi32>
    %c4_i32_164 = arith.constant 4 : i32
    %750 = vector.broadcast %c4_i32_164 : i32 to vector<1x256xi32>
    %751 = arith.shrsi %749, %750 : vector<1x256xi32>
    %c15_i32_165 = arith.constant 15 : i32
    %752 = vector.broadcast %c15_i32_165 : i32 to vector<1x256xi32>
    %753 = arith.andi %749, %752 : vector<1x256xi32>
    %c1_i32_166 = arith.constant 1 : i32
    %754 = tpu.dynamic_rotate %747 by %c1_i32_166 dim 1 : vector<8x256xf32>, i32 -> vector<8x256xf32>
    %c255_i32_167 = arith.constant 255 : i32
    %755 = tpu.dynamic_rotate %747 by %c255_i32_167 dim 1 : vector<8x256xf32>, i32 -> vector<8x256xf32>
    %c0_i32_168 = arith.constant 0 : i32
    %756 = vector.broadcast %c0_i32_168 : i32 to vector<1x256xi32>
    %757 = arith.cmpi eq, %753, %756 : vector<1x256xi32>
    %758 = vector.shape_cast %757 : vector<1x256xi1> to vector<1x256xi1>
    %759 = vector.broadcast %758 : vector<1x256xi1> to vector<8x256xi1>
    %760 = arith.select %759, %755, %754 : vector<8x256xi1>, vector<8x256xf32>
    %c15_i32_169 = arith.constant 15 : i32
    %761 = vector.broadcast %c15_i32_169 : i32 to vector<1x256xi32>
    %762 = arith.cmpi eq, %753, %761 : vector<1x256xi32>
    %763 = vector.shape_cast %762 : vector<1x256xi1> to vector<1x256xi1>
    %764 = vector.broadcast %763 : vector<1x256xi1> to vector<8x256xi1>
    %765 = arith.select %764, %754, %755 : vector<8x256xi1>, vector<8x256xf32>
    %c16_i32_170 = arith.constant 16 : i32
    %766 = tpu.dynamic_rotate %760 by %c16_i32_170 dim 1 : vector<8x256xf32>, i32 -> vector<8x256xf32>
    %c240_i32_171 = arith.constant 240 : i32
    %767 = tpu.dynamic_rotate %760 by %c240_i32_171 dim 1 : vector<8x256xf32>, i32 -> vector<8x256xf32>
    %c0_i32_172 = arith.constant 0 : i32
    %768 = vector.broadcast %c0_i32_172 : i32 to vector<1x256xi32>
    %769 = arith.cmpi eq, %751, %768 : vector<1x256xi32>
    %770 = vector.shape_cast %769 : vector<1x256xi1> to vector<1x256xi1>
    %771 = vector.broadcast %770 : vector<1x256xi1> to vector<8x256xi1>
    %772 = arith.select %771, %767, %766 : vector<8x256xi1>, vector<8x256xf32>
    %c15_i32_173 = arith.constant 15 : i32
    %773 = vector.broadcast %c15_i32_173 : i32 to vector<1x256xi32>
    %774 = arith.cmpi eq, %751, %773 : vector<1x256xi32>
    %775 = vector.shape_cast %774 : vector<1x256xi1> to vector<1x256xi1>
    %776 = vector.broadcast %775 : vector<1x256xi1> to vector<8x256xi1>
    %777 = arith.select %776, %766, %767 : vector<8x256xi1>, vector<8x256xf32>
    %c16_i32_174 = arith.constant 16 : i32
    %778 = tpu.dynamic_rotate %747 by %c16_i32_174 dim 1 : vector<8x256xf32>, i32 -> vector<8x256xf32>
    %c240_i32_175 = arith.constant 240 : i32
    %779 = tpu.dynamic_rotate %747 by %c240_i32_175 dim 1 : vector<8x256xf32>, i32 -> vector<8x256xf32>
    %c0_i32_176 = arith.constant 0 : i32
    %780 = vector.broadcast %c0_i32_176 : i32 to vector<1x256xi32>
    %781 = arith.cmpi eq, %751, %780 : vector<1x256xi32>
    %782 = vector.shape_cast %781 : vector<1x256xi1> to vector<1x256xi1>
    %783 = vector.broadcast %782 : vector<1x256xi1> to vector<8x256xi1>
    %784 = arith.select %783, %779, %778 : vector<8x256xi1>, vector<8x256xf32>
    %c15_i32_177 = arith.constant 15 : i32
    %785 = vector.broadcast %c15_i32_177 : i32 to vector<1x256xi32>
    %786 = arith.cmpi eq, %751, %785 : vector<1x256xi32>
    %787 = vector.shape_cast %786 : vector<1x256xi1> to vector<1x256xi1>
    %788 = vector.broadcast %787 : vector<1x256xi1> to vector<8x256xi1>
    %789 = arith.select %788, %778, %779 : vector<8x256xi1>, vector<8x256xf32>
    %c16_i32_178 = arith.constant 16 : i32
    %790 = tpu.dynamic_rotate %765 by %c16_i32_178 dim 1 : vector<8x256xf32>, i32 -> vector<8x256xf32>
    %c240_i32_179 = arith.constant 240 : i32
    %791 = tpu.dynamic_rotate %765 by %c240_i32_179 dim 1 : vector<8x256xf32>, i32 -> vector<8x256xf32>
    %c0_i32_180 = arith.constant 0 : i32
    %792 = vector.broadcast %c0_i32_180 : i32 to vector<1x256xi32>
    %793 = arith.cmpi eq, %751, %792 : vector<1x256xi32>
    %794 = vector.shape_cast %793 : vector<1x256xi1> to vector<1x256xi1>
    %795 = vector.broadcast %794 : vector<1x256xi1> to vector<8x256xi1>
    %796 = arith.select %795, %791, %790 : vector<8x256xi1>, vector<8x256xf32>
    %c15_i32_181 = arith.constant 15 : i32
    %797 = vector.broadcast %c15_i32_181 : i32 to vector<1x256xi32>
    %798 = arith.cmpi eq, %751, %797 : vector<1x256xi32>
    %799 = vector.shape_cast %798 : vector<1x256xi1> to vector<1x256xi1>
    %800 = vector.broadcast %799 : vector<1x256xi1> to vector<8x256xi1>
    %801 = arith.select %800, %790, %791 : vector<8x256xi1>, vector<8x256xf32>
    %802 = tpu.concatenate %772, %784, %796, %760, %747, %765, %777, %789, %801 in 0 : vector<8x256xf32>, vector<8x256xf32>, vector<8x256xf32>, vector<8x256xf32>, vector<8x256xf32>, vector<8x256xf32>, vector<8x256xf32>, vector<8x256xf32>, vector<8x256xf32> -> vector<72x256xf32>
    %803 = arith.truncf %802 : vector<72x256xf32> to vector<72x256xbf16>
    %cst_182 = arith.constant dense<0.000000e+00> : vector<8x256xf32>
    %804 = tpu.matmul %748, %803, %cst_182 {dimension_numbers = #tpu.dot_dimension_numbers<[1], [0], [0], [1], [0, 0, 1, 1], [], []>} : vector<8x72xbf16>, vector<72x256xbf16>, vector<8x256xf32> -> vector<8x256xf32>
    %cst_183 = arith.constant dense<0.000000e+00> : vector<8xf32>
    %805 = vector.multi_reduction <add>, %804, %cst_183 [1] : vector<8x256xf32> to vector<8xf32>
    %806 = vector.shape_cast %805 : vector<8xf32> to vector<8x1xf32>
    %cst_184 = arith.constant 3.906250e-03 : f32
    %807 = vector.broadcast %cst_184 : f32 to vector<8x1xf32>
    %808 = arith.mulf %806, %807 : vector<8x1xf32>
    %809 = arith.mulf %804, %804 : vector<8x256xf32>
    %cst_185 = arith.constant dense<0.000000e+00> : vector<8xf32>
    %810 = vector.multi_reduction <add>, %809, %cst_185 [1] : vector<8x256xf32> to vector<8xf32>
    %811 = vector.shape_cast %810 : vector<8xf32> to vector<8x1xf32>
    %cst_186 = arith.constant 3.906250e-03 : f32
    %812 = vector.broadcast %cst_186 : f32 to vector<8x1xf32>
    %813 = arith.mulf %811, %812 : vector<8x1xf32>
    %814 = arith.mulf %808, %808 : vector<8x1xf32>
    %815 = arith.subf %813, %814 : vector<8x1xf32>
    %cst_187 = arith.constant 9.99999974E-6 : f32
    %816 = vector.broadcast %cst_187 : f32 to vector<8x1xf32>
    %817 = arith.addf %815, %816 : vector<8x1xf32>
    %818 = math.rsqrt %817 : vector<8x1xf32>
    %819 = vector.broadcast %818 : vector<8x1xf32> to vector<8x256xf32>
    %820 = arith.mulf %804, %819 : vector<8x256xf32>
    %821 = arith.mulf %808, %818 : vector<8x1xf32>
    %822 = vector.broadcast %821 : vector<8x1xf32> to vector<8x256xf32>
    %823 = arith.subf %820, %822 : vector<8x256xf32>
    %cst_188 = arith.constant 5.000000e-01 : f32
    %824 = vector.broadcast %cst_188 : f32 to vector<8x256xf32>
    %825 = arith.mulf %824, %823 : vector<8x256xf32>
    %826 = math.tanh %825 : vector<8x256xf32>
    %cst_189 = arith.constant 5.000000e-01 : f32
    %827 = vector.broadcast %cst_189 : f32 to vector<8x256xf32>
    %828 = arith.mulf %827, %826 : vector<8x256xf32>
    %cst_190 = arith.constant 5.000000e-01 : f32
    %829 = vector.broadcast %cst_190 : f32 to vector<8x256xf32>
    %830 = arith.addf %828, %829 : vector<8x256xf32>
    %c0_191 = arith.constant 0 : index
    %c0_192 = arith.constant 0 : index
    %831 = vector.load %arg6[%c0_191, %c0_192] : memref<8x256xf32, #tpu.memory_space<vmem>>, vector<8x256xf32>
    tpu.vector_store %arg6[%c0_191, %c0_192], %830 {strides = array<i32>} : memref<8x256xf32, #tpu.memory_space<vmem>>, vector<8x256xf32>,
    return
  }
}

</mosaic_0001>

<bundles_post_ra>
// kernel: _lambda_.1
= control target key start
LH: loop header
LB: loop body
LE: loop exit
PB: predicated region body
PF: predicated region fallthrough
CT: control target
= control target key end

     0   :  { %s2404_s25 = smov 1   ;;  %s2405_s26 = smov 127   ;;  %v27_v3 = vlaneseq  ;;  %v3559_v12 = vmov 0  ;;  %v3561_v13 = vmov 0  ;;  %v3563_v16 = vmov 0  ;;  %s3523_s0 = inlined_call_operand.vmem [shape: f32[8,256], index: 0, kind: input, shape index: {}]   ;;  %s3524_s2 = inlined_call_operand.vmem [shape: f32[256,64], index: 2, kind: input, shape index: {}]   ;;  %s3525_s1 = inlined_call_operand.vmem [shape: bf16[160,256], index: 1, kind: input, shape index: {}]   ;;  %s3526_s3 = inlined_call_operand.vmem [shape: f32[64,16], index: 3, kind: input, shape index: {}]   ;;  %s3527_s4 = inlined_call_operand.vmem [shape: f32[16,64], index: 4, kind: input, shape index: {}]   ;;  %s3528_s5 = inlined_call_operand.vmem [shape: f32[64,256], index: 5, kind: input, shape index: {}]   ;;  %s3529_s6 = inlined_call_operand.vmem [shape: f32[8,256], index: 6, kind: output, shape index: {}]  }
   0x1   :  { %v2458_v0 = vld [vmem:[%s3523_s0] sm:$0xff]  ;;  %v2463_v1 = vld [vmem:[%s3523_s0 + $0x8] sm:$0xff]  ;;  %s2406_s27 = smov 16   ;;  %v3565_v17 = vmov 0  ;;  %s2407_s0 = smov 112   ;;  %v188_v34 = vld [vmem:[%s3524_s2 + $0x78] sm:$0xff] }
   0x2   :  { %v1966_v2 = vpack.i.bf16 %v2463_v1, %v2458_v0  ;;  %v2470_v4 = vand.u32 127, %v27_v3  ;;  %v204_v35 = vld [vmem:[%s3524_s2 + $0xf8] sm:$0xff]  ;;  %v187_v36 = vld [vmem:[%s3524_s2 + $0x70] sm:$0xff]  ;;  %205 = vmatpush.msra.mxu2 %v188_v34  ;;  %v186_v40 = vld [vmem:[%s3524_s2 + $0x68] sm:$0xff]  ;;  %v3567_v45 = vmov 0  ;;  %v3569_v49 = vmov 0 }
   0x3   :  { %225 = vmatpush.msra.mxu3 %v204_v35  ;;  %v203_v38 = vld [vmem:[%s3524_s2 + $0xf0] sm:$0xff]  ;;  %v202_v41 = vld [vmem:[%s3524_s2 + $0xe8] sm:$0xff]  ;;  %v185_v50 = vld [vmem:[%s3524_s2 + $0x60] sm:$0xff]  ;;  %vm3536_vm10 = vcmask 1043456   ;;  %vm3537_vm13 = vcmask 588800   ;;  %vm3540_vm14 = vcmask 523264  }
   0x4   :  { %1967 = vrot.lane.b32.xlu0 %v1966_v2, %s2404_s25  ;;  %v2473_v6 = vadd.s32 128, %v2470_v4  ;;  %v32_v7 = vand.u32 15, %v2470_v4  ;;  %vm3533_vm0 = vcmp.lt.s32.totalorder %v2470_v4, 1  ;;  %vm3532_vm1 = vcmp.lt.s32.totalorder %v2470_v4, 127  ;;  %206 = vmatpush.msra.mxu2 %v187_v36  ;;  %v201_v54 = vld [vmem:[%s3524_s2 + $0xe0] sm:$0xff]  ;;  %v184_v59 = vld [vmem:[%s3524_s2 + $0x58] sm:$0xff] }
   0x5   :  { %v30_v30 = vshra.s32 %v2470_v4, 4  ;;  %vm3531_vm6 = vcmp.lt.s32.totalorder %v2470_v4, 16  ;;  %vm3530_vm7 = vcmp.lt.s32.totalorder %v2470_v4, 112  ;;  %226 = vmatpush.msra.mxu3 %v203_v38  ;;  %v183_v3 = vld [vmem:[%s3524_s2 + $0x50] sm:$0xff]  ;;  %s2409_s7 = smov 63   ;;  %s2410_s8 = smov 72  }
   0x6   :  { %v33_v8 = vand.u32 15, %v2473_v6  ;;  %vm2479_vm2 = vcmp.eq.s32.totalorder %v32_v7, 15  ;;  %vm2487_vm4 = vcmp.eq.s32.totalorder %v32_v7, 0  ;;  %v31_v31 = vshra.s32 %v2473_v6, 4  ;;  %207 = vmatpush.msra.mxu2 %v186_v40  ;;  %v180_v40 = vld [vmem:[%s3524_s2 + $0x38] sm:$0xff]  ;;  %s2411_s9 = smov 56  }
   0x7   :  { %v3560_v12 = vsel %vm2479_vm2, 4294967295, %v3559_v12  ;;  %v3564_v16 = vsel %vm2487_vm4, 4294967295, %v3563_v16  ;;  %vm2554_vm8 = vcmp.eq.s32.totalorder %v30_v30, 15  ;;  %227 = vmatpush.msra.mxu3 %v202_v41  ;;  %v196_v41 = vld [vmem:[%s3524_s2 + $0xb8] sm:$0xff]  ;;  %vm2670_vm11 = vcmp.eq.s32.totalorder %v30_v30, 0  ;;  %s2412_s10 = smov 8  }
   0x8   :  { %vm2483_vm3 = vcmp.eq.s32.totalorder %v33_v8, 15  ;;  %vm2491_vm5 = vcmp.eq.s32.totalorder %v33_v8, 0  ;;  %v3568_v45 = vsel %vm2554_vm8, 4294967295, %v3567_v45  ;;  %vm2564_vm9 = vcmp.eq.s32.totalorder %v31_v31, 15  ;;  %208 = vmatpush.msra.mxu2 %v185_v50  ;;  %v195_v50 = vld [vmem:[%s3524_s2 + $0xb0] sm:$0xff]  ;;  %s2413_s11 = smov 120  }
   0x9   :  { %v3562_v13 = vsel %vm2483_vm3, 4294967295, %v3561_v13  ;;  %v3566_v17 = vsel %vm2491_vm5, 4294967295, %v3565_v17  ;;  %v3570_v49 = vsel %vm2564_vm9, 4294967295, %v3569_v49  ;;  %228 = vmatpush.msra.mxu3 %v201_v54  ;;  %vm2676_vm12 = vcmp.eq.s32.totalorder %v31_v31, 0  ;;  %s2415_s18 = smov 116   ;;  %s2416_s19 = smov 4  }
   0xa   :  { %209 = vmatpush.msra.mxu2 %v184_v59  ;;  %v174_v59 = vld [vmem:[%s3524_s2 + $0x8] sm:$0xff]  ;;  %s2417_s20 = smov 15   ;;  %s2418_s21 = smov 12  }
   0xb   :  { %s2419_s22 = smov 124  }
   0xc   :  { %1972 = vrot.lane.b32.xlu0 %v1966_v2, %s2405_s26  ;;  %210 = vmatpush.msra.mxu2 %v183_v3 }
  0x14   :  { %1997 = vrot.lane.b32.xlu0 %v1966_v2, %s2406_s27 }
  0x76   :  { %v1968_v5 = vpop.permute.xlu0 %1967 }
  0x77   :  { %v1970_v9 = vunpack.i.h.bf16 %v1968_v5  ;;  %v1969_v10 = vunpack.i.l.bf16 %v1968_v5 }
  0x79   :  { %v39_v18 = vsel %vm3533_vm0, %v1969_v10, %v1970_v9  ;;  %v40_v19 = vsel %vm3533_vm0, %v1970_v9, %v1969_v10  ;;  %vm3539_vm0 = vcmask 64512  }
  0x7e   :  { %v1973_v11 = vpop.permute.xlu0 %1972 }
  0x7f   :  { %v1975_v14 = vunpack.i.h.bf16 %v1973_v11  ;;  %v1974_v15 = vunpack.i.l.bf16 %v1973_v11  ;;  %v199_v11 = vld [vmem:[%s3524_s2 + $0xd0] sm:$0xff] }
  0x81   :  { %v46_v20 = vsel %vm3532_vm1, %v1974_v15, %v1975_v14  ;;  %v47_v21 = vsel %vm3532_vm1, %v1975_v14, %v1974_v15  ;;  %v182_v14 = vld [vmem:[%s3524_s2 + $0x48] sm:$0xff] }
  0x82   :  { %v2505_v22 = vsel %vm2479_vm2, %v40_v19, %v46_v20  ;;  %v2509_v23 = vsel %vm2483_vm3, %v39_v18, %v47_v21  ;;  %v2513_v24 = vsel %vm2487_vm4, %v46_v20, %v40_v19  ;;  %v2517_v25 = vsel %vm2491_vm5, %v47_v21, %v39_v18  ;;  %211 = vmatpush.msra.mxu2 %v182_v14 }
  0x83   :  { %v1976_v26 = vpack.i.bf16 %v2509_v23, %v2505_v22  ;;  %v1986_v27 = vpack.i.bf16 %v2517_v25, %v2513_v24 }
  0x85   :  { %1977 = vrot.lane.b32.xlu1 %v1976_v26, %s2406_s27  ;;  %1987 = vrot.lane.b32.xlu2 %v1986_v27, %s2406_s27 }
  0x86   :  { %v1998_v37 = vpop.permute.xlu0 %1997 }
  0x87   :  { %v2000_v46 = vunpack.i.h.bf16 %v1998_v37  ;;  %v1999_v47 = vunpack.i.l.bf16 %v1998_v37 }
  0x89   :  { %v2613_v10 = vsel %vm3531_vm6, %v2000_v46, %v1999_v47  ;;  %v98_v20 = vsel %vm3531_vm6, %v1999_v47, %v2000_v46  ;;  %v3571_v46 = vmov 0  ;;  %v3573_v47 = vmov 0 }
  0x8a   :  { %v3572_v46 = vsel %vm2670_vm11, 4294967295, %v3571_v46  ;;  %v3574_v47 = vsel %vm2676_vm12, 4294967295, %v3573_v47 }
  0x8d   :  { %1982 = vrot.lane.b32.xlu1 %v1976_v26, %s2407_s0  ;;  %1992 = vrot.lane.b32.xlu2 %v1986_v27, %s2407_s0  ;;  %v198_v26 = vld [vmem:[%s3524_s2 + $0xc8] sm:$0xff] }
  0x95   :  { %2002 = vrot.lane.b32.xlu1 %v1966_v2, %s2407_s0  ;;  %v200_v2 = vld [vmem:[%s3524_s2 + $0xd8] sm:$0xff] }
  0x96   :  { %229 = vmatpush.msra.mxu3 %v200_v2 }
  0x98   :  { %230 = vmatpush.msra.mxu3 %v199_v11 }
  0x9a   :  { %231 = vmatpush.msra.mxu3 %v198_v26 }
  0xdf   :  { %v2528_v28 = vpop.permute.xlu2 %1987 }
  0xe0   :  { %v1990_v62 = vunpack.i.h.bf16 %v2528_v28  ;;  %v1989_v63 = vunpack.i.l.bf16 %v2528_v28 }
  0xe2   :  { %v70_v21 = vsel %vm3531_vm6, %v1990_v62, %v1989_v63  ;;  %v69_v28 = vsel %vm3531_vm6, %v1989_v63, %v1990_v62  ;;  %v173_v62 = vld [vmem:[%s3524_s2] sm:$0xff] }
  0xe3   :  { %v189_v63 = vld [vmem:[%s3524_s2 + $0x80] sm:$0xff] }
  0xe7   :  { %v1993_v42 = vpop.permute.xlu2 %1992 }
  0xe8   :  { %v1995_v55 = vunpack.i.h.bf16 %v1993_v42  ;;  %v1994_v56 = vunpack.i.l.bf16 %v1993_v42  ;;  %v179_v42 = vld [vmem:[%s3524_s2 + $0x30] sm:$0xff] }
  0xea   :  { %v2609_v9 = vsel %vm3530_vm7, %v1994_v56, %v1995_v55  ;;  %v2623_v19 = vsel %vm3530_vm7, %v1995_v55, %v1994_v56 }
  0xeb   :  { %v93_v35 = vsel %vm2564_vm9, %v69_v28, %v2623_v19  ;;  %v84_v54 = vsel %vm2670_vm11, %v2609_v9, %v70_v21  ;;  %v85_v55 = vsel %vm2676_vm12, %v2623_v19, %v69_v28 }
  0xf7   :  { %v1978_v29 = vpop.permute.xlu1 %1977 }
  0xf8   :  { %v1980_v32 = vunpack.i.h.bf16 %v1978_v29  ;;  %v1979_v33 = vunpack.i.l.bf16 %v1978_v29 }
  0xfa   :  { %v2560_v48 = vsel %vm3531_vm6, %v1980_v32, %v1979_v33  ;;  %v2577_v52 = vsel %vm3531_vm6, %v1979_v33, %v1980_v32  ;;  %v181_v32 = vld [vmem:[%s3524_s2 + $0x40] sm:$0xff]  ;;  %v92_v33 = vsel %vm2554_vm8, %v70_v21, %v2609_v9 }
  0xfb   :  { %212 = vmatpush.msra.mxu2 %v181_v32 }
  0xfd   :  { %213 = vmatpush.msra.mxu2 %v180_v40 }
  0xff   :  { %v1983_v39 = vpop.permute.xlu1 %1982  ;;  %214 = vmatpush.msra.mxu2 %v179_v42 }
 0x100   :  { %v1985_v43 = vunpack.i.h.bf16 %v1983_v39  ;;  %v1984_v44 = vunpack.i.l.bf16 %v1983_v39  ;;  %v197_v39 = vld [vmem:[%s3524_s2 + $0xc0] sm:$0xff] }
 0x101   :  { %232 = vmatpush.msra.mxu3 %v197_v39 }
 0x102   :  { %v2573_v51 = vsel %vm3530_vm7, %v1984_v44, %v1985_v43  ;;  %v2581_v53 = vsel %vm3530_vm7, %v1985_v43, %v1984_v44  ;;  %v130_v43 = vpack.c.bf16 %v2505_v22, %v2458_v0  ;;  %v131_v44 = vpack.c.bf16 %v2509_v23, %v2463_v1  ;;  %v178_v0 = vld [vmem:[%s3524_s2 + $0x28] sm:$0xff]  ;;  %v177_v23 = vld [vmem:[%s3524_s2 + $0x20] sm:$0xff] }
 0x103   :  { %v124_v57 = vsel %vm2554_vm8, %v2560_v48, %v2573_v51  ;;  %v125_v58 = vsel %vm2564_vm9, %v2577_v52, %v2581_v53  ;;  %v122_v1 = vsel %vm2670_vm11, %v2573_v51, %v2560_v48  ;;  %v123_v6 = vsel %vm2676_vm12, %v2581_v53, %v2577_v52  ;;  %233 = vmatpush.msra.mxu3 %v196_v41  ;;  %v194_v22 = vld [vmem:[%s3524_s2 + $0xa8] sm:$0xff]  ;;  %v193_v48 = vld [vmem:[%s3524_s2 + $0xa0] sm:$0xff]  ;;  %v176_v51 = vld [vmem:[%s3524_s2 + $0x18] sm:$0xff] }
 0x104   :  { %v134_v60 = vpack.c.bf16 %v124_v57, %v124_v57  ;;  %v135_v61 = vpack.c.bf16 %v125_v58, %v125_v58  ;;  %215 = vmatpush.msra.mxu2 %v178_v0  ;;  %v128_v30 = vpack.c.bf16 %v2513_v24, %v122_v1  ;;  %v129_v31 = vpack.c.bf16 %v2517_v25, %v123_v6  ;;  %v192_v24 = vld [vmem:[%s3524_s2 + $0x98] sm:$0xff]  ;;  %v175_v25 = vld [vmem:[%s3524_s2 + $0x10] sm:$0xff] }
 0x105   :  { %234 = vmatpush.msra.mxu3 %v195_v50  ;;  %v191_v58 = vld [vmem:[%s3524_s2 + $0x90] sm:$0xff]  ;;  %v275_v0 = vand.u32 7, %v2470_v4 }
 0x106   :  { %v142_v5 = vsel %vm3536_vm10, %v134_v60, 0  ;;  %v145_v7 = vsel %vm3536_vm10, %v135_v61, 0  ;;  %216 = vmatpush.msra.mxu2 %v177_v23  ;;  %v26_v60 = vld [vmem:[%s3525_s1] sm:$0xf]  ;;  %v190_v61 = vld [vmem:[%s3524_s2 + $0x88] sm:$0xff]  ;;  %s2408_s2 = smov 65  }
 0x107   :  { %v2003_v8 = vpop.permute.xlu1 %2002  ;;  %150 = vmatpush.bf16.msra.mxu0 %v142_v5  ;;  %163 = vmatpush.bf16.msra.mxu1 %v145_v7  ;;  %vm2764_vm1 = vcmp.eq.s32.totalorder %v275_v0, 7 }
 0x108   :  { %v2005_v15 = vunpack.i.h.bf16 %v2003_v8  ;;  %v2004_v18 = vunpack.i.l.bf16 %v2003_v8  ;;  %235 = vmatpush.msra.mxu3 %v194_v22  ;;  %217 = vmatpush.msra.mxu2 %v176_v51 }
 0x10a   :  { %v104_v27 = vsel %vm3530_vm7, %v2004_v18, %v2005_v15  ;;  %v105_v29 = vsel %vm3530_vm7, %v2005_v15, %v2004_v18  ;;  %236 = vmatpush.msra.mxu3 %v193_v48  ;;  %218 = vmatpush.msra.mxu2 %v175_v25  ;;  %v274_v25 = vshra.s32 %v2470_v4, 3 }
 0x10b   :  { %v108_v34 = vsel %vm2554_vm8, %v2613_v10, %v104_v27  ;;  %v109_v36 = vsel %vm2564_vm9, %v98_v20, %v105_v29  ;;  %v106_v52 = vsel %vm2670_vm11, %v104_v27, %v2613_v10  ;;  %v107_v53 = vsel %vm2676_vm12, %v105_v29, %v98_v20 }
 0x10c   :  { %v132_v37 = vpack.c.bf16 %v108_v34, %v92_v33  ;;  %v133_v38 = vpack.c.bf16 %v109_v36, %v93_v35  ;;  %v126_v56 = vpack.c.bf16 %v106_v52, %v84_v54  ;;  %v127_v57 = vpack.c.bf16 %v107_v53, %v85_v55  ;;  %237 = vmatpush.msra.mxu3 %v192_v24 }
 0x10d   :  { %219 = vmatpush.msra.mxu2 %v174_v59  ;;  %vm3607_vm9 = vcmask 97280  }
 0x10e   :  { %151 = vmatpush.bf16.msra.mxu0 %v132_v37  ;;  %164 = vmatpush.bf16.msra.mxu1 %v133_v38 }
 0x10f   :  { %238 = vmatpush.msra.mxu3 %v191_v58  ;;  %220 = vmatpush.msra.mxu2 %v173_v62 }
 0x111   :  { %239 = vmatpush.msra.mxu3 %v190_v61 }
 0x112   :  { %152 = vmatpush.bf16.msra.mxu0 %v130_v43  ;;  %165 = vmatpush.bf16.msra.mxu1 %v131_v44 }
 0x113   :  { %240 = vmatpush.msra.mxu3 %v189_v63 }
 0x116   :  { %153 = vmatpush.bf16.msra.mxu0 %v128_v30  ;;  %166 = vmatpush.bf16.msra.mxu1 %v129_v31 }
 0x11a   :  { %154 = vmatpush.bf16.msra.mxu0 %v126_v56  ;;  %167 = vmatpush.bf16.msra.mxu1 %v127_v57 }
 0x11d   :  { %1918 = vmatmul.msk.bf16.vlgmr.msra.gmra.mxu0 %vm3537_vm13, %v26_v60  ;;  %1919 = vmatmul.msk.bf16.vlgmr.msra.gmra.mxu1 %vm3537_vm13, %v26_v60 }
 0x19a   :  { %v156_v2 = vpop.f32.mrf.mxu0  ;;  %v169_v3 = vpop.f32.mrf.mxu1 }
 0x19b   :  { %221 = vmatmul.f32.vlgmr.msra.gmra.mxu2 %v156_v2  ;;  %241 = vmatmul.f32.vlgmr.msra.gmra.mxu3 %v169_v3 }
 0x1a2   :  { %v158_v5 = vpop.f32.mrf.mxu0  ;;  %v171_v7 = vpop.f32.mrf.mxu1 }
 0x21e   :  { %v222_v8 = vpop.f32.mrf.mxu2  ;;  %v242_v9 = vpop.f32.mrf.mxu3 }
 0x21f   :  { %v243_v10 = vadd.f32 %v242_v9, %v222_v8 }
 0x221   :  { %v246_v11 = vsel %vm3540_vm14, %v243_v10, 0.0  ;;  %v250_v14 = vmul.f32 %v243_v10, %v243_v10 }
 0x222   :  { %247 = vadd.xlane.f32.xlu2 %v246_v11 }
 0x223   :  { %v251_v15 = vsel %vm3540_vm14, %v250_v14, 0.0 }
 0x224   :  { %252 = vadd.xlane.f32.xlu0 %v251_v15 }
 0x295   :  { %v248_v18 = vpop.xlane.xlu2 %247 }
 0x296   :  { %v249_v19 = vmul.f32 0.015625, %v248_v18 }
 0x297   :  { %v253_v20 = vpop.xlane.xlu0 %252 }
 0x298   :  { %v255_v21 = vmul.f32 %v249_v19, %v249_v19  ;;  %v254_v26 = vmul.f32 0.015625, %v253_v20 }
 0x29a   :  { %v256_v27 = vsub.f32 %v254_v26, %v255_v21 }
 0x29c   :  { %v257_v28 = vadd.f32 1e-05, %v256_v27 }
 0x29e   :  { %2366 = vrsqrt.f32 %v257_v28  ;;  %vm264_vm7 = vweird.f32 %v257_v28 }
 0x2a4   :  { %v2367_v29 = vpop.eup %2366 }
 0x2a5   :  { %v259_v32 = vmul.f32 %v2367_v29, %v257_v28  ;;  %vm265_vm15 = vweird.f32 %v2367_v29  ;;  %v3581_v28 = vmov 0 }
 0x2a6   :  { %vm266_vm6 = vmor %vm264_vm7, %vm265_vm15  ;;  %vm3534_vm7 = vcmask 515072   ;;  %vm2760_vm15 = vcmp.eq.s32.totalorder %v275_v0, 0 }
 0x2a7   :  { %v260_v33 = vmul.f32 %v2367_v29, %v259_v32 }
 0x2a9   :  { %v261_v34 = vmul.f32 0.5, %v260_v33 }
 0x2ab   :  { %v262_v35 = vsub.f32 1.5, %v261_v34 }
 0x2ad   :  { %v263_v36 = vmul.f32 %v2367_v29, %v262_v35 }
 0x2af   :  { %v267_v37 = vsel %vm266_vm6, %v2367_v29, %v263_v36  ;;  %vm3535_vm6 = vcmask 7168  }
 0x2b0   :  { %v268_v38 = vmul.f32 %v267_v37, %v243_v10  ;;  %v269_v39 = vmul.f32 %v267_v37, %v249_v19  ;;  %v273_v37 = vld [vmem:[%s3525_s1 + $0x10] sm:$0xf] }
 0x2b2   :  { %v270_v40 = vsub.f32 %v268_v38, %v269_v39 }
 0x2b4   :  { %v271_v41 = vmul.f32 0.01, %v270_v40 }
 0x2b6   :  { %v2747_v42 = vmax.f32 %v270_v40, %v271_v41 }
 0x2b8   :  { %277 = vrot.lane.b32.xlu1 %v2747_v42, %s2408_s2 }
 0x2c0   :  { %280 = vrot.lane.b32.xlu1 %v2747_v42, %s2404_s25 }
 0x2c8   :  { %285 = vrot.lane.b32.xlu1 %v2747_v42, %s2405_s26 }
 0x2d0   :  { %288 = vrot.lane.b32.xlu1 %v2747_v42, %s2409_s7 }
 0x2d8   :  { %326 = vrot.lane.b32.xlu1 %v2747_v42, %s2410_s8 }
 0x32a   :  { %v278_v43 = vpop.permute.xlu1 %277 }
 0x332   :  { %v281_v44 = vpop.permute.xlu1 %280 }
 0x333   :  { %v284_v23 = vsel %vm3535_vm6, %v278_v43, %v281_v44  ;;  %vm3538_vm6 = vcmask 457728  }
 0x33a   :  { %v286_v50 = vpop.permute.xlu1 %285 }
 0x342   :  { %v289_v22 = vpop.permute.xlu1 %288 }
 0x343   :  { %v292_v30 = vsel %vm3534_vm7, %v286_v50, %v289_v22  ;;  %vm2785_vm7 = vcmp.eq.s32.totalorder %v274_v25, 7 }
 0x344   :  { %v296_v31 = vsel %vm2760_vm15, %v292_v30, %v284_v23  ;;  %v300_v48 = vsel %vm2764_vm1, %v284_v23, %v292_v30 }
 0x345   :  { %v2021_v51 = vpack.i.bf16 %v296_v31, %v300_v48  ;;  %v361_v29 = vpack.c.bf16 %v300_v48, %v2747_v42 }
 0x347   :  { %2022 = vrot.lane.b32.xlu0 %v2021_v51, %s2411_s9  ;;  %2012 = vrot.lane.b32.xlu2 %v2021_v51, %s2412_s10 }
 0x348   :  { %2007 = vrot.lane.b32.xlu1 %v2021_v51, %s2410_s8 }
 0x34a   :  { %v327_v52 = vpop.permute.xlu1 %326 }
 0x34f   :  { %336 = vrot.lane.b32.xlu0 %v2747_v42, %s2411_s9  ;;  %333 = vrot.lane.b32.xlu2 %v2747_v42, %s2413_s11 }
 0x350   :  { %2017 = vrot.lane.b32.xlu1 %v2021_v51, %s2413_s11 }
 0x358   :  { %329 = vrot.lane.b32.xlu1 %v2747_v42, %s2412_s10 }
 0x3a1   :  { %v2013_v54 = vpop.permute.xlu2 %2012 }
 0x3a2   :  { %v2014_v57 = vunpack.i.l.bf16 %v2013_v54  ;;  %v2015_v9 = vunpack.i.h.bf16 %v2013_v54 }
 0x3a9   :  { %v334_v14 = vpop.permute.xlu2 %333 }
 0x3b9   :  { %v2023_v24 = vpop.permute.xlu0 %2022 }
 0x3ba   :  { %v2008_v53 = vpop.permute.xlu1 %2007  ;;  %v2024_v58 = vunpack.i.l.bf16 %v2023_v24  ;;  %v2025_v3 = vunpack.i.h.bf16 %v2023_v24 }
 0x3bb   :  { %v2009_v55 = vunpack.i.l.bf16 %v2008_v53  ;;  %v2010_v5 = vunpack.i.h.bf16 %v2008_v53 }
 0x3bd   :  { %v349_v62 = vsel %vm3539_vm0, %v2009_v55, %v2014_v57  ;;  %v309_v20 = vsel %vm3539_vm0, %v2010_v5, %v2015_v9 }
 0x3c1   :  { %v337_v8 = vpop.permute.xlu0 %336 }
 0x3c2   :  { %v2018_v56 = vpop.permute.xlu1 %2017  ;;  %v339_v18 = vsel %vm3538_vm6, %v334_v14, %v337_v8 }
 0x3c3   :  { %v2019_v59 = vunpack.i.l.bf16 %v2018_v56  ;;  %v2020_v61 = vunpack.i.h.bf16 %v2018_v56 }
 0x3c5   :  { %v356_v63 = vsel %vm3538_vm6, %v2019_v59, %v2024_v58  ;;  %v317_v11 = vsel %vm3538_vm6, %v2020_v61, %v2025_v3 }
 0x3c6   :  { %v358_v2 = vsel %vm2785_vm7, %v349_v62, %v356_v63  ;;  %v325_v21 = vsel %vm2785_vm7, %v309_v20, %v317_v11 }
 0x3c7   :  { %v363_v7 = vpack.c.bf16 %v358_v2, %v358_v2 }
 0x3c9   :  { %v368_v10 = vsel %vm3536_vm10, %v363_v7, 0  ;;  %vm2802_vm10 = vcmp.eq.s32.totalorder %v274_v25, 0 }
 0x3ca   :  { %v330_v15 = vpop.permute.xlu1 %329  ;;  %373 = vmatpush.bf16.msrb.mxu0 %v368_v10  ;;  %v3582_v28 = vsel %vm2802_vm10, 4294967295, %v3581_v28  ;;  %v357_v32 = vsel %vm2802_vm10, %v356_v63, %v349_v62  ;;  %v321_v35 = vsel %vm2802_vm10, %v317_v11, %v309_v20 }
 0x3cb   :  { %v332_v19 = vsel %vm3539_vm0, %v327_v52, %v330_v15  ;;  %v360_v33 = vpack.c.bf16 %v296_v31, %v357_v32  ;;  %v561_v32 = vld [vmem:[%s3526_s3 + $0x20] sm:$0xff] }
 0x3cc   :  { %v341_v26 = vsel %vm2785_vm7, %v332_v19, %v339_v18  ;;  %v340_v34 = vsel %vm2802_vm10, %v339_v18, %v332_v19  ;;  %v564_v18 = vld [vmem:[%s3526_s3 + $0x38] sm:$0xff]  ;;  %v563_v19 = vld [vmem:[%s3526_s3 + $0x30] sm:$0xff] }
 0x3cd   :  { %v362_v27 = vpack.c.bf16 %v341_v26, %v325_v21  ;;  %v359_v36 = vpack.c.bf16 %v340_v34, %v321_v35  ;;  %579 = vmatpush.msrb.mxu3 %v564_v18  ;;  %v562_v21 = vld [vmem:[%s3526_s3 + $0x28] sm:$0xff]  ;;  %v560_v35 = vld [vmem:[%s3526_s3 + $0x18] sm:$0xff] }
 0x3cf   :  { %374 = vmatpush.bf16.msrb.mxu0 %v362_v27  ;;  %580 = vmatpush.msrb.mxu3 %v563_v19 }
 0x3d1   :  { %581 = vmatpush.msrb.mxu3 %v562_v21 }
 0x3d3   :  { %375 = vmatpush.bf16.msrb.mxu0 %v361_v29  ;;  %582 = vmatpush.msrb.mxu3 %v561_v32 }
 0x3d5   :  { %583 = vmatpush.msrb.mxu3 %v560_v35 }
 0x3d7   :  { %376 = vmatpush.bf16.msrb.mxu0 %v360_v33 }
 0x3db   :  { %377 = vmatpush.bf16.msrb.mxu0 %v359_v36 }
 0x3de   :  { %1920 = vmatmul.msk.bf16.vlgmr.msrb.gmra.mxu0 %vm3537_vm13, %v273_v37 }
 0x45b   :  { %v379_v38 = vpop.f32.mrf.mxu0 }
 0x45c   :  { %v383_v39 = vsel %vm3540_vm14, %v379_v38, 0.0  ;;  %v387_v40 = vmul.f32 %v379_v38, %v379_v38 }
 0x45d   :  { %384 = vadd.xlane.f32.xlu1 %v383_v39 }
 0x45e   :  { %v388_v41 = vsel %vm3540_vm14, %v387_v40, 0.0  ;;  %vm3583_vm14 = vcmask 1043456   ;;  %v559_v40 = vld [vmem:[%s3526_s3 + $0x10] sm:$0xff] }
 0x45f   :  { %389 = vadd.xlane.f32.xlu2 %v388_v41  ;;  %584 = vmatpush.msrb.mxu3 %v559_v40 }
 0x463   :  { %v381_v42 = vpop.f32.mrf.mxu0 }
 0x4d0   :  { %v385_v43 = vpop.xlane.xlu1 %384 }
 0x4d1   :  { %v386_v44 = vmul.f32 0.015625, %v385_v43 }
 0x4d2   :  { %v390_v50 = vpop.xlane.xlu2 %389 }
 0x4d3   :  { %v392_v0 = vmul.f32 %v386_v44, %v386_v44  ;;  %v391_v22 = vmul.f32 0.015625, %v390_v50 }
 0x4d5   :  { %v393_v23 = vsub.f32 %v391_v22, %v392_v0  ;;  %v558_v0 = vld [vmem:[%s3526_s3 + $0x8] sm:$0xff] }
 0x4d6   :  { %585 = vmatpush.msrb.mxu3 %v558_v0 }
 0x4d7   :  { %v394_v30 = vadd.f32 1e-05, %v393_v23 }
 0x4d9   :  { %2368 = vrsqrt.f32 %v394_v30  ;;  %vm401_vm6 = vweird.f32 %v394_v30 }
 0x4df   :  { %v2369_v31 = vpop.eup %2368 }
 0x4e0   :  { %v396_v48 = vmul.f32 %v2369_v31, %v394_v30  ;;  %vm402_vm13 = vweird.f32 %v2369_v31 }
 0x4e1   :  { %vm403_vm0 = vmor %vm401_vm6, %vm402_vm13  ;;  %vm3585_vm13 = vcmask 515072   ;;  %vm3587_vm6 = vcmask 457728  }
 0x4e2   :  { %v397_v51 = vmul.f32 %v2369_v31, %v396_v48 }
 0x4e4   :  { %v398_v52 = vmul.f32 0.5, %v397_v51 }
 0x4e6   :  { %v399_v53 = vsub.f32 1.5, %v398_v52 }
 0x4e8   :  { %v400_v24 = vmul.f32 %v2369_v31, %v399_v53 }
 0x4ea   :  { %v404_v25 = vsel %vm403_vm0, %v2369_v31, %v400_v24  ;;  %vm3584_vm0 = vcmask 7168  }
 0x4eb   :  { %v405_v54 = vmul.f32 %v404_v25, %v379_v38  ;;  %v406_v55 = vmul.f32 %v404_v25, %v386_v44 }
 0x4ed   :  { %v407_v56 = vsub.f32 %v405_v54, %v406_v55 }
 0x4ef   :  { %v408_v57 = vmul.f32 0.01, %v407_v56 }
 0x4f1   :  { %v2819_v58 = vmax.f32 %v407_v56, %v408_v57 }
 0x4f3   :  { %461 = vrot.lane.b32.xlu0 %v2819_v58, %s2408_s2  ;;  %v411_v59 = vpack.c.bf16 %v2819_v58, %v2819_v58 }
 0x4f5   :  { %v416_v61 = vsel %vm3583_vm14, %v411_v59, 0  ;;  %vm3586_vm14 = vcmask 64512   ;;  %v1924_v59 = vld [vmem:[%s3525_s1 + $0x20] sm:$0xf] }
 0x4f6   :  { %425 = vmatpush.bf16.msrb.mxu1 %v416_v61  ;;  %v1947_v61 = vld [vmem:[%s3525_s1 + $0x24] sm:$0xf0] }
 0x4fb   :  { %464 = vrot.lane.b32.xlu0 %v2819_v58, %s2404_s25 }
 0x503   :  { %468 = vrot.lane.b32.xlu0 %v2819_v58, %s2405_s26 }
 0x50b   :  { %471 = vrot.lane.b32.xlu0 %v2819_v58, %s2409_s7 }
 0x513   :  { %494 = vrot.lane.b32.xlu0 %v2819_v58, %s2410_s8 }
 0x565   :  { %v462_v62 = vpop.permute.xlu0 %461 }
 0x56d   :  { %v465_v63 = vpop.permute.xlu0 %464 }
 0x56e   :  { %v467_v5 = vsel %vm3584_vm0, %v462_v62, %v465_v63  ;;  %vm3588_vm0 = vcmask 1043456   ;;  %v1925_v63 = vor.u32 %v1947_v61, %v1924_v59 }
 0x575   :  { %v469_v2 = vpop.permute.xlu0 %468 }
 0x57d   :  { %v472_v3 = vpop.permute.xlu0 %471 }
 0x57e   :  { %v474_v7 = vsel %vm3585_vm13, %v469_v2, %v472_v3  ;;  %vm3589_vm13 = vmmov %vm3587_vm6  ;;  %v557_v2 = vld [vmem:[%s3526_s3] sm:$0xff]  ;;  %s2414_s3 = smov 113  }
 0x57f   :  { %v475_v8 = vsel %vm2760_vm15, %v474_v7, %v467_v5  ;;  %v476_v9 = vsel %vm2764_vm1, %v467_v5, %v474_v7  ;;  %586 = vmatpush.msrb.mxu3 %v557_v2 }
 0x580   :  { %v2036_v10 = vpack.i.bf16 %v475_v8, %v476_v9  ;;  %v529_v54 = vpack.c.bf16 %v476_v9, %v2819_v58 }
 0x582   :  { %2037 = vrot.lane.b32.xlu2 %v2036_v10, %s2413_s11  ;;  %2032 = vrot.lane.b32.xlu1 %v2036_v10, %s2412_s10 }
 0x583   :  { %2027 = vrot.lane.b32.xlu0 %v2036_v10, %s2410_s8 }
 0x585   :  { %v495_v11 = vpop.permute.xlu0 %494 }
 0x58a   :  { %501 = vrot.lane.b32.xlu2 %v2819_v58, %s2413_s11  ;;  %504 = vrot.lane.b32.xlu1 %v2819_v58, %s2411_s9 }
 0x58b   :  { %2042 = vrot.lane.b32.xlu0 %v2036_v10, %s2411_s9 }
 0x593   :  { %497 = vrot.lane.b32.xlu0 %v2819_v58, %s2412_s10 }
 0x5dc   :  { %v2038_v20 = vpop.permute.xlu2 %2037 }
 0x5dd   :  { %v2039_v33 = vunpack.i.l.bf16 %v2038_v20  ;;  %v2040_v41 = vunpack.i.h.bf16 %v2038_v20 }
 0x5e4   :  { %v502_v30 = vpop.permute.xlu2 %501 }
 0x5f4   :  { %v2033_v15 = vpop.permute.xlu1 %2032 }
 0x5f5   :  { %v2028_v14 = vpop.permute.xlu0 %2027  ;;  %v2034_v26 = vunpack.i.l.bf16 %v2033_v15  ;;  %v2035_v42 = vunpack.i.h.bf16 %v2033_v15 }
 0x5f6   :  { %v2029_v27 = vunpack.i.l.bf16 %v2028_v14  ;;  %v2030_v43 = vunpack.i.h.bf16 %v2028_v14 }
 0x5f8   :  { %v517_v37 = vsel %vm3586_vm14, %v2029_v27, %v2034_v26  ;;  %vm3590_vm14 = vmmov %vm3587_vm6 }
 0x5fc   :  { %v505_v50 = vpop.permute.xlu1 %504 }
 0x5fd   :  { %v2043_v29 = vpop.permute.xlu0 %2042  ;;  %v507_v48 = vsel %vm3590_vm14, %v502_v30, %v505_v50  ;;  %vm3543_vm14 = vcmask 130048  }
 0x5fe   :  { %v2044_v34 = vunpack.i.l.bf16 %v2043_v29  ;;  %v2045_v36 = vunpack.i.h.bf16 %v2043_v29 }
 0x600   :  { %v524_v38 = vsel %vm3587_vm6, %v2039_v33, %v2044_v34  ;;  %v491_v23 = vsel %vm3589_vm13, %v2040_v41, %v2045_v36  ;;  %vm3591_vm6 = vcmask 64512  }
 0x601   :  { %v526_v39 = vsel %vm2785_vm7, %v517_v37, %v524_v38  ;;  %vm3592_vm12 = vmmov %vm3591_vm6  ;;  %v525_v55 = vsel %vm2802_vm10, %v524_v38, %v517_v37 }
 0x602   :  { %v531_v44 = vpack.c.bf16 %v526_v39, %v526_v39  ;;  %v484_v52 = vsel %vm3592_vm12, %v2030_v43, %v2035_v42  ;;  %v528_v56 = vpack.c.bf16 %v475_v8, %v525_v55  ;;  %vm3593_vm12 = vcmask 588800  }
 0x603   :  { %v493_v53 = vsel %vm2785_vm7, %v484_v52, %v491_v23  ;;  %v492_v58 = vsel %vm2802_vm10, %v491_v23, %v484_v52 }
 0x604   :  { %v541_v22 = vsel %vm3588_vm0, %v531_v44, 0  ;;  %vm3594_vm0 = vcmask 523264  }
 0x605   :  { %v498_v31 = vpop.permute.xlu0 %497  ;;  %546 = vmatpush.bf16.msrb.mxu2 %v541_v22  ;;  %vm3595_vm13 = vmmov %vm3594_vm0 }
 0x606   :  { %v500_v51 = vsel %vm3591_vm6, %v495_v11, %v498_v31 }
 0x607   :  { %v509_v24 = vsel %vm2785_vm7, %v500_v51, %v507_v48  ;;  %v508_v57 = vsel %vm2802_vm10, %v507_v48, %v500_v51 }
 0x608   :  { %v530_v25 = vpack.c.bf16 %v509_v24, %v493_v53  ;;  %v527_v62 = vpack.c.bf16 %v508_v57, %v492_v58 }
 0x60a   :  { %547 = vmatpush.bf16.msrb.mxu2 %v530_v25 }
 0x60e   :  { %548 = vmatpush.bf16.msrb.mxu2 %v529_v54 }
 0x612   :  { %549 = vmatpush.bf16.msrb.mxu2 %v528_v56 }
 0x616   :  { %550 = vmatpush.bf16.msrb.mxu2 %v527_v62 }
 0x619   :  { %1926 = vmatmul.msk.bf16.vlgmr.msrb.gmra.mxu2 %vm3593_vm12, %v1925_v63 }
 0x69c   :  { %v552_v3 = vpop.f32.mrf.mxu2 }
 0x69d   :  { %1927 = vmatmul.msk.f32.vlgmr.msrb.gmra.mxu3 %vm3594_vm0, %v552_v3  ;;  %v652_v3 = vand.u32 3, %v2470_v4 }
 0x6a4   :  { %v554_v5 = vpop.f32.mrf.mxu2 }
 0x6a5   :  { %1928 = vmatmul.msk.f32.gmra.mxu3 %vm3595_vm13, %v554_v5 }
 0x720   :  { %v588_v7 = vpop.f32.mrf.mxu3 }
 0x721   :  { %v595_v8 = vsel %vm3543_vm14, %v588_v7, 0.0  ;;  %v603_v9 = vmul.f32 %v588_v7, %v588_v7 }
 0x722   :  { %596 = vadd.xlane.f32.xlu0 %v595_v8 }
 0x723   :  { %v605_v10 = vsel %vm3543_vm14, %v603_v9, 0.0 }
 0x724   :  { %606 = vadd.xlane.f32.xlu1 %v605_v10 }
 0x728   :  { %v591_v11 = vpop.f32.mrf.mxu3 }
 0x729   :  { %v598_v14 = vsel %vm3543_vm14, %v591_v11, 0.0  ;;  %v604_v15 = vmul.f32 %v591_v11, %v591_v11 }
 0x72a   :  { %599 = vadd.xlane.f32.xlu2 %v598_v14 }
 0x72b   :  { %v608_v18 = vsel %vm3543_vm14, %v604_v15, 0.0 }
 0x72c   :  { %609 = vadd.xlane.f32.xlu0 %v608_v18 }
 0x795   :  { %v597_v19 = vpop.xlane.xlu0 %596 }
 0x796   :  { %v601_v20 = vmul.f32 0.0625, %v597_v19 }
 0x797   :  { %v607_v21 = vpop.xlane.xlu1 %606 }
 0x798   :  { %v613_v26 = vmul.f32 %v601_v20, %v601_v20  ;;  %v611_v27 = vmul.f32 0.0625, %v607_v21 }
 0x79a   :  { %v615_v29 = vsub.f32 %v611_v27, %v613_v26 }
 0x79c   :  { %v617_v32 = vadd.f32 1e-05, %v615_v29 }
 0x79d   :  { %v600_v33 = vpop.xlane.xlu2 %599 }
 0x79e   :  { %2370 = vrsqrt.f32 %v617_v32  ;;  %v602_v34 = vmul.f32 0.0625, %v600_v33  ;;  %vm625_vm12 = vweird.f32 %v617_v32 }
 0x79f   :  { %v610_v35 = vpop.xlane.xlu0 %609 }
 0x7a0   :  { %v614_v36 = vmul.f32 %v602_v34, %v602_v34  ;;  %v612_v37 = vmul.f32 0.0625, %v610_v35 }
 0x7a2   :  { %v616_v38 = vsub.f32 %v612_v37, %v614_v36 }
 0x7a4   :  { %v2371_v39 = vpop.eup %2370  ;;  %v618_v40 = vadd.f32 1e-05, %v616_v38 }
 0x7a5   :  { %v620_v41 = vmul.f32 %v2371_v39, %v617_v32  ;;  %vm626_vm6 = vweird.f32 %v2371_v39 }
 0x7a6   :  { %2372 = vrsqrt.f32 %v618_v40  ;;  %vm627_vm0 = vmor %vm625_vm12, %vm626_vm6  ;;  %vm635_vm14 = vweird.f32 %v618_v40  ;;  %vm2928_vm6 = vcmp.eq.s32.totalorder %v652_v3, 3  ;;  %vm3600_vm12 = vcmask 7168  }
 0x7a7   :  { %v621_v42 = vmul.f32 %v2371_v39, %v620_v41 }
 0x7a9   :  { %v622_v43 = vmul.f32 0.5, %v621_v42 }
 0x7ab   :  { %v623_v44 = vsub.f32 1.5, %v622_v43  ;;  %v651_v43 = vshra.s32 %v2470_v4, 2 }
 0x7ac   :  { %v2373_v50 = vpop.eup %2372 }
 0x7ad   :  { %v624_v0 = vmul.f32 %v2371_v39, %v623_v44  ;;  %v630_v22 = vmul.f32 %v2373_v50, %v618_v40  ;;  %vm636_vm13 = vweird.f32 %v2373_v50 }
 0x7ae   :  { %vm637_vm11 = vmor %vm635_vm14, %vm636_vm13  ;;  %vm2924_vm14 = vcmp.eq.s32.totalorder %v652_v3, 0  ;;  %vm3550_vm13 = vcmask 31744  }
 0x7af   :  { %v628_v23 = vsel %vm627_vm0, %v2371_v39, %v624_v0  ;;  %v631_v30 = vmul.f32 %v2373_v50, %v630_v22  ;;  %vm3601_vm0 = vmmov %vm3600_vm12 }
 0x7b0   :  { %v639_v48 = vmul.f32 %v628_v23, %v588_v7  ;;  %v641_v51 = vmul.f32 %v628_v23, %v601_v20 }
 0x7b1   :  { %v632_v31 = vmul.f32 0.5, %v631_v30 }
 0x7b2   :  { %v643_v24 = vsub.f32 %v639_v48, %v641_v51 }
 0x7b3   :  { %v633_v52 = vsub.f32 1.5, %v632_v31 }
 0x7b4   :  { %v645_v56 = vmul.f32 0.01, %v643_v24 }
 0x7b5   :  { %v634_v53 = vmul.f32 %v2373_v50, %v633_v52 }
 0x7b6   :  { %v2907_v61 = vmax.f32 %v643_v24, %v645_v56 }
 0x7b7   :  { %v638_v25 = vsel %vm637_vm11, %v2373_v50, %v634_v53  ;;  %vm3546_vm11 = vcmask 121856  }
 0x7b8   :  { %v640_v54 = vmul.f32 %v638_v25, %v591_v11  ;;  %v642_v55 = vmul.f32 %v638_v25, %v602_v34 }
 0x7ba   :  { %v644_v57 = vsub.f32 %v640_v54, %v642_v55 }
 0x7bc   :  { %v646_v59 = vmul.f32 0.01, %v644_v57 }
 0x7be   :  { %v2909_v58 = vmax.f32 %v644_v57, %v646_v59 }
 0x7c0   :  { %v2056_v62 = vpack.i.bf16 %v2909_v58, %v2907_v61  ;;  %v806_v63 = vpack.c.bf16 %v2909_v58, %v2907_v61  ;;  %v1931_v58 = vld [vmem:[%s3525_s1 + $0x30] sm:$0xf] }
 0x7c2   :  { %2057 = vrot.lane.b32.xlu0 %v2056_v62, %s2405_s26  ;;  %2052 = vrot.lane.b32.xlu1 %v2056_v62, %s2404_s25 }
 0x7c3   :  { %2047 = vrot.lane.b32.xlu2 %v2056_v62, %s2414_s3 }
 0x7ca   :  { %2067 = vrot.lane.b32.xlu0 %v2056_v62, %s2415_s18  ;;  %2072 = vrot.lane.b32.xlu1 %v2056_v62, %s2416_s19 }
 0x7cb   :  { %2062 = vrot.lane.b32.xlu2 %v2056_v62, %s2417_s20 }
 0x7d2   :  { %2082 = vrot.lane.b32.xlu0 %v2056_v62, %s2418_s21 }
 0x7d3   :  { %2077 = vrot.lane.b32.xlu2 %v2056_v62, %s2419_s22 }
 0x81d   :  { %v2048_v2 = vpop.permute.xlu2 %2047 }
 0x81e   :  { %v2050_v9 = vunpack.i.h.bf16 %v2048_v2  ;;  %v2049_v10 = vunpack.i.l.bf16 %v2048_v2 }
 0x825   :  { %v2063_v5 = vpop.permute.xlu2 %2062 }
 0x826   :  { %v2065_v11 = vunpack.i.h.bf16 %v2063_v5  ;;  %v2064_v14 = vunpack.i.l.bf16 %v2063_v5 }
 0x82d   :  { %v2078_v50 = vpop.permute.xlu2 %2077 }
 0x82e   :  { %v2080_v52 = vunpack.i.h.bf16 %v2078_v50  ;;  %v2079_v53 = vunpack.i.l.bf16 %v2078_v50 }
 0x834   :  { %v2058_v15 = vpop.permute.xlu0 %2057  ;;  %v2053_v18 = vpop.permute.xlu1 %2052 }
 0x835   :  { %v2060_v19 = vunpack.i.h.bf16 %v2058_v15  ;;  %v2059_v20 = vunpack.i.l.bf16 %v2058_v15  ;;  %v2055_v21 = vunpack.i.h.bf16 %v2053_v18  ;;  %v2054_v26 = vunpack.i.l.bf16 %v2053_v18 }
 0x837   :  { %v682_v27 = vsel %vm3546_vm11, %v2059_v20, %v2064_v14  ;;  %v683_v29 = vsel %vm3546_vm11, %v2060_v19, %v2065_v11  ;;  %v667_v32 = vsel %vm3600_vm12, %v2049_v10, %v2054_v26  ;;  %v668_v33 = vsel %vm3601_vm0, %v2050_v9, %v2055_v21  ;;  %v410_v10 = vld [vmem:[%s3525_s1 + $0x40] sm:$0xf] }
 0x838   :  { %v2938_v34 = vsel %vm2924_vm14, %v682_v27, %v667_v32  ;;  %v2942_v35 = vsel %vm2924_vm14, %v683_v29, %v668_v33  ;;  %v2946_v36 = vsel %vm2928_vm6, %v667_v32, %v682_v27  ;;  %v2950_v37 = vsel %vm2928_vm6, %v668_v33, %v683_v29 }
 0x839   :  { %v2096_v38 = vpack.i.bf16 %v2942_v35, %v2938_v34  ;;  %v807_v39 = vpack.c.bf16 %v2950_v37, %v2946_v36  ;;  %v805_v40 = vpack.c.bf16 %v2942_v35, %v2938_v34  ;;  %v2111_v44 = vpack.i.bf16 %v2950_v37, %v2946_v36 }
 0x83a   :  { %vm3547_vm12 = vcmask 97280   ;;  %vm2967_vm0 = vcmp.eq.s32.totalorder %v651_v43, 3  ;;  %vm2971_vm11 = vcmp.eq.s32.totalorder %v651_v43, 0 }
 0x83b   :  { %2097 = vrot.lane.b32.xlu0 %v2096_v38, %s2419_s22  ;;  %2092 = vrot.lane.b32.xlu2 %v2096_v38, %s2416_s19 }
 0x83c   :  { %2087 = vrot.lane.b32.xlu1 %v2096_v38, %s2415_s18  ;;  %v2068_v41 = vpop.permute.xlu0 %2067  ;;  %v2073_v42 = vpop.permute.xlu1 %2072 }
 0x83d   :  { %v2070_v0 = vunpack.i.h.bf16 %v2068_v41  ;;  %v2069_v22 = vunpack.i.l.bf16 %v2068_v41  ;;  %v2075_v23 = vunpack.i.h.bf16 %v2073_v42  ;;  %v2074_v30 = vunpack.i.l.bf16 %v2073_v42 }
 0x83f   :  { %v749_v54 = vsel %vm3550_vm13, %v2070_v0, %v2075_v23  ;;  %v748_v55 = vsel %vm3550_vm13, %v2069_v22, %v2074_v30 }
 0x843   :  { %2112 = vrot.lane.b32.xlu0 %v2111_v44, %s2416_s19  ;;  %2107 = vrot.lane.b32.xlu2 %v2111_v44, %s2415_s18 }
 0x844   :  { %2102 = vrot.lane.b32.xlu1 %v2096_v38, %s2418_s21  ;;  %v2083_v31 = vpop.permute.xlu0 %2082 }
 0x845   :  { %v2085_v24 = vunpack.i.h.bf16 %v2083_v31  ;;  %v2084_v25 = vunpack.i.l.bf16 %v2083_v31 }
 0x847   :  { %v762_v56 = vsel %vm3547_vm12, %v2079_v53, %v2084_v25  ;;  %v763_v57 = vsel %vm3547_vm12, %v2080_v52, %v2085_v24  ;;  %vm3606_vm12 = vcmask 64512  }
 0x848   :  { %v766_v59 = vsel %vm2967_vm0, %v748_v55, %v762_v56  ;;  %v767_v62 = vsel %vm2967_vm0, %v749_v54, %v763_v57  ;;  %v764_v2 = vsel %vm2971_vm11, %v762_v56, %v748_v55  ;;  %v765_v3 = vsel %vm2971_vm11, %v763_v57, %v749_v54  ;;  %1921 = vmatmul.msk.bf16.vlgmr.msrb.gmra.mxu1 %vm3606_vm12, %v410_v10  ;;  %vm3608_vm12 = vmmov %vm3607_vm9  ;;  %v1933_v10 = vld [vmem:[%s3525_s1 + $0x38] sm:$0xf0] }
 0x849   :  { %v809_v5 = vpack.c.bf16 %v767_v62, %v766_v59  ;;  %v803_v9 = vpack.c.bf16 %v765_v3, %v764_v2 }
 0x84b   :  { %2122 = vrot.lane.b32.xlu2 %v2111_v44, %s2418_s21  ;;  %823 = vmatpush.bf16.msra.mxu1 %v809_v5  ;;  %v1948_v5 = vld [vmem:[%s3525_s1 + $0x34] sm:$0xf] }
 0x84c   :  { %2117 = vrot.lane.b32.xlu1 %v2111_v44, %s2419_s22 }
 0x895   :  { %v2093_v11 = vpop.permute.xlu2 %2092 }
 0x896   :  { %v2095_v21 = vunpack.i.h.bf16 %v2093_v11  ;;  %v2094_v26 = vunpack.i.l.bf16 %v2093_v11 }
 0x89d   :  { %v2108_v18 = vpop.permute.xlu2 %2107 }
 0x89e   :  { %v2110_v53 = vunpack.i.h.bf16 %v2108_v18  ;;  %v2109_v24 = vunpack.i.l.bf16 %v2108_v18  ;;  %v1936_v18 = vor.u32 %v1948_v5, %v1933_v10 }
 0x8a5   :  { %v2123_v30 = vpop.permute.xlu2 %2122 }
 0x8a6   :  { %v2125_v54 = vunpack.i.h.bf16 %v2123_v30  ;;  %v2124_v55 = vunpack.i.l.bf16 %v2123_v30 }
 0x8ad   :  { %v2098_v15 = vpop.permute.xlu0 %2097 }
 0x8ae   :  { %v2088_v14 = vpop.permute.xlu1 %2087  ;;  %v2100_v29 = vunpack.i.h.bf16 %v2098_v15  ;;  %v2099_v32 = vunpack.i.l.bf16 %v2098_v15 }
 0x8af   :  { %v2090_v19 = vunpack.i.h.bf16 %v2088_v14  ;;  %v2089_v20 = vunpack.i.l.bf16 %v2088_v14 }
 0x8b1   :  { %v710_v41 = vsel %vm3550_vm13, %v2090_v19, %v2095_v21  ;;  %v709_v42 = vsel %vm3550_vm13, %v2089_v20, %v2094_v26 }
 0x8b5   :  { %v2113_v50 = vpop.permute.xlu0 %2112 }
 0x8b6   :  { %v2103_v27 = vpop.permute.xlu1 %2102  ;;  %v2115_v31 = vunpack.i.h.bf16 %v2113_v50  ;;  %v2114_v52 = vunpack.i.l.bf16 %v2113_v50 }
 0x8b7   :  { %v2105_v33 = vunpack.i.h.bf16 %v2103_v27  ;;  %v2104_v38 = vunpack.i.l.bf16 %v2103_v27 }
 0x8b8   :  { %v782_v59 = vsel %vm3550_vm13, %v2109_v24, %v2114_v52  ;;  %v783_v62 = vsel %vm3550_vm13, %v2110_v53, %v2115_v31 }
 0x8b9   :  { %v725_v43 = vsel %vm3607_vm9, %v2100_v29, %v2105_v33  ;;  %v724_v44 = vsel %vm3608_vm12, %v2099_v32, %v2104_v38  ;;  %vm3609_vm12 = vmmov %vm3607_vm9 }
 0x8ba   :  { %v734_v0 = vsel %vm2967_vm0, %v709_v42, %v724_v44  ;;  %v735_v22 = vsel %vm2967_vm0, %v710_v41, %v725_v43  ;;  %v729_v19 = vsel %vm2971_vm11, %v724_v44, %v709_v42  ;;  %v730_v61 = vsel %vm2971_vm11, %v725_v43, %v710_v41 }
 0x8bb   :  { %v808_v23 = vpack.c.bf16 %v735_v22, %v734_v0  ;;  %v802_v20 = vpack.c.bf16 %v730_v61, %v729_v19 }
 0x8bd   :  { %824 = vmatpush.bf16.msra.mxu1 %v808_v23 }
 0x8be   :  { %v2118_v25 = vpop.permute.xlu1 %2117 }
 0x8bf   :  { %v2120_v56 = vunpack.i.h.bf16 %v2118_v25  ;;  %v2119_v57 = vunpack.i.l.bf16 %v2118_v25 }
 0x8c1   :  { %v797_v2 = vsel %vm3607_vm9, %v2120_v56, %v2125_v54  ;;  %v796_v3 = vsel %vm3609_vm12, %v2119_v57, %v2124_v55  ;;  %825 = vmatpush.bf16.msra.mxu1 %v807_v39  ;;  %vm3610_vm9 = vcmask 130048  }
 0x8c2   :  { %v800_v11 = vsel %vm2967_vm0, %v782_v59, %v796_v3  ;;  %v801_v14 = vsel %vm2967_vm0, %v783_v62, %v797_v2  ;;  %v798_v36 = vsel %vm2971_vm11, %v796_v3, %v782_v59  ;;  %v799_v37 = vsel %vm2971_vm11, %v797_v2, %v783_v62  ;;  %vm3611_vm12 = vmmov %vm3610_vm9 }
 0x8c3   :  { %v810_v15 = vpack.c.bf16 %v801_v14, %v800_v11  ;;  %v804_v39 = vpack.c.bf16 %v799_v37, %v798_v36  ;;  %vm3612_vm13 = vmmov %vm3610_vm9 }
 0x8c4   :  { %vm3613_vm8 = vmmov %vm3610_vm9 }
 0x8c5   :  { %826 = vmatpush.bf16.msra.mxu1 %v806_v63  ;;  %844 = vmatpush.bf16.msra.mxu0 %v810_v15  ;;  %v1949_v63 = vld [vmem:[%s3525_s1 + $0x34] sm:$0xf0]  ;;  %v3039_v35 = vpop.f32.mrf.mxu1 }
 0x8c6   :  { %v1932_v34 = vor.u32 %v1949_v63, %v1931_v58 }
 0x8c8   :  { %1937 = vmatmul.msk.bf16.vlgmr.msra.gmra.mxu0 %vm3610_vm9, %v1936_v18 }
 0x8c9   :  { %827 = vmatpush.bf16.msra.mxu1 %v805_v40 }
 0x8cd   :  { %828 = vmatpush.bf16.msra.mxu1 %v804_v39  ;;  %v429_v40 = vpop.f32.mrf.mxu1 }
 0x8d1   :  { %829 = vmatpush.bf16.msra.mxu1 %v803_v9 }
 0x8d5   :  { %830 = vmatpush.bf16.msra.mxu1 %v802_v20 }
 0x8d8   :  { %831 = vmatmul.bf16.vlgmr.msra.gmra.mxu1 %v1932_v34 }
 0x945   :  { %v846_v21 = vpop.f32.mrf.mxu0 }
 0x94d   :  { %v848_v33 = vpop.f32.mrf.mxu0 }
 0x955   :  { %v832_v26 = vpop.f32.mrf.mxu1 }
 0x956   :  { %v847_v27 = vadd.f32 %v846_v21, %v832_v26 }
 0x958   :  { %v851_v9 = vsel %vm3611_vm12, %v847_v27, 0.0  ;;  %v859_v29 = vmul.f32 %v847_v27, %v847_v27 }
 0x959   :  { %852 = vadd.xlane.f32.xlu0 %v851_v9 }
 0x95a   :  { %v861_v32 = vsel %vm3610_vm9, %v859_v29, 0.0 }
 0x95b   :  { %862 = vadd.xlane.f32.xlu2 %v861_v32  ;;  %v905_v32 = vld [vmem:[%s3525_s1 + $0x50] sm:$0xf] }
 0x95d   :  { %v834_v38 = vpop.f32.mrf.mxu1 }
 0x95e   :  { %v849_v41 = vadd.f32 %v848_v33, %v834_v38 }
 0x960   :  { %v854_v42 = vsel %vm3612_vm13, %v849_v41, 0.0  ;;  %v860_v43 = vmul.f32 %v849_v41, %v849_v41 }
 0x961   :  { %855 = vadd.xlane.f32.xlu1 %v854_v42 }
 0x962   :  { %v864_v44 = vsel %vm3613_vm8, %v860_v43, 0.0 }
 0x963   :  { %865 = vadd.xlane.f32.xlu0 %v864_v44 }
 0x9cc   :  { %v853_v50 = vpop.xlane.xlu0 %852 }
 0x9cd   :  { %v857_v0 = vmul.f32 0.0625, %v853_v50 }
 0x9ce   :  { %v863_v22 = vpop.xlane.xlu2 %862 }
 0x9cf   :  { %v869_v23 = vmul.f32 %v857_v0, %v857_v0  ;;  %v867_v30 = vmul.f32 0.0625, %v863_v22 }
 0x9d1   :  { %v871_v31 = vsub.f32 %v867_v30, %v869_v23 }
 0x9d3   :  { %v873_v52 = vadd.f32 1e-05, %v871_v31 }
 0x9d4   :  { %v856_v53 = vpop.xlane.xlu1 %855 }
 0x9d5   :  { %2374 = vrsqrt.f32 %v873_v52  ;;  %v858_v24 = vmul.f32 0.0625, %v856_v53  ;;  %vm881_vm13 = vweird.f32 %v873_v52 }
 0x9d6   :  { %v866_v25 = vpop.xlane.xlu0 %865 }
 0x9d7   :  { %v870_v54 = vmul.f32 %v858_v24, %v858_v24  ;;  %v868_v55 = vmul.f32 0.0625, %v866_v25 }
 0x9d9   :  { %v872_v56 = vsub.f32 %v868_v55, %v870_v54 }
 0x9db   :  { %v2375_v57 = vpop.eup %2374  ;;  %v874_v59 = vadd.f32 1e-05, %v872_v56 }
 0x9dc   :  { %v876_v62 = vmul.f32 %v2375_v57, %v873_v52  ;;  %vm882_vm8 = vweird.f32 %v2375_v57 }
 0x9dd   :  { %2376 = vrsqrt.f32 %v874_v59  ;;  %vm883_vm12 = vmor %vm881_vm13, %vm882_vm8  ;;  %vm891_vm5 = vweird.f32 %v874_v59  ;;  %vm3614_vm8 = vcmask 130048  }
 0x9de   :  { %v877_v2 = vmul.f32 %v2375_v57, %v876_v62 }
 0x9e0   :  { %v878_v3 = vmul.f32 0.5, %v877_v2 }
 0x9e2   :  { %v879_v5 = vsub.f32 1.5, %v878_v3 }
 0x9e3   :  { %v2377_v10 = vpop.eup %2376 }
 0x9e4   :  { %v880_v11 = vmul.f32 %v2375_v57, %v879_v5  ;;  %v886_v14 = vmul.f32 %v2377_v10, %v874_v59  ;;  %vm892_vm9 = vweird.f32 %v2377_v10 }
 0x9e5   :  { %vm893_vm4 = vmor %vm891_vm5, %vm892_vm9 }
 0x9e6   :  { %v884_v15 = vsel %vm883_vm12, %v2375_v57, %v880_v11  ;;  %v887_v18 = vmul.f32 %v2377_v10, %v886_v14 }
 0x9e7   :  { %v895_v37 = vmul.f32 %v884_v15, %v847_v27  ;;  %v897_v39 = vmul.f32 %v884_v15, %v857_v0 }
 0x9e8   :  { %v888_v36 = vmul.f32 0.5, %v887_v18 }
 0x9e9   :  { %v899_v58 = vsub.f32 %v895_v37, %v897_v39 }
 0x9ea   :  { %v889_v19 = vsub.f32 1.5, %v888_v36 }
 0x9eb   :  { %v901_v40 = vmul.f32 0.01, %v899_v58 }
 0x9ec   :  { %v890_v61 = vmul.f32 %v2377_v10, %v889_v19 }
 0x9ed   :  { %v3045_v9 = vmax.f32 %v899_v58, %v901_v40 }
 0x9ee   :  { %v894_v63 = vsel %vm893_vm4, %v2377_v10, %v890_v61  ;;  %vm3615_vm4 = vmmov %vm3614_vm8 }
 0x9ef   :  { %v896_v20 = vmul.f32 %v894_v63, %v849_v41  ;;  %v898_v34 = vmul.f32 %v894_v63, %v858_v24  ;;  %vm3616_vm5 = vmmov %vm3615_vm4  ;;  %v962_v36 = vmul.f32 %v3045_v9, %v3045_v9 }
 0x9f0   :  { %vm3617_vm13 = vmmov %vm3615_vm4 }
 0x9f1   :  { %v900_v21 = vsub.f32 %v896_v20, %v898_v34  ;;  %v950_v44 = vsel %vm3617_vm13, %v3045_v9, 0.0  ;;  %vm3618_vm12 = vmmov %vm3615_vm4 }
 0x9f2   :  { %vm3619_vm13 = vmmov %vm3616_vm5 }
 0x9f3   :  { %v902_v26 = vmul.f32 0.01, %v900_v21 }
 0x9f5   :  { %v3047_v29 = vmax.f32 %v900_v21, %v902_v26 }
 0x9f7   :  { %v906_v27 = vpack.c.bf16 %v3047_v29, %v3045_v9  ;;  %v963_v50 = vmul.f32 %v3047_v29, %v3047_v29 }
 0x9f9   :  { %917 = vmatpush.bf16.msra.mxu3 %v906_v27  ;;  %v968_v0 = vsel %vm3618_vm12, %v963_v50, 0.0  ;;  %vm3620_vm12 = vmmov %vm3616_vm5 }
 0x9fa   :  { %v953_v37 = vsel %vm3620_vm12, %v3047_v29, 0.0 }
 0x9fc   :  { %1938 = vmatmul.msk.bf16.vlgmr.msra.gmra.mxu3 %vm3614_vm8, %v905_v32 }
 0xa7f   :  { %v919_v33 = vpop.f32.mrf.mxu3 }
 0xa80   :  { %v923_v38 = vsel %vm3615_vm4, %v919_v33, 0.0  ;;  %v927_v41 = vmul.f32 %v919_v33, %v919_v33 }
 0xa81   :  { %924 = vadd.xlane.f32.xlu1 %v923_v38 }
 0xa82   :  { %v928_v42 = vsel %vm3616_vm5, %v927_v41, 0.0 }
 0xa83   :  { %929 = vadd.xlane.f32.xlu2 %v928_v42 }
 0xa87   :  { %v921_v43 = vpop.f32.mrf.mxu3 }
 0xa8b   :  { %951 = vadd.xlane.f32.xlu2 %v950_v44 }
 0xa93   :  { %969 = vadd.xlane.f32.xlu2 %v968_v0 }
 0xaf4   :  { %v925_v22 = vpop.xlane.xlu1 %924 }
 0xaf5   :  { %v926_v23 = vmul.f32 0.0625, %v925_v22 }
 0xaf6   :  { %v930_v30 = vpop.xlane.xlu2 %929 }
 0xaf7   :  { %v932_v31 = vmul.f32 %v926_v23, %v926_v23  ;;  %v931_v52 = vmul.f32 0.0625, %v930_v30 }
 0xaf9   :  { %v933_v53 = vsub.f32 %v931_v52, %v932_v31 }
 0xafb   :  { %v934_v24 = vadd.f32 1e-05, %v933_v53 }
 0xafd   :  { %2378 = vrsqrt.f32 %v934_v24  ;;  %vm941_vm8 = vweird.f32 %v934_v24 }
 0xafe   :  { %v952_v19 = vpop.xlane.xlu2 %951 }
 0xaff   :  { %v959_v21 = vmul.f32 0.0625, %v952_v19 }
 0xb01   :  { %v977_v41 = vmul.f32 %v959_v21, %v959_v21 }
 0xb03   :  { %v2379_v25 = vpop.eup %2378 }
 0xb04   :  { %v936_v54 = vmul.f32 %v2379_v25, %v934_v24  ;;  %vm942_vm9 = vweird.f32 %v2379_v25 }
 0xb05   :  { %vm943_vm4 = vmor %vm941_vm8, %vm942_vm9 }
 0xb06   :  { %v937_v55 = vmul.f32 %v2379_v25, %v936_v54  ;;  %vm3621_vm9 = vmmov %vm3616_vm5  ;;  %v970_v27 = vpop.xlane.xlu2 %969 }
 0xb07   :  { %v965_v39 = vsel %vm3621_vm9, %v962_v36, 0.0  ;;  %v975_v42 = vmul.f32 0.0625, %v970_v27 }
 0xb08   :  { %v938_v56 = vmul.f32 0.5, %v937_v55 }
 0xb0a   :  { %v939_v57 = vsub.f32 1.5, %v938_v56 }
 0xb0c   :  { %v940_v59 = vmul.f32 %v2379_v25, %v939_v57 }
 0xb0e   :  { %v944_v62 = vsel %vm943_vm4, %v2379_v25, %v940_v59 }
 0xb0f   :  { %v945_v2 = vmul.f32 %v944_v62, %v919_v33  ;;  %v946_v3 = vmul.f32 %v944_v62, %v926_v23 }
 0xb11   :  { %v947_v5 = vsub.f32 %v945_v2, %v946_v3 }
 0xb13   :  { %v948_v10 = vmul.f32 0.01, %v947_v5 }
 0xb15   :  { %v949_v11 = vmax.f32 %v947_v5, %v948_v10 }
 0xb17   :  { %v956_v14 = vsel %vm3616_vm5, %v949_v11, 0.0  ;;  %v964_v15 = vmul.f32 %v949_v11, %v949_v11 }
 0xb18   :  { %957 = vadd.xlane.f32.xlu0 %v956_v14 }
 0xb19   :  { %v971_v18 = vsel %vm3619_vm13, %v964_v15, 0.0 }
 0xb1a   :  { %972 = vadd.xlane.f32.xlu1 %v971_v18 }
 0xb20   :  { %954 = vadd.xlane.f32.xlu0 %v953_v37 }
 0xb22   :  { %966 = vadd.xlane.f32.xlu1 %v965_v39 }
 0xb8b   :  { %v958_v61 = vpop.xlane.xlu0 %957 }
 0xb8c   :  { %v961_v58 = vmul.f32 0.0625, %v958_v61 }
 0xb8d   :  { %v973_v63 = vpop.xlane.xlu1 %972 }
 0xb8e   :  { %v979_v20 = vmul.f32 %v961_v58, %v961_v58  ;;  %v976_v34 = vmul.f32 0.0625, %v973_v63 }
 0xb90   :  { %v982_v40 = vsub.f32 %v976_v34, %v979_v20 }
 0xb92   :  { %v985_v26 = vadd.f32 1e-05, %v982_v40 }
 0xb93   :  { %v955_v32 = vpop.xlane.xlu0 %954 }
 0xb94   :  { %2380 = vrsqrt.f32 %v985_v26  ;;  %v960_v33 = vmul.f32 0.0625, %v955_v32  ;;  %vm1012_vm4 = vweird.f32 %v985_v26 }
 0xb95   :  { %v967_v38 = vpop.xlane.xlu1 %966 }
 0xb96   :  { %v978_v43 = vmul.f32 %v960_v33, %v960_v33  ;;  %v974_v44 = vmul.f32 0.0625, %v967_v38 }
 0xb98   :  { %v981_v50 = vsub.f32 %v975_v42, %v978_v43  ;;  %v980_v0 = vsub.f32 %v974_v44, %v977_v41 }
 0xb9a   :  { %v2381_v22 = vpop.eup %2380  ;;  %v984_v23 = vadd.f32 1e-05, %v981_v50  ;;  %v983_v30 = vadd.f32 1e-05, %v980_v0 }
 0xb9b   :  { %v1007_v31 = vmul.f32 %v2381_v22, %v985_v26  ;;  %vm1013_vm8 = vweird.f32 %v2381_v22 }
 0xb9c   :  { %2382 = vrsqrt.f32 %v984_v23  ;;  %vm1014_vm5 = vmor %vm1012_vm4, %vm1013_vm8  ;;  %vm1002_vm9 = vweird.f32 %v984_v23  ;;  %vm992_vm2 = vweird.f32 %v983_v30 }
 0xb9d   :  { %v1008_v52 = vmul.f32 %v2381_v22, %v1007_v31  ;;  %2384 = vrsqrt.f32 %v983_v30 }
 0xb9f   :  { %v1009_v53 = vmul.f32 0.5, %v1008_v52 }
 0xba1   :  { %v1010_v25 = vsub.f32 1.5, %v1009_v53 }
 0xba2   :  { %v2383_v24 = vpop.eup %2382 }
 0xba3   :  { %v2385_v54 = vpop.eup %2384  ;;  %v997_v55 = vmul.f32 %v2383_v24, %v984_v23  ;;  %v1011_v59 = vmul.f32 %v2381_v22, %v1010_v25  ;;  %vm1003_vm13 = vweird.f32 %v2383_v24 }
 0xba4   :  { %v987_v56 = vmul.f32 %v2385_v54, %v983_v30  ;;  %vm993_vm12 = vweird.f32 %v2385_v54  ;;  %vm1004_vm3 = vmor %vm1002_vm9, %vm1003_vm13 }
 0xba5   :  { %v998_v57 = vmul.f32 %v2383_v24, %v997_v55  ;;  %v1015_v10 = vsel %vm1014_vm5, %v2381_v22, %v1011_v59  ;;  %vm994_vm10 = vmor %vm992_vm2, %vm993_vm12  ;;  %vm3622_vm2 = vcmask 7168  }
 0xba6   :  { %v988_v62 = vmul.f32 %v2385_v54, %v987_v56  ;;  %v1018_v36 = vmul.f32 %v1015_v10, %v949_v11  ;;  %v1021_v37 = vmul.f32 %v1015_v10, %v961_v58  ;;  %vm3626_vm4 = vmmov %vm3622_vm2 }
 0xba7   :  { %v999_v2 = vmul.f32 0.5, %v998_v57  ;;  %vm3627_vm5 = vmmov %vm3622_vm2 }
 0xba8   :  { %v989_v3 = vmul.f32 0.5, %v988_v62  ;;  %v1024_v26 = vsub.f32 %v1018_v36, %v1021_v37 }
 0xba9   :  { %v1000_v5 = vsub.f32 1.5, %v999_v2 }
 0xbaa   :  { %v990_v14 = vsub.f32 1.5, %v989_v3 }
 0xbab   :  { %v1001_v15 = vmul.f32 %v2383_v24, %v1000_v5 }
 0xbac   :  { %v991_v18 = vmul.f32 %v2385_v54, %v990_v14 }
 0xbad   :  { %v1005_v39 = vsel %vm1004_vm3, %v2383_v24, %v1001_v15  ;;  %vm3623_vm3 = vcmask 121856  }
 0xbae   :  { %v1017_v19 = vmul.f32 %v1005_v39, %v3047_v29  ;;  %v1020_v61 = vmul.f32 %v1005_v39, %v960_v33  ;;  %v995_v63 = vsel %vm994_vm10, %v2385_v54, %v991_v18  ;;  %vm3624_vm10 = vmmov %vm3623_vm3 }
 0xbaf   :  { %v1016_v20 = vmul.f32 %v995_v63, %v3045_v9  ;;  %v1019_v34 = vmul.f32 %v995_v63, %v959_v21  ;;  %vm3625_vm8 = vmmov %vm3623_vm3 }
 0xbb0   :  { %v1023_v40 = vsub.f32 %v1017_v19, %v1020_v61 }
 0xbb1   :  { %v1022_v27 = vsub.f32 %v1016_v20, %v1019_v34 }
 0xbb2   :  { %1031 = vrot.lane.b32.xlu1 %v1023_v40, %s2414_s3 }
 0xbb3   :  { %v2136_v32 = vpack.i.bf16 %v1022_v27, %v1024_v26  ;;  %v1233_v56 = vpack.c.bf16 %v1023_v40, %v1022_v27 }
 0xbb5   :  { %2137 = vrot.lane.b32.xlu2 %v2136_v32, %s2405_s26  ;;  %2127 = vrot.lane.b32.xlu0 %v2136_v32, %s2414_s3 }
 0xbba   :  { %2132 = vrot.lane.b32.xlu1 %v2136_v32, %s2404_s25 }
 0xbbd   :  { %2142 = vrot.lane.b32.xlu0 %v2136_v32, %s2417_s20  ;;  %1052 = vrot.lane.b32.xlu2 %v1023_v40, %s2405_s26 }
 0xbc2   :  { %1061 = vrot.lane.b32.xlu1 %v1023_v40, %s2417_s20 }
 0xbc5   :  { %1040 = vrot.lane.b32.xlu0 %v1023_v40, %s2404_s25 }
 0xc0f   :  { %v2138_v58 = vpop.permute.xlu2 %2137 }
 0xc10   :  { %v2140_v38 = vunpack.i.h.bf16 %v2138_v58  ;;  %v2139_v23 = vunpack.i.l.bf16 %v2138_v58 }
 0xc17   :  { %v1053_v52 = vpop.permute.xlu2 %1052 }
 0xc24   :  { %v1032_v9 = vpop.permute.xlu1 %1031 }
 0xc27   :  { %v2128_v29 = vpop.permute.xlu0 %2127 }
 0xc28   :  { %v2130_v41 = vunpack.i.h.bf16 %v2128_v29  ;;  %v2129_v53 = vunpack.i.l.bf16 %v2128_v29 }
 0xc2c   :  { %v2133_v11 = vpop.permute.xlu1 %2132 }
 0xc2d   :  { %v2135_v21 = vunpack.i.h.bf16 %v2133_v11  ;;  %v2134_v30 = vunpack.i.l.bf16 %v2133_v11 }
 0xc2f   :  { %v2143_v33 = vpop.permute.xlu0 %2142  ;;  %v1047_v43 = vsel %vm3622_vm2, %v2130_v41, %v2135_v21  ;;  %v1049_v57 = vsel %vm3627_vm5, %v2129_v53, %v2134_v30 }
 0xc30   :  { %v2145_v42 = vunpack.i.h.bf16 %v2143_v33  ;;  %v2144_v50 = vunpack.i.l.bf16 %v2143_v33 }
 0xc32   :  { %v1068_v44 = vsel %vm3623_vm3, %v2140_v38, %v2145_v42  ;;  %v1070_v24 = vsel %vm3624_vm10, %v2139_v23, %v2144_v50 }
 0xc33   :  { %v1074_v0 = vsel %vm2928_vm6, %v1047_v43, %v1068_v44  ;;  %v3095_v2 = vsel %vm2928_vm6, %v1049_v57, %v1070_v24  ;;  %v1073_v5 = vsel %vm2924_vm14, %v1070_v24, %v1049_v57  ;;  %v3107_v8 = vsel %vm2924_vm14, %v1068_v44, %v1047_v43 }
 0xc34   :  { %v1234_v22 = vpack.c.bf16 %v1074_v0, %v1024_v26  ;;  %v1062_v31 = vpop.permute.xlu1 %1061  ;;  %v2176_v15 = vpack.i.bf16 %v3107_v8, %v1022_v27  ;;  %v2196_v18 = vpack.i.bf16 %v1074_v0, %v3095_v2  ;;  %v2206_v36 = vpack.i.bf16 %v1073_v5, %v1024_v26 }
 0xc35   :  { %v1069_v54 = vsel %vm3625_vm8, %v1053_v52, %v1062_v31  ;;  %vm3636_vm8 = vcmask 1043456  }
 0xc36   :  { %1254 = vmatpush.bf16.msra.mxu2 %v1234_v22 }
 0xc37   :  { %v1041_v25 = vpop.permute.xlu0 %1040 }
 0xc38   :  { %v1048_v55 = vsel %vm3626_vm4, %v1032_v9, %v1041_v25 }
 0xc39   :  { %v1072_v59 = vsel %vm2924_vm14, %v1069_v54, %v1048_v55  ;;  %v3091_v62 = vsel %vm2928_vm6, %v1048_v55, %v1069_v54  ;;  %vm3628_vm14 = vcmask 97280   ;;  %vm3629_vm6 = vcmask 31744  }
 0xc3a   :  { %1255 = vmatpush.bf16.msra.mxu2 %v1233_v56  ;;  %v2156_v3 = vpack.i.bf16 %v1023_v40, %v3091_v62  ;;  %v1235_v10 = vpack.c.bf16 %v3095_v2, %v3091_v62  ;;  %v1232_v14 = vpack.c.bf16 %v1073_v5, %v1072_v59  ;;  %vm3630_vm13 = vmmov %vm3629_vm6  ;;  %v1307_v62 = vld [vmem:[%s3527_s4] sm:$0xff] }
 0xc3b   :  { %vm3631_vm12 = vmmov %vm3628_vm14 }
 0xc3c   :  { %2157 = vrot.lane.b32.xlu0 %v2156_v3, %s2419_s22  ;;  %2152 = vrot.lane.b32.xlu1 %v2156_v3, %s2416_s19  ;;  %vm3632_vm9 = vmmov %vm3631_vm12 }
 0xc3d   :  { %2147 = vrot.lane.b32.xlu2 %v2156_v3, %s2415_s18  ;;  %vm3633_vm2 = vmmov %vm3629_vm6 }
 0xc3e   :  { %1256 = vmatpush.bf16.msra.mxu2 %v1232_v14  ;;  %vm3634_vm3 = vmmov %vm3632_vm9 }
 0xc3f   :  { %vm3635_vm10 = vmmov %vm3633_vm2 }
 0xc40   :  { %vm3637_vm4 = vmmov %vm3634_vm3 }
 0xc41   :  { %vm3638_vm5 = vmmov %vm3633_vm2 }
 0xc44   :  { %2177 = vrot.lane.b32.xlu1 %v2176_v15, %s2419_s22  ;;  %2167 = vrot.lane.b32.xlu0 %v2176_v15, %s2415_s18 }
 0xc45   :  { %2162 = vrot.lane.b32.xlu2 %v2156_v3, %s2418_s21 }
 0xc4c   :  { %2182 = vrot.lane.b32.xlu0 %v2176_v15, %s2418_s21  ;;  %2197 = vrot.lane.b32.xlu1 %v2196_v18, %s2419_s22 }
 0xc4d   :  { %2172 = vrot.lane.b32.xlu2 %v2176_v15, %s2416_s19 }
 0xc54   :  { %2187 = vrot.lane.b32.xlu0 %v2196_v18, %s2415_s18  ;;  %2207 = vrot.lane.b32.xlu1 %v2206_v36, %s2415_s18 }
 0xc55   :  { %1082 = vrot.lane.b32.xlu2 %v1072_v59, %s2415_s18 }
 0xc5c   :  { %2202 = vrot.lane.b32.xlu0 %v2196_v18, %s2418_s21  ;;  %2222 = vrot.lane.b32.xlu1 %v2206_v36, %s2418_s21 }
 0xc5d   :  { %2192 = vrot.lane.b32.xlu2 %v2196_v18, %s2416_s19 }
 0xc64   :  { %2212 = vrot.lane.b32.xlu0 %v2206_v36, %s2416_s19  ;;  %1091 = vrot.lane.b32.xlu1 %v1072_v59, %s2416_s19 }
 0xc65   :  { %2217 = vrot.lane.b32.xlu2 %v2206_v36, %s2419_s22 }
 0xc6c   :  { %1103 = vrot.lane.b32.xlu0 %v1072_v59, %s2419_s22 }
 0xc6d   :  { %1112 = vrot.lane.b32.xlu2 %v1072_v59, %s2418_s21 }
 0xc97   :  { %v2148_v7 = vpop.permute.xlu2 %2147 }
 0xc98   :  { %v2149_v21 = vunpack.i.l.bf16 %v2148_v7  ;;  %v2150_v54 = vunpack.i.h.bf16 %v2148_v7 }
 0xc9f   :  { %v2163_v37 = vpop.permute.xlu2 %2162 }
 0xca0   :  { %v2164_v33 = vunpack.i.l.bf16 %v2163_v37  ;;  %v2165_v55 = vunpack.i.h.bf16 %v2163_v37 }
 0xca7   :  { %v3128_v61 = vpop.permute.xlu2 %2172 }
 0xca8   :  { %v2174_v3 = vunpack.i.l.bf16 %v3128_v61 }
 0xcae   :  { %v2158_v39 = vpop.permute.xlu0 %2157  ;;  %v2153_v19 = vpop.permute.xlu1 %2152 }
 0xcaf   :  { %v3136_v26 = vpop.permute.xlu2 %1082  ;;  %v2159_v29 = vunpack.i.l.bf16 %v2158_v39  ;;  %v2154_v11 = vunpack.i.l.bf16 %v2153_v19  ;;  %v2160_v22 = vunpack.i.h.bf16 %v2158_v39  ;;  %v2155_v30 = vunpack.i.h.bf16 %v2153_v19 }
 0xcb1   :  { %v1219_v23 = vsel %vm3628_vm14, %v2159_v29, %v2164_v33  ;;  %v1198_v31 = vsel %vm3629_vm6, %v2149_v21, %v2154_v11  ;;  %v1168_v36 = vsel %vm3634_vm3, %v2160_v22, %v2165_v55  ;;  %v1147_v7 = vsel %vm3635_vm10, %v2150_v54, %v2155_v30  ;;  %vm3639_vm14 = vmmov %vm3633_vm2 }
 0xcb2   :  { %v1222_v39 = vsel %vm2971_vm11, %v1219_v23, %v1198_v31  ;;  %vm3640_vm6 = vmmov %vm3634_vm3 }
 0xcb3   :  { %vm3644_vm10 = vmmov %vm3633_vm2 }
 0xcb6   :  { %v3130_v63 = vpop.permute.xlu1 %2177  ;;  %v3132_v20 = vpop.permute.xlu0 %2167 }
 0xcb7   :  { %v2193_v9 = vpop.permute.xlu2 %2192 }
 0xcb8   :  { %v2194_v38 = vunpack.i.l.bf16 %v2193_v9  ;;  %v2195_v52 = vunpack.i.h.bf16 %v2193_v9 }
 0xcbe   :  { %v3134_v34 = vpop.permute.xlu0 %2182  ;;  %v2198_v40 = vpop.permute.xlu1 %2197 }
 0xcbf   :  { %v2200_v41 = vunpack.i.h.bf16 %v2198_v40  ;;  %v2199_v43 = vunpack.i.l.bf16 %v2198_v40  ;;  %v2218_v5 = vpop.permute.xlu2 %2217  ;;  %v2184_v9 = vunpack.i.l.bf16 %v3134_v34 }
 0xcc0   :  { %v2219_v29 = vunpack.i.l.bf16 %v2218_v5  ;;  %v2220_v22 = vunpack.i.h.bf16 %v2218_v5  ;;  %v2170_v5 = vunpack.i.h.bf16 %v3132_v20 }
 0xcc6   :  { %v2188_v27 = vpop.permute.xlu0 %2187  ;;  %v2208_v32 = vpop.permute.xlu1 %2207 }
 0xcc7   :  { %v2189_v58 = vunpack.i.l.bf16 %v2188_v27  ;;  %v2190_v44 = vunpack.i.h.bf16 %v2188_v27  ;;  %v2210_v11 = vunpack.i.h.bf16 %v2208_v32 }
 0xcc9   :  { %v1199_v53 = vsel %vm3630_vm13, %v2189_v58, %v2194_v38  ;;  %v1197_v14 = vsel %vm3633_vm2, %v2190_v44, %v2195_v52  ;;  %v2209_v58 = vunpack.i.l.bf16 %v2208_v32  ;;  %v2169_v44 = vunpack.i.l.bf16 %v3132_v20  ;;  %vm3641_vm13 = vmmov %vm3634_vm3 }
 0xcce   :  { %v2203_v42 = vpop.permute.xlu0 %2202  ;;  %v2223_v56 = vpop.permute.xlu1 %2222 }
 0xccf   :  { %v2205_v50 = vunpack.i.h.bf16 %v2203_v42  ;;  %v2204_v0 = vunpack.i.l.bf16 %v2203_v42  ;;  %v2224_v19 = vunpack.i.l.bf16 %v2223_v56  ;;  %v2225_v33 = vunpack.i.h.bf16 %v2223_v56 }
 0xcd1   :  { %v1218_v24 = vsel %vm3631_vm12, %v2200_v41, %v2205_v50  ;;  %v1220_v25 = vsel %vm3632_vm9, %v2199_v43, %v2204_v0  ;;  %v2179_v43 = vunpack.i.l.bf16 %v3130_v63  ;;  %v1171_v0 = vsel %vm2971_vm11, %v1168_v36, %v1147_v7  ;;  %vm3642_vm12 = vmmov %vm3633_vm2 }
 0xcd2   :  { %v1223_v57 = vsel %vm2971_vm11, %v1220_v25, %v1199_v53  ;;  %v1226_v59 = vsel %vm2967_vm0, %v1199_v53, %v1220_v25  ;;  %v1221_v37 = vsel %vm2971_vm11, %v1218_v24, %v1197_v14  ;;  %v1224_v27 = vsel %vm2967_vm0, %v1197_v14, %v1218_v24  ;;  %vm3643_vm9 = vmmov %vm3634_vm3 }
 0xcd3   :  { %v1231_v15 = vpack.c.bf16 %v3107_v8, %v1223_v57  ;;  %v1240_v18 = vpack.c.bf16 %v1226_v59, %v1226_v59  ;;  %v1225_v8 = vsel %vm2967_vm0, %v1198_v31, %v1219_v23  ;;  %v1230_v42 = vpack.c.bf16 %v1222_v39, %v1221_v37 }
 0xcd4   :  { %v1239_v50 = vpack.c.bf16 %v1225_v8, %v1224_v27  ;;  %v1169_v23 = vsel %vm3637_vm4, %v2219_v29, %v2224_v19  ;;  %v2185_v31 = vunpack.i.h.bf16 %v3134_v34  ;;  %v1174_v53 = vsel %vm2967_vm0, %v1147_v7, %v1168_v36  ;;  %v1113_v7 = vpop.permute.xlu2 %1112 }
 0xcd5   :  { %1257 = vmatpush.bf16.msra.mxu2 %v1231_v15  ;;  %v1252_v40 = vsel %vm3636_vm8, %v1240_v18, 0  ;;  %v1167_v25 = vsel %vm3640_vm6, %v2179_v43, %v2184_v9  ;;  %v1121_v54 = vsel %vm3641_vm13, %v2220_v22, %v2225_v33  ;;  %v2180_v57 = vunpack.i.h.bf16 %v3130_v63  ;;  %v1025_v18 = vld [vmem:[%s3525_s1 + $0x60] sm:$0xff] }
 0xcd6   :  { %1269 = vmatpush.bf16.msrb.mxu0 %v1252_v40  ;;  %v2213_v21 = vpop.permute.xlu0 %2212  ;;  %v1092_v59 = vpop.permute.xlu1 %1091  ;;  %v1146_v14 = vsel %vm3642_vm12, %v2169_v44, %v2174_v3  ;;  %v2175_v36 = vunpack.i.h.bf16 %v3128_v61  ;;  %v1242_v8 = vunpack.c.l.b16 %v1025_v18  ;;  %vm1247_vm8 = vcmask 719872  }
 0xcd7   :  { %v2215_v38 = vunpack.i.h.bf16 %v2213_v21  ;;  %v2214_v41 = vunpack.i.l.bf16 %v2213_v21  ;;  %v1119_v63 = vsel %vm3643_vm9, %v2180_v57, %v2185_v31  ;;  %v1170_v20 = vsel %vm2971_vm11, %v1167_v25, %v1146_v14 }
 0xcd8   :  { %v1099_v3 = vsel %vm3633_vm2, %v3136_v26, %v1092_v59  ;;  %v1173_v40 = vsel %vm2967_vm0, %v1146_v14, %v1167_v25  ;;  %v1098_v9 = vsel %vm3644_vm10, %v2170_v5, %v2175_v36  ;;  %v1244_v33 = vpack.c.b16 %v1242_v8, %v1242_v8 }
 0xcd9   :  { %v1100_v30 = vsel %vm3638_vm5, %v2210_v11, %v2215_v38  ;;  %v1148_v32 = vsel %vm3639_vm14, %v2209_v58, %v2214_v41  ;;  %1258 = vmatpush.bf16.msra.mxu2 %v1230_v42  ;;  %v1122_v26 = vsel %vm2971_vm11, %v1119_v63, %v1098_v9  ;;  %v1125_v58 = vsel %vm2967_vm0, %v1098_v9, %v1119_v63 }
 0xcda   :  { %1270 = vmatpush.bf16.msrb.mxu0 %v1239_v50  ;;  %v1172_v52 = vsel %vm2971_vm11, %v1169_v23, %v1148_v32  ;;  %v1175_v24 = vsel %vm2967_vm0, %v1148_v32, %v1169_v23  ;;  %v1124_v34 = vsel %vm2971_vm11, %v1121_v54, %v1100_v30  ;;  %v1127_v15 = vsel %vm2967_vm0, %v1100_v30, %v1121_v54  ;;  %v1308_v23 = vld [vmem:[%s3527_s4 + $0x8] sm:$0xff] }
 0xcdb   :  { %v1229_v55 = vpack.c.bf16 %v1172_v52, %v1171_v0  ;;  %v1238_v56 = vpack.c.bf16 %v1175_v24, %v1174_v53  ;;  %v1228_v19 = vpack.c.bf16 %v1170_v20, %v1124_v34  ;;  %v1237_v27 = vpack.c.bf16 %v1173_v40, %v1127_v15  ;;  %1326 = vmatpush.msrb.mxu3 %v1308_v23 }
 0xcdc   :  { %v1243_v38 = vunpack.c.h.b16 %v1025_v18  ;;  %vm3648_vm13 = vcmask 7168   ;;  %vm3649_vm12 = vcmask 515072   ;;  %vm3650_vm9 = vcmask 523264  }
 0xcdd   :  { %1259 = vmatpush.bf16.msra.mxu2 %v1229_v55  ;;  %1327 = vmatpush.msrb.mxu3 %v1307_v62  ;;  %vm3651_vm2 = vmmov %vm3650_vm9  ;;  %vm3653_vm10 = vcmask 64512  }
 0xcde   :  { %v1104_v37 = vpop.permute.xlu0 %1103  ;;  %1271 = vmatpush.bf16.msrb.mxu0 %v1238_v56  ;;  %v1245_v41 = vpack.c.b16 %v1243_v38, %v1243_v38  ;;  %v431_v9 = vsel %vm3651_vm2, %v3039_v35, 0.0 }
 0xcdf   :  { %v1120_v39 = vsel %vm3634_vm3, %v1104_v37, %v1113_v7  ;;  %vm3652_vm3 = vcmask 457728  }
 0xce0   :  { %v1123_v61 = vsel %vm2971_vm11, %v1120_v39, %v1099_v3  ;;  %v1126_v29 = vsel %vm2967_vm0, %v1099_v3, %v1120_v39  ;;  %vm3645_vm11 = vcmask 130048  }
 0xce1   :  { %1260 = vmatpush.bf16.msra.mxu2 %v1228_v19  ;;  %v1227_v11 = vpack.c.bf16 %v1123_v61, %v1122_v26  ;;  %v1236_v21 = vpack.c.bf16 %v1126_v29, %v1125_v58  ;;  %vm3646_vm0 = vmmov %vm3645_vm11 }
 0xce2   :  { %1272 = vmatpush.bf16.msrb.mxu0 %v1237_v27  ;;  %vm3647_vm6 = vmmov %vm3646_vm0  ;;  %v435_v27 = vmul.f32 %v3039_v35, %v3039_v35 }
 0xce4   :  { %v436_v8 = vsel %vm3650_vm9, %v435_v27, 0.0 }
 0xce5   :  { %1261 = vmatpush.bf16.msra.mxu2 %v1227_v11 }
 0xce6   :  { %1273 = vmatpush.bf16.msrb.mxu0 %v1236_v21 }
 0xce8   :  { %1262 = vmatmul.bf16.vlgmr.msra.gmra.mxu2 %v1244_v33 }
 0xcea   :  { %1274 = vmatpush.bf16.msrb.mxu0 %v1235_v10 }
 0xced   :  { %1939 = vmatmul.msk.bf16.vlgmr.msrb.gmra.mxu0 %vm1247_vm8, %v1245_v41  ;;  %vm3654_vm8 = vmmov %vm3652_vm3 }
 0xd6a   :  { %v1276_v42 = vpop.f32.mrf.mxu0 }
 0xd6b   :  { %v1263_v51 = vpop.f32.mrf.mxu2 }
 0xd6c   :  { %v1277_v43 = vadd.f32 %v1276_v42, %v1263_v51 }
 0xd6e   :  { %v1280_v44 = vsel %vm3645_vm11, %v1277_v43, 0.0  ;;  %v1284_v48 = vmul.f32 %v1277_v43, %v1277_v43  ;;  %vm3655_vm11 = vmmov %vm3653_vm10 }
 0xd6f   :  { %1281 = vadd.xlane.f32.xlu1 %v1280_v44 }
 0xd70   :  { %v1285_v50 = vsel %vm3646_vm0, %v1284_v48, 0.0  ;;  %vm3656_vm0 = vcmask 1043456  }
 0xd71   :  { %1286 = vadd.xlane.f32.xlu0 %v1285_v50 }
 0xd72   :  { %v1278_v0 = vpop.f32.mrf.mxu0 }
 0xd73   :  { %v1265_v22 = vpop.f32.mrf.mxu2 }
 0xde2   :  { %v1282_v2 = vpop.xlane.xlu1 %1281 }
 0xde3   :  { %v1283_v10 = vmul.f32 0.0625, %v1282_v2 }
 0xde4   :  { %v1287_v30 = vpop.xlane.xlu0 %1286 }
 0xde5   :  { %v1289_v32 = vmul.f32 %v1283_v10, %v1283_v10  ;;  %v1288_v31 = vmul.f32 0.0625, %v1287_v30 }
 0xde7   :  { %v1290_v52 = vsub.f32 %v1288_v31, %v1289_v32 }
 0xde9   :  { %v1291_v53 = vadd.f32 1e-05, %v1290_v52 }
 0xdeb   :  { %2386 = vrsqrt.f32 %v1291_v53  ;;  %vm1298_vm5 = vweird.f32 %v1291_v53 }
 0xdf1   :  { %v2387_v24 = vpop.eup %2386 }
 0xdf2   :  { %v1293_v25 = vmul.f32 %v2387_v24, %v1291_v53  ;;  %vm1299_vm4 = vweird.f32 %v2387_v24 }
 0xdf3   :  { %vm1300_vm14 = vmor %vm1298_vm5, %vm1299_vm4 }
 0xdf4   :  { %v1294_v54 = vmul.f32 %v2387_v24, %v1293_v25  ;;  %vm3657_vm4 = vmmov %vm3653_vm10 }
 0xdf5   :  { %vm3658_vm5 = vmmov %vm3652_vm3 }
 0xdf6   :  { %v1295_v55 = vmul.f32 0.5, %v1294_v54 }
 0xdf8   :  { %v1296_v56 = vsub.f32 1.5, %v1295_v55 }
 0xdfa   :  { %v1297_v57 = vmul.f32 %v2387_v24, %v1296_v56 }
 0xdfc   :  { %v1301_v59 = vsel %vm1300_vm14, %v2387_v24, %v1297_v57  ;;  %vm3659_vm14 = vnez %v3582_v28  ;;  %v1721_v28 = vld [vmem:[%s3528_s5 + $0x70] sm:$0xff] }
 0xdfd   :  { %v1302_v34 = vmul.f32 %v1301_v59, %v1277_v43  ;;  %v1303_v5 = vmul.f32 %v1301_v59, %v1283_v10 }
 0xdff   :  { %v1304_v14 = vsub.f32 %v1302_v34, %v1303_v5 }
 0xe01   :  { %v1305_v15 = vmul.f32 0.01, %v1304_v14 }
 0xe03   :  { %v1306_v18 = vmax.f32 %v1304_v14, %v1305_v15  ;;  %v1332_v14 = vld [vmem:[%s3525_s1 + $0x70] sm:$0xf] }
 0xe05   :  { %1940 = vmatmul.msk.f32.vlgmr.msrb.gmra.mxu3 %vm3647_vm6, %v1306_v18  ;;  %vm3660_vm6 = vcmask 588800  }
 0xe88   :  { %v1329_v36 = vpop.f32.mrf.mxu3 }
 0xe89   :  { %1334 = vrot.lane.b32.xlu2 %v1329_v36, %s2408_s2 }
 0xe91   :  { %1337 = vrot.lane.b32.xlu2 %v1329_v36, %s2404_s25 }
 0xe99   :  { %1341 = vrot.lane.b32.xlu2 %v1329_v36, %s2405_s26 }
 0xea1   :  { %1344 = vrot.lane.b32.xlu2 %v1329_v36, %s2409_s7 }
 0xea9   :  { %1367 = vrot.lane.b32.xlu2 %v1329_v36, %s2410_s8 }
 0xee3   :  { %v1335_v63 = vpop.permute.xlu2 %1334 }
 0xeeb   :  { %v1338_v7 = vpop.permute.xlu2 %1337 }
 0xeec   :  { %v1340_v3 = vsel %vm3648_vm13, %v1335_v63, %v1338_v7 }
 0xef3   :  { %v1342_v37 = vpop.permute.xlu2 %1341 }
 0xefb   :  { %v1345_v20 = vpop.permute.xlu2 %1344 }
 0xefc   :  { %v1347_v39 = vsel %vm3649_vm12, %v1342_v37, %v1345_v20 }
 0xefd   :  { %v1348_v19 = vsel %vm2760_vm15, %v1347_v39, %v1340_v3  ;;  %v1349_v40 = vsel %vm2764_vm1, %v1340_v3, %v1347_v39 }
 0xefe   :  { %v2236_v61 = vpack.i.bf16 %v1348_v19, %v1349_v40  ;;  %v1402_v55 = vpack.c.bf16 %v1349_v40, %v1329_v36 }
 0xf00   :  { %2237 = vrot.lane.b32.xlu0 %v2236_v61, %s2413_s11  ;;  %2232 = vrot.lane.b32.xlu1 %v2236_v61, %s2412_s10 }
 0xf01   :  { %2227 = vrot.lane.b32.xlu2 %v2236_v61, %s2410_s8 }
 0xf03   :  { %v1368_v29 = vpop.permute.xlu2 %1367 }
 0xf08   :  { %1374 = vrot.lane.b32.xlu0 %v1329_v36, %s2413_s11  ;;  %1377 = vrot.lane.b32.xlu1 %v1329_v36, %s2411_s9 }
 0xf09   :  { %2242 = vrot.lane.b32.xlu2 %v2236_v61, %s2411_s9 }
 0xf11   :  { %1370 = vrot.lane.b32.xlu2 %v1329_v36, %s2412_s10 }
 0xf32   :  { %437 = vadd.xlane.f32.xlu1 %v436_v8 }
 0xf3a   :  { %432 = vadd.xlane.f32.xlu2 %v431_v9 }
 0xf5b   :  { %v2228_v26 = vpop.permute.xlu2 %2227 }
 0xf5c   :  { %v2229_v33 = vunpack.i.l.bf16 %v2228_v26  ;;  %v2230_v0 = vunpack.i.h.bf16 %v2228_v26 }
 0xf63   :  { %v2243_v11 = vpop.permute.xlu2 %2242 }
 0xf64   :  { %v2244_v38 = vunpack.i.l.bf16 %v2243_v11  ;;  %v2245_v22 = vunpack.i.h.bf16 %v2243_v11 }
 0xf6b   :  { %v1371_v62 = vpop.permute.xlu2 %1370 }
 0xf6c   :  { %v1373_v52 = vsel %vm3657_vm4, %v1368_v29, %v1371_v62  ;;  %vm3663_vm4 = vmmov %vm3651_vm2 }
 0xf72   :  { %v2238_v58 = vpop.permute.xlu0 %2237  ;;  %v2233_v21 = vpop.permute.xlu1 %2232 }
 0xf73   :  { %v2239_v41 = vunpack.i.l.bf16 %v2238_v58  ;;  %v2234_v42 = vunpack.i.l.bf16 %v2233_v21  ;;  %v2240_v51 = vunpack.i.h.bf16 %v2238_v58  ;;  %v2235_v44 = vunpack.i.h.bf16 %v2233_v21 }
 0xf75   :  { %v1397_v43 = vsel %vm3652_vm3, %v2239_v41, %v2244_v38  ;;  %v1390_v48 = vsel %vm3653_vm10, %v2229_v33, %v2234_v42  ;;  %v1364_v2 = vsel %vm3654_vm8, %v2240_v51, %v2245_v22  ;;  %v1357_v10 = vsel %vm3655_vm11, %v2230_v0, %v2235_v44  ;;  %vm3661_vm3 = vmmov %vm3651_vm2 }
 0xf76   :  { %v1399_v50 = vsel %vm2785_vm7, %v1390_v48, %v1397_v43  ;;  %v1366_v25 = vsel %vm2785_vm7, %v1357_v10, %v1364_v2  ;;  %v1398_v56 = vsel %vm3659_vm14, %v1397_v43, %v1390_v48  ;;  %v1365_v34 = vsel %vm3659_vm14, %v1364_v2, %v1357_v10  ;;  %vm3662_vm10 = vmmov %vm3651_vm2 }
 0xf77   :  { %v1404_v23 = vpack.c.bf16 %v1399_v50, %v1399_v50  ;;  %v1401_v57 = vpack.c.bf16 %v1348_v19, %v1398_v56 }
 0xf79   :  { %v1409_v30 = vsel %vm3656_vm0, %v1404_v23, 0 }
 0xf7a   :  { %v1375_v32 = vpop.permute.xlu0 %1374  ;;  %v1378_v31 = vpop.permute.xlu1 %1377  ;;  %1414 = vmatpush.bf16.msrb.mxu1 %v1409_v30 }
 0xf7b   :  { %v1380_v53 = vsel %vm3658_vm5, %v1375_v32, %v1378_v31  ;;  %vm3664_vm5 = vmmov %vm3651_vm2 }
 0xf7c   :  { %v1382_v24 = vsel %vm2785_vm7, %v1373_v52, %v1380_v53  ;;  %v1381_v59 = vsel %vm3659_vm14, %v1380_v53, %v1373_v52 }
 0xf7d   :  { %v1403_v54 = vpack.c.bf16 %v1382_v24, %v1366_v25  ;;  %v1400_v5 = vpack.c.bf16 %v1381_v59, %v1365_v34 }
 0xf7f   :  { %1415 = vmatpush.bf16.msrb.mxu1 %v1403_v54 }
 0xf83   :  { %1416 = vmatpush.bf16.msrb.mxu1 %v1402_v55 }
 0xf87   :  { %1417 = vmatpush.bf16.msrb.mxu1 %v1401_v57 }
 0xf8b   :  { %1418 = vmatpush.bf16.msrb.mxu1 %v1400_v5 }
 0xf8e   :  { %1941 = vmatmul.msk.bf16.vlgmr.msrb.gmra.mxu1 %vm3660_vm6, %v1332_v14  ;;  %vm3665_vm6 = vmmov %vm3651_vm2 }
 0xf8f   :  { %1734 = vmatpush.msra.mxu1 %v1721_v28 }
 0xfa5   :  { %v438_v36 = vpop.xlane.xlu1 %437 }
 0xfa6   :  { %v439_v7 = vmul.f32 0.015625, %v438_v36 }
 0xfad   :  { %v433_v15 = vpop.xlane.xlu2 %432 }
 0xfae   :  { %v434_v18 = vmul.f32 0.015625, %v433_v15 }
 0xfb0   :  { %v440_v63 = vmul.f32 %v434_v18, %v434_v18 }
 0xfb2   :  { %v441_v37 = vsub.f32 %v439_v7, %v440_v63 }
 0xfb4   :  { %v442_v20 = vadd.f32 1e-05, %v441_v37 }
 0xfb6   :  { %2388 = vrsqrt.f32 %v442_v20  ;;  %vm449_vm12 = vweird.f32 %v442_v20 }
 0xfbc   :  { %v2389_v3 = vpop.eup %2388 }
 0xfbd   :  { %v444_v39 = vmul.f32 %v2389_v3, %v442_v20  ;;  %vm450_vm13 = vweird.f32 %v2389_v3 }
 0xfbe   :  { %vm451_vm9 = vmor %vm449_vm12, %vm450_vm13 }
 0xfbf   :  { %v445_v19 = vmul.f32 %v2389_v3, %v444_v39 }
 0xfc1   :  { %v446_v40 = vmul.f32 0.5, %v445_v19 }
 0xfc3   :  { %v447_v61 = vsub.f32 1.5, %v446_v40 }
 0xfc5   :  { %v448_v27 = vmul.f32 %v2389_v3, %v447_v61 }
 0xfc7   :  { %v452_v8 = vsel %vm451_vm9, %v2389_v3, %v448_v27 }
 0xfc8   :  { %v453_v9 = vmul.f32 %v452_v8, %v3039_v35  ;;  %v454_v29 = vmul.f32 %v452_v8, %v434_v18 }
 0xfca   :  { %v455_v26 = vsub.f32 %v453_v9, %v454_v29 }
 0xfcc   :  { %v456_v33 = vmul.f32 0.01, %v455_v26 }
 0xfce   :  { %v3267_v41 = vmax.f32 %v455_v26, %v456_v33 }
 0xfd0   :  { %v1454_v51 = vsel %vm3662_vm10, %v3267_v41, 0.0  ;;  %v1460_v59 = vmul.f32 %v3267_v41, %v3267_v41 }
 0xfd2   :  { %v1464_v34 = vsel %vm3665_vm6, %v1460_v59, 0.0 }
0x100b   :  { %v1420_v11 = vpop.f32.mrf.mxu1 }
0x100c   :  { %v1424_v58 = vsel %vm3651_vm2, %v1420_v11, 0.0  ;;  %v1428_v21 = vmul.f32 %v1420_v11, %v1420_v11 }
0x100d   :  { %1425 = vadd.xlane.f32.xlu0 %v1424_v58 }
0x100e   :  { %v1429_v38 = vsel %vm3661_vm3, %v1428_v21, 0.0 }
0x100f   :  { %1430 = vadd.xlane.f32.xlu2 %v1429_v38 }
0x1013   :  { %v1422_v42 = vpop.f32.mrf.mxu1 }
0x1017   :  { %1455 = vadd.xlane.f32.xlu2 %v1454_v51 }
0x1080   :  { %v1426_v43 = vpop.xlane.xlu0 %1425 }
0x1081   :  { %v1427_v35 = vmul.f32 0.015625, %v1426_v43 }
0x1082   :  { %v1431_v44 = vpop.xlane.xlu2 %1430 }
0x1083   :  { %v1433_v48 = vmul.f32 %v1427_v35, %v1427_v35  ;;  %v1432_v50 = vmul.f32 0.015625, %v1431_v44 }
0x1085   :  { %v1434_v0 = vsub.f32 %v1432_v50, %v1433_v48 }
0x1087   :  { %v1435_v22 = vadd.f32 1e-05, %v1434_v0 }
0x1089   :  { %2390 = vrsqrt.f32 %v1435_v22  ;;  %vm1442_vm11 = vweird.f32 %v1435_v22 }
0x108a   :  { %v1456_v15 = vpop.xlane.xlu2 %1455 }
0x108b   :  { %v1458_v7 = vmul.f32 0.015625, %v1456_v15 }
0x108d   :  { %v1470_v39 = vmul.f32 %v1458_v7, %v1458_v7 }
0x108f   :  { %v2391_v23 = vpop.eup %2390 }
0x1090   :  { %v1437_v62 = vmul.f32 %v2391_v23, %v1435_v22  ;;  %vm1443_vm8 = vweird.f32 %v2391_v23 }
0x1091   :  { %vm1444_vm0 = vmor %vm1442_vm11, %vm1443_vm8  ;;  %vm3666_vm8 = vcmask 515072  }
0x1092   :  { %v1438_v2 = vmul.f32 %v2391_v23, %v1437_v62  ;;  %vm3667_vm11 = vmmov %vm3666_vm8 }
0x1094   :  { %v1439_v10 = vmul.f32 0.5, %v1438_v2 }
0x1096   :  { %v1440_v30 = vsub.f32 1.5, %v1439_v10 }
0x1098   :  { %v1441_v32 = vmul.f32 %v2391_v23, %v1440_v30 }
0x109a   :  { %v1445_v31 = vsel %vm1444_vm0, %v2391_v23, %v1441_v32  ;;  %vm3668_vm0 = vcmask 7168  }
0x109b   :  { %v1446_v52 = vmul.f32 %v1445_v31, %v1420_v11  ;;  %v1447_v53 = vmul.f32 %v1445_v31, %v1427_v35 }
0x109d   :  { %v1448_v24 = vsub.f32 %v1446_v52, %v1447_v53 }
0x109f   :  { %v1449_v25 = vmul.f32 0.01, %v1448_v24 }
0x10a1   :  { %v1450_v54 = vmax.f32 %v1448_v24, %v1449_v25 }
0x10a3   :  { %v1451_v55 = vsel %vm3663_vm4, %v1450_v54, 0.0  ;;  %v1459_v56 = vmul.f32 %v1450_v54, %v1450_v54  ;;  %vm3669_vm4 = vmmov %vm3668_vm0 }
0x10a4   :  { %1452 = vadd.xlane.f32.xlu0 %v1451_v55 }
0x10a5   :  { %v1461_v57 = vsel %vm3664_vm5, %v1459_v56, 0.0  ;;  %vm3672_vm5 = vcmask 457728  }
0x10a6   :  { %1462 = vadd.xlane.f32.xlu1 %v1461_v57  ;;  %vm3673_vm6 = vmmov %vm3672_vm5 }
0x10ac   :  { %1465 = vadd.xlane.f32.xlu0 %v1464_v34 }
0x1117   :  { %v1453_v5 = vpop.xlane.xlu0 %1452 }
0x1118   :  { %v1457_v14 = vmul.f32 0.015625, %v1453_v5 }
0x1119   :  { %v1463_v18 = vpop.xlane.xlu1 %1462 }
0x111a   :  { %v1469_v36 = vmul.f32 %v1457_v14, %v1457_v14  ;;  %v1467_v63 = vmul.f32 0.015625, %v1463_v18 }
0x111c   :  { %v1471_v37 = vsub.f32 %v1467_v63, %v1469_v36 }
0x111e   :  { %v1473_v20 = vadd.f32 1e-05, %v1471_v37 }
0x111f   :  { %v1466_v3 = vpop.xlane.xlu0 %1465 }
0x1120   :  { %2392 = vrsqrt.f32 %v1473_v20  ;;  %v1468_v19 = vmul.f32 0.015625, %v1466_v3  ;;  %vm1481_vm12 = vweird.f32 %v1473_v20 }
0x1122   :  { %v1472_v40 = vsub.f32 %v1468_v19, %v1470_v39 }
0x1124   :  { %v1474_v61 = vadd.f32 1e-05, %v1472_v40 }
0x1126   :  { %v2393_v27 = vpop.eup %2392  ;;  %2394 = vrsqrt.f32 %v1474_v61  ;;  %vm1491_vm3 = vweird.f32 %v1474_v61 }
0x1127   :  { %v1476_v8 = vmul.f32 %v2393_v27, %v1473_v20  ;;  %vm1482_vm13 = vweird.f32 %v2393_v27 }
0x1128   :  { %vm1483_vm9 = vmor %vm1481_vm12, %vm1482_vm13 }
0x1129   :  { %v1477_v9 = vmul.f32 %v2393_v27, %v1476_v8 }
0x112b   :  { %v1478_v29 = vmul.f32 0.5, %v1477_v9 }
0x112c   :  { %v2395_v26 = vpop.eup %2394 }
0x112d   :  { %v1479_v11 = vsub.f32 1.5, %v1478_v29  ;;  %v1486_v58 = vmul.f32 %v2395_v26, %v1474_v61  ;;  %vm1492_vm2 = vweird.f32 %v2395_v26 }
0x112e   :  { %vm1493_vm10 = vmor %vm1491_vm3, %vm1492_vm2 }
0x112f   :  { %v1480_v21 = vmul.f32 %v2393_v27, %v1479_v11  ;;  %v1487_v33 = vmul.f32 %v2395_v26, %v1486_v58  ;;  %vm3677_vm2 = vmmov %vm3672_vm5 }
0x1131   :  { %v1488_v38 = vmul.f32 0.5, %v1487_v33  ;;  %v1484_v42 = vsel %vm1483_vm9, %v2393_v27, %v1480_v21  ;;  %vm3676_vm9 = vmmov %vm3672_vm5 }
0x1132   :  { %v1495_v35 = vmul.f32 %v1484_v42, %v1450_v54  ;;  %v1497_v44 = vmul.f32 %v1484_v42, %v1457_v14 }
0x1133   :  { %v1489_v51 = vsub.f32 1.5, %v1488_v38 }
0x1134   :  { %v3277_v22 = vsub.f32 %v1495_v35, %v1497_v44 }
0x1135   :  { %v1490_v43 = vmul.f32 %v2395_v26, %v1489_v51 }
0x1137   :  { %v1494_v48 = vsel %vm1493_vm10, %v2395_v26, %v1490_v43 }
0x1138   :  { %v1496_v50 = vmul.f32 %v1494_v48, %v3267_v41  ;;  %v1498_v0 = vmul.f32 %v1494_v48, %v1458_v7 }
0x113a   :  { %v3279_v23 = vsub.f32 %v1496_v50, %v1498_v0 }
0x113c   :  { %v2256_v62 = vpack.i.bf16 %v3279_v23, %v3277_v22  ;;  %v1640_v2 = vpack.c.bf16 %v3279_v23, %v3277_v22 }
0x113e   :  { %2257 = vrot.lane.b32.xlu0 %v2256_v62, %s2405_s26  ;;  %2252 = vrot.lane.b32.xlu1 %v2256_v62, %s2404_s25 }
0x113f   :  { %2247 = vrot.lane.b32.xlu2 %v2256_v62, %s2408_s2 }
0x1146   :  { %2267 = vrot.lane.b32.xlu0 %v2256_v62, %s2410_s8  ;;  %2272 = vrot.lane.b32.xlu1 %v2256_v62, %s2412_s10 }
0x1147   :  { %2262 = vrot.lane.b32.xlu2 %v2256_v62, %s2409_s7 }
0x114e   :  { %2282 = vrot.lane.b32.xlu0 %v2256_v62, %s2411_s9 }
0x114f   :  { %2277 = vrot.lane.b32.xlu2 %v2256_v62, %s2413_s11 }
0x1199   :  { %v2248_v41 = vpop.permute.xlu2 %2247 }
0x119a   :  { %v2250_v30 = vunpack.i.h.bf16 %v2248_v41  ;;  %v2249_v32 = vunpack.i.l.bf16 %v2248_v41 }
0x11a1   :  { %v2263_v10 = vpop.permute.xlu2 %2262 }
0x11a2   :  { %v2265_v31 = vunpack.i.h.bf16 %v2263_v10  ;;  %v2264_v52 = vunpack.i.l.bf16 %v2263_v10 }
0x11a9   :  { %v2278_v3 = vpop.permute.xlu2 %2277 }
0x11aa   :  { %v2280_v8 = vunpack.i.h.bf16 %v2278_v3  ;;  %v2279_v9 = vunpack.i.l.bf16 %v2278_v3  ;;  %v1501_v3 = vld [vmem:[%s3525_s1 + $0x80] sm:$0xff] }
0x11ab   :  { %v1646_v23 = vunpack.c.l.b16 %v1501_v3 }
0x11b0   :  { %v2258_v53 = vpop.permute.xlu0 %2257  ;;  %v2253_v24 = vpop.permute.xlu1 %2252 }
0x11b1   :  { %v2260_v25 = vunpack.i.h.bf16 %v2258_v53  ;;  %v2259_v54 = vunpack.i.l.bf16 %v2258_v53  ;;  %v2255_v55 = vunpack.i.h.bf16 %v2253_v24  ;;  %v2254_v56 = vunpack.i.l.bf16 %v2253_v24 }
0x11b3   :  { %v1530_v57 = vsel %vm3666_vm8, %v2259_v54, %v2264_v52  ;;  %v1531_v59 = vsel %vm3667_vm11, %v2260_v25, %v2265_v31  ;;  %v1516_v34 = vsel %vm3668_vm0, %v2249_v32, %v2254_v56  ;;  %v1517_v5 = vsel %vm3669_vm4, %v2250_v30, %v2255_v55  ;;  %vm3680_vm8 = vmmov %vm3677_vm2 }
0x11b4   :  { %v3299_v14 = vsel %vm2760_vm15, %v1530_v57, %v1516_v34  ;;  %v3303_v15 = vsel %vm2760_vm15, %v1531_v59, %v1517_v5  ;;  %v3307_v18 = vsel %vm2764_vm1, %v1516_v34, %v1530_v57  ;;  %v3311_v36 = vsel %vm2764_vm1, %v1517_v5, %v1531_v59  ;;  %vm3681_vm11 = vmmov %vm3677_vm2 }
0x11b5   :  { %v2296_v63 = vpack.i.bf16 %v3303_v15, %v3299_v14  ;;  %v1641_v1 = vpack.c.bf16 %v3311_v36, %v3307_v18  ;;  %v1639_v7 = vpack.c.bf16 %v3303_v15, %v3299_v14  ;;  %v2311_v6 = vpack.i.bf16 %v3311_v36, %v3307_v18 }
0x11b6   :  { %vm3670_vm1 = vcmask 64512   ;;  %vm3682_vm0 = vcmask 130048  }
0x11b7   :  { %2297 = vrot.lane.b32.xlu0 %v2296_v63, %s2413_s11  ;;  %2292 = vrot.lane.b32.xlu2 %v2296_v63, %s2412_s10  ;;  %vm3671_vm15 = vmmov %vm3670_vm1 }
0x11b8   :  { %2287 = vrot.lane.b32.xlu1 %v2296_v63, %s2410_s8  ;;  %v2268_v37 = vpop.permute.xlu0 %2267  ;;  %v2273_v20 = vpop.permute.xlu1 %2272  ;;  %vm3674_vm13 = vmmov %vm3670_vm1 }
0x11b9   :  { %v2270_v39 = vunpack.i.h.bf16 %v2268_v37  ;;  %v2269_v19 = vunpack.i.l.bf16 %v2268_v37  ;;  %v2275_v40 = vunpack.i.h.bf16 %v2273_v20  ;;  %v2274_v61 = vunpack.i.l.bf16 %v2273_v20  ;;  %vm3675_vm12 = vmmov %vm3670_vm1 }
0x11ba   :  { %vm3678_vm3 = vmmov %vm3670_vm1 }
0x11bb   :  { %v1583_v11 = vsel %vm3670_vm1, %v2270_v39, %v2275_v40  ;;  %v1582_v58 = vsel %vm3671_vm15, %v2269_v19, %v2274_v61  ;;  %vm3679_vm10 = vmmov %vm3670_vm1 }
0x11bf   :  { %2312 = vrot.lane.b32.xlu0 %v2311_v6, %s2412_s10  ;;  %2307 = vrot.lane.b32.xlu2 %v2311_v6, %s2410_s8 }
0x11c0   :  { %2302 = vrot.lane.b32.xlu1 %v2296_v63, %s2411_s9  ;;  %v2283_v27 = vpop.permute.xlu0 %2282 }
0x11c1   :  { %v2285_v29 = vunpack.i.h.bf16 %v2283_v27  ;;  %v2284_v26 = vunpack.i.l.bf16 %v2283_v27 }
0x11c3   :  { %v1596_v21 = vsel %vm3672_vm5, %v2279_v9, %v2284_v26  ;;  %v1597_v33 = vsel %vm3673_vm6, %v2280_v8, %v2285_v29  ;;  %v1647_v29 = vunpack.c.h.b16 %v1501_v3  ;;  %v1708_v3 = vld [vmem:[%s3528_s5 + $0x8] sm:$0xff] }
0x11c4   :  { %v1600_v38 = vsel %vm2785_vm7, %v1582_v58, %v1596_v21  ;;  %v1601_v42 = vsel %vm2785_vm7, %v1583_v11, %v1597_v33  ;;  %v1598_v51 = vsel %vm3659_vm14, %v1596_v21, %v1582_v58  ;;  %v1599_v43 = vsel %vm3659_vm14, %v1597_v33, %v1583_v11 }
0x11c5   :  { %v1643_v35 = vpack.c.bf16 %v1601_v42, %v1600_v38  ;;  %v1637_v44 = vpack.c.bf16 %v1599_v43, %v1598_v51  ;;  %v1649_v51 = vpack.c.b16 %v1647_v29, %v1647_v29 }
0x11c7   :  { %1654 = vmatpush.bf16.msra.mxu0 %v1643_v35  ;;  %2322 = vrot.lane.b32.xlu2 %v2311_v6, %s2411_s9 }
0x11c8   :  { %2317 = vrot.lane.b32.xlu1 %v2311_v6, %s2413_s11 }
0x1211   :  { %v2293_v48 = vpop.permute.xlu2 %2292 }
0x1212   :  { %v2295_v30 = vunpack.i.h.bf16 %v2293_v48  ;;  %v2294_v32 = vunpack.i.l.bf16 %v2293_v48 }
0x1219   :  { %v2308_v62 = vpop.permute.xlu2 %2307 }
0x121a   :  { %v2310_v39 = vunpack.i.h.bf16 %v2308_v62  ;;  %v2309_v19 = vunpack.i.l.bf16 %v2308_v62 }
0x1221   :  { %v2323_v37 = vpop.permute.xlu2 %2322 }
0x1222   :  { %v2325_v61 = vunpack.i.h.bf16 %v2323_v37  ;;  %v2324_v27 = vunpack.i.l.bf16 %v2323_v37  ;;  %v1712_v37 = vld [vmem:[%s3528_s5 + $0x28] sm:$0xff] }
0x1229   :  { %v2298_v0 = vpop.permute.xlu0 %2297 }
0x122a   :  { %v2288_v50 = vpop.permute.xlu1 %2287  ;;  %v2300_v52 = vunpack.i.h.bf16 %v2298_v0  ;;  %v2299_v53 = vunpack.i.l.bf16 %v2298_v0 }
0x122b   :  { %v2290_v41 = vunpack.i.h.bf16 %v2288_v50  ;;  %v2289_v10 = vunpack.i.l.bf16 %v2288_v50 }
0x122d   :  { %v1551_v54 = vsel %vm3674_vm13, %v2290_v41, %v2295_v30  ;;  %v1550_v55 = vsel %vm3675_vm12, %v2289_v10, %v2294_v32  ;;  %v1717_v41 = vld [vmem:[%s3528_s5 + $0x50] sm:$0xff]  ;;  %v1715_v10 = vld [vmem:[%s3528_s5 + $0x40] sm:$0xff]  ;;  %vm3687_vm13 = vcmp.lt.s32.totalorder %v2470_v4, 1 }
0x122e   :  { %v1713_v30 = vld [vmem:[%s3528_s5 + $0x30] sm:$0xff]  ;;  %v1711_v32 = vld [vmem:[%s3528_s5 + $0x20] sm:$0xff]  ;;  %vm3688_vm12 = vmmov %vm3687_vm13 }
0x1231   :  { %v2313_v59 = vpop.permute.xlu0 %2312 }
0x1232   :  { %v2303_v31 = vpop.permute.xlu1 %2302  ;;  %v2315_v20 = vunpack.i.h.bf16 %v2313_v59  ;;  %v2314_v6 = vunpack.i.l.bf16 %v2313_v59 }
0x1233   :  { %v2305_v24 = vunpack.i.h.bf16 %v2303_v31  ;;  %v2304_v25 = vunpack.i.l.bf16 %v2303_v31  ;;  %v1709_v31 = vld [vmem:[%s3528_s5 + $0x10] sm:$0xff] }
0x1234   :  { %v1616_v26 = vsel %vm3678_vm3, %v2309_v19, %v2314_v6  ;;  %v1617_v11 = vsel %vm3679_vm10, %v2310_v39, %v2315_v20  ;;  %v1710_v6 = vld [vmem:[%s3528_s5 + $0x18] sm:$0xff]  ;;  %vm3691_vm3 = vnez %v3560_v12  ;;  %vm3692_vm10 = vnez %v3562_v13 }
0x1235   :  { %v1565_v56 = vsel %vm3676_vm9, %v2300_v52, %v2305_v24  ;;  %v1564_v57 = vsel %vm3677_vm2, %v2299_v53, %v2304_v25  ;;  %v1707_v52 = vld [vmem:[%s3528_s5] sm:$0xff]  ;;  %v1722_v53 = vld [vmem:[%s3528_s5 + $0x78] sm:$0xff]  ;;  %v1720_v24 = vld [vmem:[%s3528_s5 + $0x68] sm:$0xff]  ;;  %vm3689_vm9 = vcmp.lt.s32.totalorder %v2470_v4, 127 }
0x1236   :  { %v1568_v34 = vsel %vm2785_vm7, %v1550_v55, %v1564_v57  ;;  %v1569_v5 = vsel %vm2785_vm7, %v1551_v54, %v1565_v56  ;;  %v1566_v36 = vsel %vm3659_vm14, %v1564_v57, %v1550_v55  ;;  %v1567_v22 = vsel %vm3659_vm14, %v1565_v56, %v1551_v54  ;;  %v1718_v25 = vld [vmem:[%s3528_s5 + $0x58] sm:$0xff]  ;;  %v1716_v56 = vld [vmem:[%s3528_s5 + $0x48] sm:$0xff]  ;;  %vm3690_vm2 = vmmov %vm3689_vm9 }
0x1237   :  { %v1642_v63 = vpack.c.bf16 %v1569_v5, %v1568_v34  ;;  %v1714_v5 = vld [vmem:[%s3528_s5 + $0x38] sm:$0xff] }
0x1239   :  { %1655 = vmatpush.bf16.msra.mxu0 %v1642_v63 }
0x123a   :  { %v2318_v40 = vpop.permute.xlu1 %2317 }
0x123b   :  { %v2320_v8 = vunpack.i.h.bf16 %v2318_v40  ;;  %v2319_v9 = vunpack.i.l.bf16 %v2318_v40 }
0x123d   :  { %v1631_v58 = vsel %vm3680_vm8, %v2320_v8, %v2325_v61  ;;  %v1630_v21 = vsel %vm3681_vm11, %v2319_v9, %v2324_v27  ;;  %1656 = vmatpush.bf16.msra.mxu0 %v1641_v1  ;;  %v1648_v1 = vpack.c.b16 %v1646_v23, %v1646_v23  ;;  %vm3693_vm8 = vnez %v3564_v16 }
0x123e   :  { %v1634_v33 = vsel %vm2785_vm7, %v1616_v26, %v1630_v21  ;;  %v1635_v38 = vsel %vm2785_vm7, %v1617_v11, %v1631_v58  ;;  %v1632_v43 = vsel %vm3659_vm14, %v1630_v21, %v1616_v26  ;;  %v1633_v18 = vsel %vm3659_vm14, %v1631_v58, %v1617_v11 }
0x123f   :  { %v1644_v42 = vpack.c.bf16 %v1635_v38, %v1634_v33  ;;  %v1638_v60 = vpack.c.bf16 %v1633_v18, %v1632_v43  ;;  %vm3683_vm7 = vcmask 523264   ;;  %vm3694_vm11 = vnez %v3566_v17 }
0x1240   :  { %vm3684_vm4 = vmmov %vm3683_vm7 }
0x1241   :  { %1657 = vmatpush.bf16.msra.mxu0 %v1640_v2  ;;  %1674 = vmatpush.bf16.msra.mxu3 %v1644_v42  ;;  %v1636_v2 = vpack.c.bf16 %v1567_v22, %v1566_v36  ;;  %vm3685_vm5 = vmmov %vm3684_vm4 }
0x1242   :  { %vm3686_vm6 = vmmov %vm3684_vm4 }
0x1244   :  { %1942 = vmatmul.msk.bf16.vlgmr.msra.gmra.mxu3 %vm3682_vm0, %v1649_v51  ;;  %vm3695_vm0 = vcmp.lt.s32.totalorder %v2470_v4, 16 }
0x1245   :  { %1658 = vmatpush.bf16.msra.mxu0 %v1639_v7 }
0x1249   :  { %1659 = vmatpush.bf16.msra.mxu0 %v1638_v60 }
0x124d   :  { %1660 = vmatpush.bf16.msra.mxu0 %v1637_v44  ;;  %v1719_v44 = vld [vmem:[%s3528_s5 + $0x60] sm:$0xff] }
0x124e   :  { %1735 = vmatpush.msra.mxu1 %v1719_v44 }
0x1250   :  { %1736 = vmatpush.msra.mxu1 %v1717_v41 }
0x1251   :  { %1661 = vmatpush.bf16.msra.mxu0 %v1636_v2 }
0x1252   :  { %1737 = vmatpush.msra.mxu1 %v1715_v10 }
0x1254   :  { %1662 = vmatmul.bf16.vlgmr.msra.gmra.mxu0 %v1648_v1  ;;  %1738 = vmatpush.msra.mxu1 %v1713_v30 }
0x1256   :  { %1739 = vmatpush.msra.mxu1 %v1711_v32 }
0x1258   :  { %1740 = vmatpush.msra.mxu1 %v1709_v31 }
0x125a   :  { %1741 = vmatpush.msra.mxu1 %v1707_v52 }
0x125c   :  { %1754 = vmatpush.msrb.mxu1 %v1722_v53 }
0x125e   :  { %1755 = vmatpush.msrb.mxu1 %v1720_v24 }
0x1260   :  { %1756 = vmatpush.msrb.mxu1 %v1718_v25 }
0x1262   :  { %1757 = vmatpush.msrb.mxu1 %v1716_v56 }
0x1264   :  { %1758 = vmatpush.msrb.mxu1 %v1714_v5 }
0x1266   :  { %1759 = vmatpush.msrb.mxu1 %v1712_v37 }
0x1268   :  { %1760 = vmatpush.msrb.mxu1 %v1710_v6 }
0x126a   :  { %1761 = vmatpush.msrb.mxu1 %v1708_v3 }
0x12c7   :  { %v1676_v35 = vpop.f32.mrf.mxu3 }
0x12cf   :  { %v1678_v48 = vpop.f32.mrf.mxu3 }
0x12d1   :  { %v1663_v50 = vpop.f32.mrf.mxu0 }
0x12d2   :  { %v1677_v0 = vadd.f32 %v1676_v35, %v1663_v50 }
0x12d4   :  { %v1680_v14 = vsel %vm3683_vm7, %v1677_v0, 0.0  ;;  %v1684_v15 = vmul.f32 %v1677_v0, %v1677_v0  ;;  %vm3696_vm7 = vmmov %vm3695_vm0 }
0x12d5   :  { %1681 = vadd.xlane.f32.xlu0 %v1680_v14 }
0x12d6   :  { %v1685_v7 = vsel %vm3684_vm4, %v1684_v15, 0.0  ;;  %vm3697_vm4 = vcmp.lt.s32.totalorder %v2470_v4, 112 }
0x12d7   :  { %1686 = vadd.xlane.f32.xlu1 %v1685_v7 }
0x12d9   :  { %v1665_v62 = vpop.f32.mrf.mxu0 }
0x1348   :  { %v1682_v54 = vpop.xlane.xlu0 %1681 }
0x1349   :  { %v1683_v55 = vmul.f32 0.015625, %v1682_v54 }
0x134a   :  { %v1687_v57 = vpop.xlane.xlu1 %1686 }
0x134b   :  { %v1689_v59 = vmul.f32 %v1683_v55, %v1683_v55  ;;  %v1688_v34 = vmul.f32 0.015625, %v1687_v57 }
0x134d   :  { %v1690_v63 = vsub.f32 %v1688_v34, %v1689_v59 }
0x134f   :  { %v1691_v20 = vadd.f32 1e-05, %v1690_v63 }
0x1351   :  { %2396 = vrsqrt.f32 %v1691_v20  ;;  %vm1698_vm1 = vweird.f32 %v1691_v20 }
0x1357   :  { %v2397_v39 = vpop.eup %2396 }
0x1358   :  { %v1693_v19 = vmul.f32 %v2397_v39, %v1691_v20  ;;  %vm1699_vm14 = vweird.f32 %v2397_v39 }
0x1359   :  { %vm1700_vm15 = vmor %vm1698_vm1, %vm1699_vm14  ;;  %vm3699_vm1 = vnez %v3568_v45 }
0x135a   :  { %v1694_v40 = vmul.f32 %v2397_v39, %v1693_v19  ;;  %vm3698_vm14 = vmmov %vm3697_vm4 }
0x135c   :  { %v1695_v61 = vmul.f32 0.5, %v1694_v40 }
0x135e   :  { %v1696_v27 = vsub.f32 1.5, %v1695_v61 }
0x1360   :  { %v1697_v8 = vmul.f32 %v2397_v39, %v1696_v27 }
0x1362   :  { %v1701_v9 = vsel %vm1700_vm15, %v2397_v39, %v1697_v8  ;;  %vm3700_vm15 = vnez %v3570_v49 }
0x1363   :  { %v1702_v29 = vmul.f32 %v1701_v9, %v1677_v0  ;;  %v1703_v26 = vmul.f32 %v1701_v9, %v1683_v55 }
0x1365   :  { %v1704_v11 = vsub.f32 %v1702_v29, %v1703_v26 }
0x1367   :  { %v1705_v58 = vmul.f32 0.01, %v1704_v11 }
0x1369   :  { %v1706_v21 = vmax.f32 %v1704_v11, %v1705_v58 }
0x136b   :  { %1943 = vmatmul.msk.f32.vlgmr.msra.gmra.mxu1 %vm3685_vm5, %v1706_v21  ;;  %vm3701_vm5 = vcmask 1043456  }
0x1373   :  { %1944 = vmatmul.msk.f32.vlgmr.msrb.gmra.mxu1 %vm3686_vm6, %v1706_v21  ;;  %vm3702_vm6 = vmmov %vm3701_vm5 }
0x13e8   :  { %v3430_v33 = vpop.f32.mrf.mxu1 }
0x13f0   :  { %v3432_v38 = vpop.f32.mrf.mxu1 }
0x13f1   :  { %v2356_v42 = vpack.i.bf16 %v3432_v38, %v3430_v33 }
0x13f3   :  { %2357 = vrot.lane.b32.xlu1 %v2356_v42, %s2406_s27  ;;  %2327 = vrot.lane.b32.xlu2 %v2356_v42, %s2404_s25 }
0x13fb   :  { %2332 = vrot.lane.b32.xlu2 %v2356_v42, %s2405_s26 }
0x144d   :  { %v2328_v51 = vpop.permute.xlu2 %2327 }
0x144e   :  { %v2330_v43 = vunpack.i.h.bf16 %v2328_v51  ;;  %v2329_v18 = vunpack.i.l.bf16 %v2328_v51 }
0x1450   :  { %v1771_v23 = vsel %vm3687_vm13, %v2329_v18, %v2330_v43  ;;  %v1772_v2 = vsel %vm3688_vm12, %v2330_v43, %v2329_v18  ;;  %vm3703_vm13 = vmmov %vm3695_vm0 }
0x1451   :  { %vm3704_vm12 = vmmov %vm3695_vm0 }
0x1455   :  { %v2333_v60 = vpop.permute.xlu2 %2332 }
0x1456   :  { %v2335_v36 = vunpack.i.h.bf16 %v2333_v60  ;;  %v2334_v22 = vunpack.i.l.bf16 %v2333_v60 }
0x1458   :  { %v1777_v1 = vsel %vm3689_vm9, %v2334_v22, %v2335_v36  ;;  %v1778_v35 = vsel %vm3690_vm2, %v2335_v36, %v2334_v22  ;;  %vm3705_vm9 = vmmov %vm3695_vm0 }
0x1459   :  { %v1781_v48 = vsel %vm3691_vm3, %v1772_v2, %v1777_v1  ;;  %v1782_v50 = vsel %vm3692_vm10, %v1771_v23, %v1778_v35  ;;  %v1779_v0 = vsel %vm3693_vm8, %v1777_v1, %v1772_v2  ;;  %v1780_v14 = vsel %vm3694_vm11, %v1778_v35, %v1771_v23  ;;  %vm3706_vm2 = vmmov %vm3695_vm0  ;;  %v1766_v1 = vld [vmem:[%s3525_s1 + $0x90] sm:$0xf] }
0x145a   :  { %v2336_v15 = vpack.i.bf16 %v1782_v50, %v1781_v48  ;;  %v2351_v7 = vpack.i.bf16 %v1780_v14, %v1779_v0  ;;  %vm3707_vm3 = vmmov %vm3697_vm4  ;;  %v1835_v43 = vpack.c.bf16 %v1781_v48, %v3430_v33  ;;  %v1836_v4 = vpack.c.bf16 %v1782_v50, %v3432_v38 }
0x145b   :  { %vm3708_vm10 = vmmov %vm3707_vm3 }
0x145c   :  { %2337 = vrot.lane.b32.xlu2 %v2336_v15, %s2406_s27  ;;  %2352 = vrot.lane.b32.xlu0 %v2351_v7, %s2407_s0  ;;  %vm3709_vm8 = vmmov %vm3707_vm3 }
0x145d   :  { %vm3710_vm11 = vmmov %vm3707_vm3 }
0x1464   :  { %2342 = vrot.lane.b32.xlu2 %v2336_v15, %s2407_s0 }
0x1465   :  { %v2358_v55 = vpop.permute.xlu1 %2357 }
0x1466   :  { %v2360_v56 = vunpack.i.h.bf16 %v2358_v55  ;;  %v2359_v57 = vunpack.i.l.bf16 %v2358_v55 }
0x1468   :  { %v1803_v39 = vsel %vm3703_vm13, %v2359_v57, %v2360_v56  ;;  %v1804_v19 = vsel %vm3704_vm12, %v2360_v56, %v2359_v57 }
0x146c   :  { %2347 = vrot.lane.b32.xlu2 %v2351_v7, %s2406_s27 }
0x1474   :  { %2362 = vrot.lane.b32.xlu2 %v2356_v42, %s2407_s0 }
0x14b6   :  { %v2338_v12 = vpop.permute.xlu2 %2337 }
0x14b7   :  { %v2340_v13 = vunpack.i.h.bf16 %v2338_v12  ;;  %v2339_v62 = vunpack.i.l.bf16 %v2338_v12 }
0x14b9   :  { %v1819_v17 = vsel %vm3695_vm0, %v2339_v62, %v2340_v13  ;;  %v1820_v41 = vsel %vm3696_vm7, %v2340_v13, %v2339_v62  ;;  %vm3711_vm0 = vnez %v3572_v46  ;;  %vm3712_vm7 = vnez %v3574_v47 }
0x14be   :  { %v2343_v16 = vpop.permute.xlu2 %2342 }
0x14bf   :  { %v2345_v28 = vunpack.i.h.bf16 %v2343_v16  ;;  %v2344_v44 = vunpack.i.l.bf16 %v2343_v16 }
0x14c1   :  { %v1825_v10 = vsel %vm3697_vm4, %v2344_v44, %v2345_v28  ;;  %v1826_v30 = vsel %vm3698_vm14, %v2345_v28, %v2344_v44  ;;  %vm3713_vm4 = vcmask 588800  }
0x14c2   :  { %v1829_v32 = vsel %vm3699_vm1, %v1820_v41, %v1825_v10  ;;  %v1830_v31 = vsel %vm3700_vm15, %v1819_v17, %v1826_v30  ;;  %v1827_v18 = vsel %vm3711_vm0, %v1825_v10, %v1820_v41  ;;  %v1828_v45 = vsel %vm3712_vm7, %v1826_v30, %v1819_v17  ;;  %vm3714_vm14 = vmmov %vm3713_vm4 }
0x14c3   :  { %v1839_v52 = vpack.c.bf16 %v1829_v32, %v1829_v32  ;;  %v1840_v53 = vpack.c.bf16 %v1830_v31, %v1830_v31  ;;  %v1833_v60 = vpack.c.bf16 %v1779_v0, %v1827_v18  ;;  %v1834_v36 = vpack.c.bf16 %v1780_v14, %v1828_v45 }
0x14c5   :  { %v1845_v24 = vsel %vm3701_vm5, %v1839_v52, 0  ;;  %v1848_v25 = vsel %vm3702_vm6, %v1840_v53, 0 }
0x14c6   :  { %1853 = vmatpush.bf16.msrb.mxu3 %v1845_v24  ;;  %1866 = vmatpush.bf16.msrb.mxu2 %v1848_v25  ;;  %v2348_v54 = vpop.permute.xlu2 %2347 }
0x14c7   :  { %v2350_v59 = vunpack.i.h.bf16 %v2348_v54  ;;  %v2349_v34 = vunpack.i.l.bf16 %v2348_v54 }
0x14c9   :  { %v1787_v40 = vsel %vm3705_vm9, %v2349_v34, %v2350_v59  ;;  %v1788_v61 = vsel %vm3706_vm2, %v2350_v59, %v2349_v34 }
0x14ce   :  { %v2353_v5 = vpop.permute.xlu0 %2352  ;;  %v2363_v63 = vpop.permute.xlu2 %2362 }
0x14cf   :  { %v2355_v37 = vunpack.i.h.bf16 %v2353_v5  ;;  %v2354_v20 = vunpack.i.l.bf16 %v2353_v5  ;;  %v2365_v6 = vunpack.i.h.bf16 %v2363_v63  ;;  %v2364_v3 = vunpack.i.l.bf16 %v2363_v63 }
0x14d1   :  { %v1793_v27 = vsel %vm3707_vm3, %v2354_v20, %v2355_v37  ;;  %v1794_v8 = vsel %vm3708_vm10, %v2355_v37, %v2354_v20  ;;  %v1809_v9 = vsel %vm3709_vm8, %v2364_v3, %v2365_v6  ;;  %v1810_v29 = vsel %vm3710_vm11, %v2365_v6, %v2364_v3 }
0x14d2   :  { %v1797_v26 = vsel %vm3699_vm1, %v1788_v61, %v1793_v27  ;;  %v1813_v11 = vsel %vm3699_vm1, %v1804_v19, %v1809_v9  ;;  %v1798_v58 = vsel %vm3700_vm15, %v1787_v40, %v1794_v8  ;;  %v1814_v21 = vsel %vm3700_vm15, %v1803_v39, %v1810_v29 }
0x14d3   :  { %v1837_v42 = vpack.c.bf16 %v1813_v11, %v1797_v26  ;;  %v1838_v51 = vpack.c.bf16 %v1814_v21, %v1798_v58  ;;  %v1795_v49 = vsel %vm3711_vm0, %v1793_v27, %v1788_v61  ;;  %v1811_v22 = vsel %vm3711_vm0, %v1809_v9, %v1804_v19 }
0x14d4   :  { %v1796_v33 = vsel %vm3712_vm7, %v1794_v8, %v1787_v40  ;;  %v1812_v38 = vsel %vm3712_vm7, %v1810_v29, %v1803_v39  ;;  %v1831_v23 = vpack.c.bf16 %v1811_v22, %v1795_v49 }
0x14d5   :  { %1854 = vmatpush.bf16.msrb.mxu3 %v1837_v42  ;;  %1867 = vmatpush.bf16.msrb.mxu2 %v1838_v51  ;;  %v1832_v2 = vpack.c.bf16 %v1812_v38, %v1796_v33 }
0x14d9   :  { %1855 = vmatpush.bf16.msrb.mxu3 %v1835_v43  ;;  %1868 = vmatpush.bf16.msrb.mxu2 %v1836_v4 }
0x14dd   :  { %1856 = vmatpush.bf16.msrb.mxu3 %v1833_v60  ;;  %1869 = vmatpush.bf16.msrb.mxu2 %v1834_v36 }
0x14e1   :  { %1857 = vmatpush.bf16.msrb.mxu3 %v1831_v23  ;;  %1870 = vmatpush.bf16.msrb.mxu2 %v1832_v2 }
0x14e4   :  { %1945 = vmatmul.msk.bf16.vlgmr.msrb.gmra.mxu3 %vm3713_vm4, %v1766_v1  ;;  %1946 = vmatmul.msk.bf16.vlgmr.msrb.gmra.mxu2 %vm3714_vm14, %v1766_v1 }
0x1567   :  { %v1859_v46 = vpop.f32.mrf.mxu3  ;;  %v1872_v35 = vpop.f32.mrf.mxu2 }
0x1568   :  { %v1876_v48 = vadd.f32 %v1872_v35, %v1859_v46  ;;  %v1880_v50 = vmul.f32 %v1859_v46, %v1859_v46  ;;  %v1881_v47 = vmul.f32 %v1872_v35, %v1872_v35 }
0x156a   :  { %1877 = vadd.xlane.f32.xlu2 %v1876_v48  ;;  %v1882_v0 = vadd.f32 %v1881_v47, %v1880_v50 }
0x156c   :  { %1883 = vadd.xlane.f32.xlu0 %v1882_v0 }
0x156f   :  { %v1861_v14 = vpop.f32.mrf.mxu3  ;;  %v1874_v15 = vpop.f32.mrf.mxu2 }
0x15dd   :  { %v1878_v7 = vpop.xlane.xlu2 %1877 }
0x15de   :  { %v1879_v12 = vmul.f32 0.00390625, %v1878_v7 }
0x15df   :  { %v1884_v13 = vpop.xlane.xlu0 %1883 }
0x15e0   :  { %v1886_v62 = vmul.f32 %v1879_v12, %v1879_v12  ;;  %v1885_v16 = vmul.f32 0.00390625, %v1884_v13 }
0x15e2   :  { %v1887_v28 = vsub.f32 %v1885_v16, %v1886_v62 }
0x15e4   :  { %v1888_v44 = vadd.f32 1e-05, %v1887_v28 }
0x15e6   :  { %2398 = vrsqrt.f32 %v1888_v44  ;;  %vm1895_vm15 = vweird.f32 %v1888_v44 }
0x15ec   :  { %v2399_v17 = vpop.eup %2398 }
0x15ed   :  { %v1890_v41 = vmul.f32 %v2399_v17, %v1888_v44  ;;  %vm1896_vm1 = vweird.f32 %v2399_v17 }
0x15ee   :  { %vm1897_vm5 = vmor %vm1895_vm15, %vm1896_vm1 }
0x15ef   :  { %v1891_v10 = vmul.f32 %v2399_v17, %v1890_v41 }
0x15f1   :  { %v1892_v30 = vmul.f32 0.5, %v1891_v10 }
0x15f3   :  { %v1893_v32 = vsub.f32 1.5, %v1892_v30 }
0x15f5   :  { %v1894_v31 = vmul.f32 %v2399_v17, %v1893_v32 }
0x15f7   :  { %v1898_v52 = vsel %vm1897_vm5, %v2399_v17, %v1894_v31 }
0x15f8   :  { %v1899_v53 = vmul.f32 %v1898_v52, %v1859_v46  ;;  %v1900_v24 = vmul.f32 %v1898_v52, %v1872_v35  ;;  %v1901_v25 = vmul.f32 %v1898_v52, %v1879_v12 }
0x15fa   :  { %v1902_v54 = vsub.f32 %v1899_v53, %v1901_v25  ;;  %v1903_v55 = vsub.f32 %v1900_v24, %v1901_v25 }
0x15fc   :  { %v1904_v56 = vmul.f32 0.5, %v1902_v54  ;;  %v1905_v57 = vmul.f32 0.5, %v1903_v55 }
0x15fe   :  { %2400 = vtanh.f32 %v1904_v56 }
0x15ff   :  { %2402 = vtanh.f32 %v1905_v57 }
0x1604   :  { %v2401_v59 = vpop.eup %2400 }
0x1605   :  { %v2403_v34 = vpop.eup %2402  ;;  %v1908_v5 = vmul.f32 0.5, %v2401_v59 }
0x1606   :  { %v1909_v63 = vmul.f32 0.5, %v2403_v34 }
0x1607   :  { %v1910_v37 = vadd.f32 0.5, %v1908_v5 }
0x1608   :  { %v1911_v20 = vadd.f32 0.5, %v1909_v63 }
0x1609   :  { %1912 = vst [vmem:[%s3529_s6] sm:$0xff] %v1910_v37 }
0x160a   :  { %1913 = vst [vmem:[%s3529_s6 + $0x8] sm:$0xff] %v1911_v20 }

</bundles_post_ra>
